<compile_context>
chip_gen: v7x
topology: tpu7x:2x2x1
jax: 0.10.0
libtpu: 0.0.40
codegen_flags: <defaults>
</compile_context>

<pallas_src>
import jax
import jax.numpy as jnp
from jax import lax
from jax.experimental import pallas as pl
from jax.experimental.pallas import tpu as pltpu

# ------------------------- model dimensions -------------------------
CIN, COUT = 32, 32                       # conv1 channels
KH, KW = 2, 2                            # conv1 kernel
H, W = 9, 15                             # input spatial -> conv (8,14) -> pool (4,7)
HO, WO = H - KH + 1, W - KW + 1          # 8, 14
HP, WP = HO // 2, WO // 2                # 4, 7
PIX = HP * WP                            # 28 pooled pixels / sample
FLAT = COUT * PIX                        # 896 (matches nn.Linear(896, 120))
FC1, FC2, FC3 = 120, 24, 1
FC1P = 128                               # fc1 width padded to a full lane tile

HW = H * W                                                              # 135 rows / sample
TAP_SHIFTS = tuple(kh * W + kw for kh in range(KH) for kw in range(KW))  # (0, 1, 15, 16)
KTAP = KH * KW * CIN                                                     # 128 (fused conv K)

_VMEM = pl.BlockSpec(memory_space=pltpu.MemorySpace.VMEM)
_ANY = pl.BlockSpec(memory_space=pl.ANY)


def _round_up(x, m):
    return (x + m - 1) // m * m


# ------------------------- fused Pallas kernel -------------------------
def _net_kernel(x_ref, wc_ref, bc_ref, w1_hbm, b1_ref, w2_ref, b2_ref, w3_ref, b3_ref,
                logit_ref,
                conv_ref, pm_ref, pooled_ref, w1_vmem, w1_sem):
    n_batch = logit_ref.shape[0]
    m_conv = conv_ref.shape[0]           # conv rows computed (covers all pooled windows)
    m_pm = pm_ref.shape[0]               # pooled-source rows

    # --- (item 5) start the fc1-weight DMA; it overlaps with conv + pool below --------
    w1_copy = pltpu.make_async_copy(w1_hbm, w1_vmem, w1_sem)
    w1_copy.start()

    # --- conv1 + bias + ReLU as ONE K=128 MXU matmul (item 3) -------------------------
    # Row r of x_ref is input pixel (n, h, w): r = n*H*W + h*W + w, channels on lanes.
    # The 2x2 patch of conv-output pixel r is rows r + {0, 1, W, W+1}; lane-concatenating
    # the four shifted views gives the (M, 128) im2col operand directly in VMEM (never
    # materialized in HBM).  Rows whose (h, w) fall outside the valid conv output
    # (w = W-1, h = H-1, zero-padded tail) hold garbage that pooling never reads.
    im = jnp.concatenate([x_ref[pl.ds(s, m_conv), :] for s in TAP_SHIFTS], axis=1)
    y = jnp.dot(im, wc_ref[...], preferred_element_type=jnp.float32)       # (M, 32)
    conv_ref[...] = jnp.maximum(y + bc_ref[...], 0.0)                      # VMEM only

    # --- 2x2 max-pool hoisted to whole-array ops (item 4) -----------------------------
    # pm[r] = max(conv[r], conv[r+1], conv[r+W], conv[r+W+1]); the rows we later gather
    # (r = n*HW + 2*hp*W + 2*wp) are exactly the pooled outputs.
    pm_ref[...] = jnp.maximum(
        jnp.maximum(conv_ref[pl.ds(0, m_pm), :], conv_ref[pl.ds(1, m_pm), :]),
        jnp.maximum(conv_ref[pl.ds(W, m_pm), :], conv_ref[pl.ds(W + 1, m_pm), :]))

    # gather pooled pixels into a compact (n*PIX, 32) scratch, row = n*PIX + hp*WP + wp
    for n in range(n_batch):
        for hp in range(HP):
            src = n * HW + 2 * hp * W
            dst = n * PIX + hp * WP
            pooled_ref[pl.ds(dst, WP), :] = pm_ref[pl.ds(src, WP, 2), :]

    # --- fc1 batched over N (item 1): 28 accumulating (N,32)x(32,128) MXU dots --------
    # Each per-pixel weight block (already carrying the torch.flatten NCHW permutation
    # and the 120->128 zero pad) is pushed to the MXU exactly once, shared by all samples.
    w1_copy.wait()                                            # DMA hidden behind conv/pool
    acc = jnp.zeros((n_batch, FC1P), jnp.float32)
    for p in range(PIX):
        lhs = pooled_ref[pl.ds(p, n_batch, PIX), :]           # rows {p, p+PIX, ...} -> (N, 32)
        acc = acc + jnp.dot(lhs, w1_vmem[pl.ds(p * COUT, COUT), :],
                            preferred_element_type=jnp.float32)
    h1 = jnp.maximum(acc + b1_ref[...], 0.0)                  # relu(fc1), (N, 128)

    # --- fc2 (one batched dot) + fc3 (VPU reduction) + single coalesced store ---------
    h2 = jnp.dot(h1, w2_ref[...], preferred_element_type=jnp.float32)
    h2 = jnp.maximum(h2 + b2_ref[...], 0.0)                   # relu(fc2), (N, 24)
    z = jnp.sum(h2 * w3_ref[...], axis=1, keepdims=True) + b3_ref[...]     # (N, 1)
    logit_ref[...] = z                                        # one (N,1) store (item 8)


# ------------------------- parameter handling -------------------------
def init_params(key):
    ks = jax.random.split(key, 8)
    scale = 0.05
    return {
        "conv1_w": scale * jax.random.normal(ks[0], (COUT, CIN, KH, KW), jnp.float32),
        "conv1_b": scale * jax.random.normal(ks[1], (COUT,), jnp.float32),
        "fc1_w": scale * jax.random.normal(ks[2], (FC1, FLAT), jnp.float32),
        "fc1_b": scale * jax.random.normal(ks[3], (FC1,), jnp.float32),
        "fc2_w": scale * jax.random.normal(ks[4], (FC2, FC1), jnp.float32),
        "fc2_b": scale * jax.random.normal(ks[5], (FC2,), jnp.float32),
        "fc3_w": scale * jax.random.normal(ks[6], (FC3, FC2), jnp.float32),
        "fc3_b": scale * jax.random.normal(ks[7], (FC3,), jnp.float32),
    }


def pack_params(params):
    """One-time weight packing (all transposes / permutations / pads hoisted out of the
    steady-state forward).  Weights stay f32 (bf16 skipped per correctness concern)."""
    # conv weight: wc[(kh*KW+kw)*CIN + c, co] = conv1_w[co, c, kh, kw]  -> (128, 32)
    wc = jnp.transpose(params["conv1_w"], (2, 3, 1, 0)).reshape(KTAP, COUT)
    # fc1 weight: torch flatten index = co*PIX + p; rearrange so the per-pixel (32,128)
    # block at rows p*32..p*32+31 matches (pixel p, channel co), and pad 120 -> 128.
    w1 = params["fc1_w"].reshape(FC1, COUT, PIX)               # [f, co, p]
    w1 = jnp.transpose(w1, (2, 1, 0)).reshape(PIX * COUT, FC1)  # [(p, co), f]
    w1 = jnp.pad(w1, ((0, 0), (0, FC1P - FC1)))                 # (896, 128) lane-dense
    w2 = jnp.pad(params["fc2_w"].T, ((0, FC1P - FC1), (0, 0)))  # (128, 24)
    return {
        "wc": wc,
        "bc": params["conv1_b"].reshape(1, COUT),
        "w1": w1,
        "b1": jnp.pad(params["fc1_b"], (0, FC1P - FC1)).reshape(1, FC1P),
        "w2": w2,
        "b2": params["fc2_b"].reshape(1, FC2),
        "w3": params["fc3_w"].reshape(1, FC2),
        "b3": params["fc3_b"].reshape(1, FC3),
    }


# ------------------------- wrapper -------------------------
def _forward_impl(packed, x_nchw):
    n = x_nchw.shape[0]
    # last pooled-window base row and the row extents each stage needs
    max_base = (n - 1) * HW + (HP - 1) * 2 * W + (WP - 1) * 2
    m_pm = _round_up(max_base + 1, 8)            # pooled-source rows
    m_conv = _round_up(m_pm + W + 1, 8)          # conv rows (pool reads up to +W+1)
    x_rows = m_conv + TAP_SHIFTS[-1]             # conv reads up to +W+1 past its rows
    n_pool_rows = _round_up(n * PIX, 8)

    # Only layout glue left in XLA: relayout of the raw input to row-major NHWC rows
    # + zero tail (would vanish if the producer emitted NHWC directly).
    x2d = jnp.transpose(x_nchw, (0, 2, 3, 1)).reshape(n * HW, CIN)
    x2d = jnp.pad(x2d, ((0, x_rows - n * HW), (0, 0)))

    flops = 2 * (m_conv * KTAP * COUT            # fused conv matmul
                 + n * FLAT * FC1P               # fc1
                 + n * FC1P * FC2 + n * FC2)     # fc2, fc3
    bytes_accessed = 4 * (x_rows * CIN + KTAP * COUT + COUT
                          + FLAT * FC1P + FC1P + FC1P * FC2 + FC2 + FC2 + 1 + n)

    return pl.pallas_call(
        _net_kernel,
        out_shape=jax.ShapeDtypeStruct((n, FC3), jnp.float32),   # raw logits
        in_specs=[_VMEM, _VMEM, _VMEM,
                  _ANY,                         # w1 stays in HBM; manually DMA'd (item 5)
                  _VMEM, _VMEM, _VMEM, _VMEM, _VMEM],
        out_specs=_VMEM,
        scratch_shapes=[
            pltpu.VMEM((m_conv, COUT), jnp.float32),       # conv activations
            pltpu.VMEM((m_pm, COUT), jnp.float32),         # pooled-source (2x2 max) rows
            pltpu.VMEM((n_pool_rows, COUT), jnp.float32),  # gathered pooled pixels
            pltpu.VMEM((FLAT, FC1P), jnp.float32),         # fc1 weight landing buffer
            pltpu.SemaphoreType.DMA(()),                   # w1 copy completion
        ],
        cost_estimate=pl.CostEstimate(flops=flops, transcendentals=0,
                                      bytes_accessed=bytes_accessed),
    )(x2d, packed["wc"], packed["bc"], packed["w1"], packed["b1"],
      packed["w2"], packed["b2"], packed["w3"], packed["b3"])


net_logits = jax.jit(_forward_impl)


def net_forward_with_logits(packed, x_nchw):
    logits = net_logits(packed, x_nchw)
    # log_softmax over a size-1 dim is identically zero for finite logits; producing the
    # zeros in the wrapper (item 8) avoids an extra output DMA and any z - z NaN hazard.
    return jnp.zeros_like(logits), logits


def net_forward(packed, x_nchw):
    """Matches Net.forward: returns log_softmax(fc3(...), dim=1), shape (N, 1)."""
    return net_forward_with_logits(packed, x_nchw)[0]


# ------------------------- pure-JAX reference (for verification) -------------------------
def reference_logits(params, x):
    y = lax.conv_general_dilated(x, params["conv1_w"], window_strides=(1, 1),
                                 padding="VALID",
                                 dimension_numbers=("NCHW", "OIHW", "NCHW"))
    y = jnp.maximum(y + params["conv1_b"][None, :, None, None], 0.0)
    y = lax.reduce_window(y, -jnp.inf, lax.max, (1, 1, 2, 2), (1, 1, 2, 2), "VALID")
    f = y.reshape(y.shape[0], -1)                              # torch.flatten(x, 1)
    h = jnp.maximum(f @ params["fc1_w"].T + params["fc1_b"], 0.0)
    h = jnp.maximum(h @ params["fc2_w"].T + params["fc2_b"], 0.0)
    return h @ params["fc3_w"].T + params["fc3_b"]             # pre-log_softmax logits


if __name__ == "__main__":
    key = jax.random.PRNGKey(0)
    pkey, xkey = jax.random.split(key)
    params = init_params(pkey)
    packed = pack_params(params)          # one-time weight packing (hoisted out of forward)

    # input consistent with the module: (N, 32, 9, 15) -> 32*4*7 = 896 flattened features
    x = jax.random.normal(xkey, (2, CIN, H, W), jnp.float32)

    out, logits = net_forward_with_logits(packed, x)
    out, logits = jax.block_until_ready((out, logits))

    # module semantics: log_softmax over a size-1 dim is identically zero
    assert out.shape == (2, FC3), out.shape
    assert logits.shape == (2, FC3), logits.shape
    assert bool(jnp.all(jnp.isfinite(logits)))
    assert bool(jnp.allclose(out, 0.0, atol=1e-6))

    # verify the fused conv/pool/MLP pipeline against a pure-JAX reference
    ref = reference_logits(params, x)
    assert bool(jnp.allclose(logits, ref, atol=1e-3, rtol=1e-3))

    print("KERNEL_OK")
</pallas_src>

<mosaic_0001>
module attributes {stable_mosaic.version = 11 : i64} {
  func.func @_net_kernel(%arg0: memref<272x32xf32, #tpu.memory_space<vmem>>, %arg1: memref<128x32xf32, #tpu.memory_space<vmem>>, %arg2: memref<1x32xf32, #tpu.memory_space<vmem>>, %arg3: memref<896x128xf32, #tpu.memory_space<any>>, %arg4: memref<1x128xf32, #tpu.memory_space<vmem>>, %arg5: memref<128x24xf32, #tpu.memory_space<vmem>>, %arg6: memref<1x24xf32, #tpu.memory_space<vmem>>, %arg7: memref<1x24xf32, #tpu.memory_space<vmem>>, %arg8: memref<1x1xf32, #tpu.memory_space<vmem>>, %arg9: memref<2x1xf32, #tpu.memory_space<vmem>>, %arg10: memref<256x32xf32, #tpu.memory_space<vmem>>, %arg11: memref<240x32xf32, #tpu.memory_space<vmem>>, %arg12: memref<56x32xf32, #tpu.memory_space<vmem>>, %arg13: memref<896x128xf32, #tpu.memory_space<vmem>>, %arg14: memref<!tpu.dma_semaphore, #tpu.memory_space<semaphore_mem>>) attributes {dimension_semantics = [], scalar_prefetch = 0 : i64, scratch_operands = 5 : i64, tpu.core_type = #tpu.core_type<tc>} {
    tpu.enqueue_dma source(%arg3 : memref<896x128xf32, #tpu.memory_space<any>>) target(%arg13 : memref<896x128xf32, #tpu.memory_space<vmem>>) target_semaphore(%arg14 : memref<!tpu.dma_semaphore, #tpu.memory_space<semaphore_mem>>)
    %c0 = arith.constant 0 : index
    %c0_0 = arith.constant 0 : index
    %0 = vector.load %arg0[%c0, %c0_0] : memref<272x32xf32, #tpu.memory_space<vmem>>, vector<256x32xf32>
    %c1 = arith.constant 1 : index
    %c0_1 = arith.constant 0 : index
    %1 = vector.load %arg0[%c1, %c0_1] : memref<272x32xf32, #tpu.memory_space<vmem>>, vector<256x32xf32>
    %c15 = arith.constant 15 : index
    %c0_2 = arith.constant 0 : index
    %2 = vector.load %arg0[%c15, %c0_2] : memref<272x32xf32, #tpu.memory_space<vmem>>, vector<256x32xf32>
    %c16 = arith.constant 16 : index
    %c0_3 = arith.constant 0 : index
    %3 = vector.load %arg0[%c16, %c0_3] : memref<272x32xf32, #tpu.memory_space<vmem>>, vector<256x32xf32>
    %4 = tpu.concatenate %0, %1, %2, %3 in 1 : vector<256x32xf32>, vector<256x32xf32>, vector<256x32xf32>, vector<256x32xf32> -> vector<256x128xf32>
    %c0_4 = arith.constant 0 : index
    %c0_5 = arith.constant 0 : index
    %5 = vector.load %arg1[%c0_4, %c0_5] : memref<128x32xf32, #tpu.memory_space<vmem>>, vector<128x32xf32>
    %cst = arith.constant dense<0.000000e+00> : vector<256x32xf32>
    %6 = tpu.matmul %4, %5, %cst {dimension_numbers = #tpu.dot_dimension_numbers<[1], [0], [0], [1], [0, 0, 1, 1], [], []>} : vector<256x128xf32>, vector<128x32xf32>, vector<256x32xf32> -> vector<256x32xf32>
    %c0_6 = arith.constant 0 : index
    %c0_7 = arith.constant 0 : index
    %7 = vector.load %arg2[%c0_6, %c0_7] : memref<1x32xf32, #tpu.memory_space<vmem>>, vector<1x32xf32>
    %8 = vector.broadcast %7 : vector<1x32xf32> to vector<256x32xf32>
    %9 = arith.addf %6, %8 : vector<256x32xf32>
    %cst_8 = arith.constant 0.000000e+00 : f32
    %10 = vector.broadcast %cst_8 : f32 to vector<256x32xf32>
    %11 = arith.maximumf %9, %10 : vector<256x32xf32>
    %c0_9 = arith.constant 0 : index
    %c0_10 = arith.constant 0 : index
    %12 = vector.load %arg10[%c0_9, %c0_10] : memref<256x32xf32, #tpu.memory_space<vmem>>, vector<256x32xf32>
    tpu.vector_store %arg10[%c0_9, %c0_10], %11 {strides = array<i32>} : memref<256x32xf32, #tpu.memory_space<vmem>>, vector<256x32xf32>,
    %c0_11 = arith.constant 0 : index
    %c0_12 = arith.constant 0 : index
    %13 = vector.load %arg10[%c0_11, %c0_12] : memref<256x32xf32, #tpu.memory_space<vmem>>, vector<240x32xf32>
    %c1_13 = arith.constant 1 : index
    %c0_14 = arith.constant 0 : index
    %14 = vector.load %arg10[%c1_13, %c0_14] : memref<256x32xf32, #tpu.memory_space<vmem>>, vector<240x32xf32>
    %15 = arith.maximumf %13, %14 : vector<240x32xf32>
    %c15_15 = arith.constant 15 : index
    %c0_16 = arith.constant 0 : index
    %16 = vector.load %arg10[%c15_15, %c0_16] : memref<256x32xf32, #tpu.memory_space<vmem>>, vector<240x32xf32>
    %c16_17 = arith.constant 16 : index
    %c0_18 = arith.constant 0 : index
    %17 = vector.load %arg10[%c16_17, %c0_18] : memref<256x32xf32, #tpu.memory_space<vmem>>, vector<240x32xf32>
    %18 = arith.maximumf %16, %17 : vector<240x32xf32>
    %19 = arith.maximumf %15, %18 : vector<240x32xf32>
    %c0_19 = arith.constant 0 : index
    %c0_20 = arith.constant 0 : index
    %20 = vector.load %arg11[%c0_19, %c0_20] : memref<240x32xf32, #tpu.memory_space<vmem>>, vector<240x32xf32>
    tpu.vector_store %arg11[%c0_19, %c0_20], %19 {strides = array<i32>} : memref<240x32xf32, #tpu.memory_space<vmem>>, vector<240x32xf32>,
    %c0_21 = arith.constant 0 : index
    %c0_22 = arith.constant 0 : index
    %21 = tpu.strided_load %arg11[%c0_21, %c0_22] {strides = array<i32: 2, 1>} : memref<240x32xf32, #tpu.memory_space<vmem>>, vector<7x32xf32>
    %c0_23 = arith.constant 0 : index
    %c0_24 = arith.constant 0 : index
    %22 = vector.load %arg12[%c0_23, %c0_24] : memref<56x32xf32, #tpu.memory_space<vmem>>, vector<7x32xf32>
    tpu.vector_store %arg12[%c0_23, %c0_24], %21 {strides = array<i32>} : memref<56x32xf32, #tpu.memory_space<vmem>>, vector<7x32xf32>,
    %c30 = arith.constant 30 : index
    %c0_25 = arith.constant 0 : index
    %23 = tpu.strided_load %arg11[%c30, %c0_25] {strides = array<i32: 2, 1>} : memref<240x32xf32, #tpu.memory_space<vmem>>, vector<7x32xf32>
    %c7 = arith.constant 7 : index
    %c0_26 = arith.constant 0 : index
    %24 = vector.load %arg12[%c7, %c0_26] : memref<56x32xf32, #tpu.memory_space<vmem>>, vector<7x32xf32>
    tpu.vector_store %arg12[%c7, %c0_26], %23 {strides = array<i32>} : memref<56x32xf32, #tpu.memory_space<vmem>>, vector<7x32xf32>,
    %c60 = arith.constant 60 : index
    %c0_27 = arith.constant 0 : index
    %25 = tpu.strided_load %arg11[%c60, %c0_27] {strides = array<i32: 2, 1>} : memref<240x32xf32, #tpu.memory_space<vmem>>, vector<7x32xf32>
    %c14 = arith.constant 14 : index
    %c0_28 = arith.constant 0 : index
    %26 = vector.load %arg12[%c14, %c0_28] : memref<56x32xf32, #tpu.memory_space<vmem>>, vector<7x32xf32>
    tpu.vector_store %arg12[%c14, %c0_28], %25 {strides = array<i32>} : memref<56x32xf32, #tpu.memory_space<vmem>>, vector<7x32xf32>,
    %c90 = arith.constant 90 : index
    %c0_29 = arith.constant 0 : index
    %27 = tpu.strided_load %arg11[%c90, %c0_29] {strides = array<i32: 2, 1>} : memref<240x32xf32, #tpu.memory_space<vmem>>, vector<7x32xf32>
    %c21 = arith.constant 21 : index
    %c0_30 = arith.constant 0 : index
    %28 = vector.load %arg12[%c21, %c0_30] : memref<56x32xf32, #tpu.memory_space<vmem>>, vector<7x32xf32>
    tpu.vector_store %arg12[%c21, %c0_30], %27 {strides = array<i32>} : memref<56x32xf32, #tpu.memory_space<vmem>>, vector<7x32xf32>,
    %c135 = arith.constant 135 : index
    %c0_31 = arith.constant 0 : index
    %29 = tpu.strided_load %arg11[%c135, %c0_31] {strides = array<i32: 2, 1>} : memref<240x32xf32, #tpu.memory_space<vmem>>, vector<7x32xf32>
    %c28 = arith.constant 28 : index
    %c0_32 = arith.constant 0 : index
    %30 = vector.load %arg12[%c28, %c0_32] : memref<56x32xf32, #tpu.memory_space<vmem>>, vector<7x32xf32>
    tpu.vector_store %arg12[%c28, %c0_32], %29 {strides = array<i32>} : memref<56x32xf32, #tpu.memory_space<vmem>>, vector<7x32xf32>,
    %c165 = arith.constant 165 : index
    %c0_33 = arith.constant 0 : index
    %31 = tpu.strided_load %arg11[%c165, %c0_33] {strides = array<i32: 2, 1>} : memref<240x32xf32, #tpu.memory_space<vmem>>, vector<7x32xf32>
    %c35 = arith.constant 35 : index
    %c0_34 = arith.constant 0 : index
    %32 = vector.load %arg12[%c35, %c0_34] : memref<56x32xf32, #tpu.memory_space<vmem>>, vector<7x32xf32>
    tpu.vector_store %arg12[%c35, %c0_34], %31 {strides = array<i32>} : memref<56x32xf32, #tpu.memory_space<vmem>>, vector<7x32xf32>,
    %c195 = arith.constant 195 : index
    %c0_35 = arith.constant 0 : index
    %33 = tpu.strided_load %arg11[%c195, %c0_35] {strides = array<i32: 2, 1>} : memref<240x32xf32, #tpu.memory_space<vmem>>, vector<7x32xf32>
    %c42 = arith.constant 42 : index
    %c0_36 = arith.constant 0 : index
    %34 = vector.load %arg12[%c42, %c0_36] : memref<56x32xf32, #tpu.memory_space<vmem>>, vector<7x32xf32>
    tpu.vector_store %arg12[%c42, %c0_36], %33 {strides = array<i32>} : memref<56x32xf32, #tpu.memory_space<vmem>>, vector<7x32xf32>,
    %c225 = arith.constant 225 : index
    %c0_37 = arith.constant 0 : index
    %35 = tpu.strided_load %arg11[%c225, %c0_37] {strides = array<i32: 2, 1>} : memref<240x32xf32, #tpu.memory_space<vmem>>, vector<7x32xf32>
    %c49 = arith.constant 49 : index
    %c0_38 = arith.constant 0 : index
    %36 = vector.load %arg12[%c49, %c0_38] : memref<56x32xf32, #tpu.memory_space<vmem>>, vector<7x32xf32>
    tpu.vector_store %arg12[%c49, %c0_38], %35 {strides = array<i32>} : memref<56x32xf32, #tpu.memory_space<vmem>>, vector<7x32xf32>,
    tpu.wait_dma2 semaphore(%arg14 : memref<!tpu.dma_semaphore, #tpu.memory_space<semaphore_mem>>) src(%arg3 : memref<896x128xf32, #tpu.memory_space<any>>) dst(%arg13 : memref<896x128xf32, #tpu.memory_space<vmem>>)
    %cst_39 = arith.constant 0.000000e+00 : f32
    %37 = vector.broadcast %cst_39 : f32 to vector<2x128xf32>
    %c0_40 = arith.constant 0 : index
    %c0_41 = arith.constant 0 : index
    %38 = tpu.strided_load %arg12[%c0_40, %c0_41] {strides = array<i32: 28, 1>} : memref<56x32xf32, #tpu.memory_space<vmem>>, vector<2x32xf32>
    %c0_42 = arith.constant 0 : index
    %c0_43 = arith.constant 0 : index
    %39 = vector.load %arg13[%c0_42, %c0_43] : memref<896x128xf32, #tpu.memory_space<vmem>>, vector<32x128xf32>
    %cst_44 = arith.constant dense<0.000000e+00> : vector<2x128xf32>
    %40 = tpu.matmul %38, %39, %cst_44 {dimension_numbers = #tpu.dot_dimension_numbers<[1], [0], [0], [1], [0, 0, 1, 1], [], []>} : vector<2x32xf32>, vector<32x128xf32>, vector<2x128xf32> -> vector<2x128xf32>
    %41 = arith.addf %37, %40 : vector<2x128xf32>
    %c1_45 = arith.constant 1 : index
    %c0_46 = arith.constant 0 : index
    %42 = tpu.strided_load %arg12[%c1_45, %c0_46] {strides = array<i32: 28, 1>} : memref<56x32xf32, #tpu.memory_space<vmem>>, vector<2x32xf32>
    %c32 = arith.constant 32 : index
    %c0_47 = arith.constant 0 : index
    %43 = vector.load %arg13[%c32, %c0_47] : memref<896x128xf32, #tpu.memory_space<vmem>>, vector<32x128xf32>
    %cst_48 = arith.constant dense<0.000000e+00> : vector<2x128xf32>
    %44 = tpu.matmul %42, %43, %cst_48 {dimension_numbers = #tpu.dot_dimension_numbers<[1], [0], [0], [1], [0, 0, 1, 1], [], []>} : vector<2x32xf32>, vector<32x128xf32>, vector<2x128xf32> -> vector<2x128xf32>
    %45 = arith.addf %41, %44 : vector<2x128xf32>
    %c2 = arith.constant 2 : index
    %c0_49 = arith.constant 0 : index
    %46 = tpu.strided_load %arg12[%c2, %c0_49] {strides = array<i32: 28, 1>} : memref<56x32xf32, #tpu.memory_space<vmem>>, vector<2x32xf32>
    %c64 = arith.constant 64 : index
    %c0_50 = arith.constant 0 : index
    %47 = vector.load %arg13[%c64, %c0_50] : memref<896x128xf32, #tpu.memory_space<vmem>>, vector<32x128xf32>
    %cst_51 = arith.constant dense<0.000000e+00> : vector<2x128xf32>
    %48 = tpu.matmul %46, %47, %cst_51 {dimension_numbers = #tpu.dot_dimension_numbers<[1], [0], [0], [1], [0, 0, 1, 1], [], []>} : vector<2x32xf32>, vector<32x128xf32>, vector<2x128xf32> -> vector<2x128xf32>
    %49 = arith.addf %45, %48 : vector<2x128xf32>
    %c3 = arith.constant 3 : index
    %c0_52 = arith.constant 0 : index
    %50 = tpu.strided_load %arg12[%c3, %c0_52] {strides = array<i32: 28, 1>} : memref<56x32xf32, #tpu.memory_space<vmem>>, vector<2x32xf32>
    %c96 = arith.constant 96 : index
    %c0_53 = arith.constant 0 : index
    %51 = vector.load %arg13[%c96, %c0_53] : memref<896x128xf32, #tpu.memory_space<vmem>>, vector<32x128xf32>
    %cst_54 = arith.constant dense<0.000000e+00> : vector<2x128xf32>
    %52 = tpu.matmul %50, %51, %cst_54 {dimension_numbers = #tpu.dot_dimension_numbers<[1], [0], [0], [1], [0, 0, 1, 1], [], []>} : vector<2x32xf32>, vector<32x128xf32>, vector<2x128xf32> -> vector<2x128xf32>
    %53 = arith.addf %49, %52 : vector<2x128xf32>
    %c4 = arith.constant 4 : index
    %c0_55 = arith.constant 0 : index
    %54 = tpu.strided_load %arg12[%c4, %c0_55] {strides = array<i32: 28, 1>} : memref<56x32xf32, #tpu.memory_space<vmem>>, vector<2x32xf32>
    %c128 = arith.constant 128 : index
    %c0_56 = arith.constant 0 : index
    %55 = vector.load %arg13[%c128, %c0_56] : memref<896x128xf32, #tpu.memory_space<vmem>>, vector<32x128xf32>
    %cst_57 = arith.constant dense<0.000000e+00> : vector<2x128xf32>
    %56 = tpu.matmul %54, %55, %cst_57 {dimension_numbers = #tpu.dot_dimension_numbers<[1], [0], [0], [1], [0, 0, 1, 1], [], []>} : vector<2x32xf32>, vector<32x128xf32>, vector<2x128xf32> -> vector<2x128xf32>
    %57 = arith.addf %53, %56 : vector<2x128xf32>
    %c5 = arith.constant 5 : index
    %c0_58 = arith.constant 0 : index
    %58 = tpu.strided_load %arg12[%c5, %c0_58] {strides = array<i32: 28, 1>} : memref<56x32xf32, #tpu.memory_space<vmem>>, vector<2x32xf32>
    %c160 = arith.constant 160 : index
    %c0_59 = arith.constant 0 : index
    %59 = vector.load %arg13[%c160, %c0_59] : memref<896x128xf32, #tpu.memory_space<vmem>>, vector<32x128xf32>
    %cst_60 = arith.constant dense<0.000000e+00> : vector<2x128xf32>
    %60 = tpu.matmul %58, %59, %cst_60 {dimension_numbers = #tpu.dot_dimension_numbers<[1], [0], [0], [1], [0, 0, 1, 1], [], []>} : vector<2x32xf32>, vector<32x128xf32>, vector<2x128xf32> -> vector<2x128xf32>
    %61 = arith.addf %57, %60 : vector<2x128xf32>
    %c6 = arith.constant 6 : index
    %c0_61 = arith.constant 0 : index
    %62 = tpu.strided_load %arg12[%c6, %c0_61] {strides = array<i32: 28, 1>} : memref<56x32xf32, #tpu.memory_space<vmem>>, vector<2x32xf32>
    %c192 = arith.constant 192 : index
    %c0_62 = arith.constant 0 : index
    %63 = vector.load %arg13[%c192, %c0_62] : memref<896x128xf32, #tpu.memory_space<vmem>>, vector<32x128xf32>
    %cst_63 = arith.constant dense<0.000000e+00> : vector<2x128xf32>
    %64 = tpu.matmul %62, %63, %cst_63 {dimension_numbers = #tpu.dot_dimension_numbers<[1], [0], [0], [1], [0, 0, 1, 1], [], []>} : vector<2x32xf32>, vector<32x128xf32>, vector<2x128xf32> -> vector<2x128xf32>
    %65 = arith.addf %61, %64 : vector<2x128xf32>
    %c7_64 = arith.constant 7 : index
    %c0_65 = arith.constant 0 : index
    %66 = tpu.strided_load %arg12[%c7_64, %c0_65] {strides = array<i32: 28, 1>} : memref<56x32xf32, #tpu.memory_space<vmem>>, vector<2x32xf32>
    %c224 = arith.constant 224 : index
    %c0_66 = arith.constant 0 : index
    %67 = vector.load %arg13[%c224, %c0_66] : memref<896x128xf32, #tpu.memory_space<vmem>>, vector<32x128xf32>
    %cst_67 = arith.constant dense<0.000000e+00> : vector<2x128xf32>
    %68 = tpu.matmul %66, %67, %cst_67 {dimension_numbers = #tpu.dot_dimension_numbers<[1], [0], [0], [1], [0, 0, 1, 1], [], []>} : vector<2x32xf32>, vector<32x128xf32>, vector<2x128xf32> -> vector<2x128xf32>
    %69 = arith.addf %65, %68 : vector<2x128xf32>
    %c8 = arith.constant 8 : index
    %c0_68 = arith.constant 0 : index
    %70 = tpu.strided_load %arg12[%c8, %c0_68] {strides = array<i32: 28, 1>} : memref<56x32xf32, #tpu.memory_space<vmem>>, vector<2x32xf32>
    %c256 = arith.constant 256 : index
    %c0_69 = arith.constant 0 : index
    %71 = vector.load %arg13[%c256, %c0_69] : memref<896x128xf32, #tpu.memory_space<vmem>>, vector<32x128xf32>
    %cst_70 = arith.constant dense<0.000000e+00> : vector<2x128xf32>
    %72 = tpu.matmul %70, %71, %cst_70 {dimension_numbers = #tpu.dot_dimension_numbers<[1], [0], [0], [1], [0, 0, 1, 1], [], []>} : vector<2x32xf32>, vector<32x128xf32>, vector<2x128xf32> -> vector<2x128xf32>
    %73 = arith.addf %69, %72 : vector<2x128xf32>
    %c9 = arith.constant 9 : index
    %c0_71 = arith.constant 0 : index
    %74 = tpu.strided_load %arg12[%c9, %c0_71] {strides = array<i32: 28, 1>} : memref<56x32xf32, #tpu.memory_space<vmem>>, vector<2x32xf32>
    %c288 = arith.constant 288 : index
    %c0_72 = arith.constant 0 : index
    %75 = vector.load %arg13[%c288, %c0_72] : memref<896x128xf32, #tpu.memory_space<vmem>>, vector<32x128xf32>
    %cst_73 = arith.constant dense<0.000000e+00> : vector<2x128xf32>
    %76 = tpu.matmul %74, %75, %cst_73 {dimension_numbers = #tpu.dot_dimension_numbers<[1], [0], [0], [1], [0, 0, 1, 1], [], []>} : vector<2x32xf32>, vector<32x128xf32>, vector<2x128xf32> -> vector<2x128xf32>
    %77 = arith.addf %73, %76 : vector<2x128xf32>
    %c10 = arith.constant 10 : index
    %c0_74 = arith.constant 0 : index
    %78 = tpu.strided_load %arg12[%c10, %c0_74] {strides = array<i32: 28, 1>} : memref<56x32xf32, #tpu.memory_space<vmem>>, vector<2x32xf32>
    %c320 = arith.constant 320 : index
    %c0_75 = arith.constant 0 : index
    %79 = vector.load %arg13[%c320, %c0_75] : memref<896x128xf32, #tpu.memory_space<vmem>>, vector<32x128xf32>
    %cst_76 = arith.constant dense<0.000000e+00> : vector<2x128xf32>
    %80 = tpu.matmul %78, %79, %cst_76 {dimension_numbers = #tpu.dot_dimension_numbers<[1], [0], [0], [1], [0, 0, 1, 1], [], []>} : vector<2x32xf32>, vector<32x128xf32>, vector<2x128xf32> -> vector<2x128xf32>
    %81 = arith.addf %77, %80 : vector<2x128xf32>
    %c11 = arith.constant 11 : index
    %c0_77 = arith.constant 0 : index
    %82 = tpu.strided_load %arg12[%c11, %c0_77] {strides = array<i32: 28, 1>} : memref<56x32xf32, #tpu.memory_space<vmem>>, vector<2x32xf32>
    %c352 = arith.constant 352 : index
    %c0_78 = arith.constant 0 : index
    %83 = vector.load %arg13[%c352, %c0_78] : memref<896x128xf32, #tpu.memory_space<vmem>>, vector<32x128xf32>
    %cst_79 = arith.constant dense<0.000000e+00> : vector<2x128xf32>
    %84 = tpu.matmul %82, %83, %cst_79 {dimension_numbers = #tpu.dot_dimension_numbers<[1], [0], [0], [1], [0, 0, 1, 1], [], []>} : vector<2x32xf32>, vector<32x128xf32>, vector<2x128xf32> -> vector<2x128xf32>
    %85 = arith.addf %81, %84 : vector<2x128xf32>
    %c12 = arith.constant 12 : index
    %c0_80 = arith.constant 0 : index
    %86 = tpu.strided_load %arg12[%c12, %c0_80] {strides = array<i32: 28, 1>} : memref<56x32xf32, #tpu.memory_space<vmem>>, vector<2x32xf32>
    %c384 = arith.constant 384 : index
    %c0_81 = arith.constant 0 : index
    %87 = vector.load %arg13[%c384, %c0_81] : memref<896x128xf32, #tpu.memory_space<vmem>>, vector<32x128xf32>
    %cst_82 = arith.constant dense<0.000000e+00> : vector<2x128xf32>
    %88 = tpu.matmul %86, %87, %cst_82 {dimension_numbers = #tpu.dot_dimension_numbers<[1], [0], [0], [1], [0, 0, 1, 1], [], []>} : vector<2x32xf32>, vector<32x128xf32>, vector<2x128xf32> -> vector<2x128xf32>
    %89 = arith.addf %85, %88 : vector<2x128xf32>
    %c13 = arith.constant 13 : index
    %c0_83 = arith.constant 0 : index
    %90 = tpu.strided_load %arg12[%c13, %c0_83] {strides = array<i32: 28, 1>} : memref<56x32xf32, #tpu.memory_space<vmem>>, vector<2x32xf32>
    %c416 = arith.constant 416 : index
    %c0_84 = arith.constant 0 : index
    %91 = vector.load %arg13[%c416, %c0_84] : memref<896x128xf32, #tpu.memory_space<vmem>>, vector<32x128xf32>
    %cst_85 = arith.constant dense<0.000000e+00> : vector<2x128xf32>
    %92 = tpu.matmul %90, %91, %cst_85 {dimension_numbers = #tpu.dot_dimension_numbers<[1], [0], [0], [1], [0, 0, 1, 1], [], []>} : vector<2x32xf32>, vector<32x128xf32>, vector<2x128xf32> -> vector<2x128xf32>
    %93 = arith.addf %89, %92 : vector<2x128xf32>
    %c14_86 = arith.constant 14 : index
    %c0_87 = arith.constant 0 : index
    %94 = tpu.strided_load %arg12[%c14_86, %c0_87] {strides = array<i32: 28, 1>} : memref<56x32xf32, #tpu.memory_space<vmem>>, vector<2x32xf32>
    %c448 = arith.constant 448 : index
    %c0_88 = arith.constant 0 : index
    %95 = vector.load %arg13[%c448, %c0_88] : memref<896x128xf32, #tpu.memory_space<vmem>>, vector<32x128xf32>
    %cst_89 = arith.constant dense<0.000000e+00> : vector<2x128xf32>
    %96 = tpu.matmul %94, %95, %cst_89 {dimension_numbers = #tpu.dot_dimension_numbers<[1], [0], [0], [1], [0, 0, 1, 1], [], []>} : vector<2x32xf32>, vector<32x128xf32>, vector<2x128xf32> -> vector<2x128xf32>
    %97 = arith.addf %93, %96 : vector<2x128xf32>
    %c15_90 = arith.constant 15 : index
    %c0_91 = arith.constant 0 : index
    %98 = tpu.strided_load %arg12[%c15_90, %c0_91] {strides = array<i32: 28, 1>} : memref<56x32xf32, #tpu.memory_space<vmem>>, vector<2x32xf32>
    %c480 = arith.constant 480 : index
    %c0_92 = arith.constant 0 : index
    %99 = vector.load %arg13[%c480, %c0_92] : memref<896x128xf32, #tpu.memory_space<vmem>>, vector<32x128xf32>
    %cst_93 = arith.constant dense<0.000000e+00> : vector<2x128xf32>
    %100 = tpu.matmul %98, %99, %cst_93 {dimension_numbers = #tpu.dot_dimension_numbers<[1], [0], [0], [1], [0, 0, 1, 1], [], []>} : vector<2x32xf32>, vector<32x128xf32>, vector<2x128xf32> -> vector<2x128xf32>
    %101 = arith.addf %97, %100 : vector<2x128xf32>
    %c16_94 = arith.constant 16 : index
    %c0_95 = arith.constant 0 : index
    %102 = tpu.strided_load %arg12[%c16_94, %c0_95] {strides = array<i32: 28, 1>} : memref<56x32xf32, #tpu.memory_space<vmem>>, vector<2x32xf32>
    %c512 = arith.constant 512 : index
    %c0_96 = arith.constant 0 : index
    %103 = vector.load %arg13[%c512, %c0_96] : memref<896x128xf32, #tpu.memory_space<vmem>>, vector<32x128xf32>
    %cst_97 = arith.constant dense<0.000000e+00> : vector<2x128xf32>
    %104 = tpu.matmul %102, %103, %cst_97 {dimension_numbers = #tpu.dot_dimension_numbers<[1], [0], [0], [1], [0, 0, 1, 1], [], []>} : vector<2x32xf32>, vector<32x128xf32>, vector<2x128xf32> -> vector<2x128xf32>
    %105 = arith.addf %101, %104 : vector<2x128xf32>
    %c17 = arith.constant 17 : index
    %c0_98 = arith.constant 0 : index
    %106 = tpu.strided_load %arg12[%c17, %c0_98] {strides = array<i32: 28, 1>} : memref<56x32xf32, #tpu.memory_space<vmem>>, vector<2x32xf32>
    %c544 = arith.constant 544 : index
    %c0_99 = arith.constant 0 : index
    %107 = vector.load %arg13[%c544, %c0_99] : memref<896x128xf32, #tpu.memory_space<vmem>>, vector<32x128xf32>
    %cst_100 = arith.constant dense<0.000000e+00> : vector<2x128xf32>
    %108 = tpu.matmul %106, %107, %cst_100 {dimension_numbers = #tpu.dot_dimension_numbers<[1], [0], [0], [1], [0, 0, 1, 1], [], []>} : vector<2x32xf32>, vector<32x128xf32>, vector<2x128xf32> -> vector<2x128xf32>
    %109 = arith.addf %105, %108 : vector<2x128xf32>
    %c18 = arith.constant 18 : index
    %c0_101 = arith.constant 0 : index
    %110 = tpu.strided_load %arg12[%c18, %c0_101] {strides = array<i32: 28, 1>} : memref<56x32xf32, #tpu.memory_space<vmem>>, vector<2x32xf32>
    %c576 = arith.constant 576 : index
    %c0_102 = arith.constant 0 : index
    %111 = vector.load %arg13[%c576, %c0_102] : memref<896x128xf32, #tpu.memory_space<vmem>>, vector<32x128xf32>
    %cst_103 = arith.constant dense<0.000000e+00> : vector<2x128xf32>
    %112 = tpu.matmul %110, %111, %cst_103 {dimension_numbers = #tpu.dot_dimension_numbers<[1], [0], [0], [1], [0, 0, 1, 1], [], []>} : vector<2x32xf32>, vector<32x128xf32>, vector<2x128xf32> -> vector<2x128xf32>
    %113 = arith.addf %109, %112 : vector<2x128xf32>
    %c19 = arith.constant 19 : index
    %c0_104 = arith.constant 0 : index
    %114 = tpu.strided_load %arg12[%c19, %c0_104] {strides = array<i32: 28, 1>} : memref<56x32xf32, #tpu.memory_space<vmem>>, vector<2x32xf32>
    %c608 = arith.constant 608 : index
    %c0_105 = arith.constant 0 : index
    %115 = vector.load %arg13[%c608, %c0_105] : memref<896x128xf32, #tpu.memory_space<vmem>>, vector<32x128xf32>
    %cst_106 = arith.constant dense<0.000000e+00> : vector<2x128xf32>
    %116 = tpu.matmul %114, %115, %cst_106 {dimension_numbers = #tpu.dot_dimension_numbers<[1], [0], [0], [1], [0, 0, 1, 1], [], []>} : vector<2x32xf32>, vector<32x128xf32>, vector<2x128xf32> -> vector<2x128xf32>
    %117 = arith.addf %113, %116 : vector<2x128xf32>
    %c20 = arith.constant 20 : index
    %c0_107 = arith.constant 0 : index
    %118 = tpu.strided_load %arg12[%c20, %c0_107] {strides = array<i32: 28, 1>} : memref<56x32xf32, #tpu.memory_space<vmem>>, vector<2x32xf32>
    %c640 = arith.constant 640 : index
    %c0_108 = arith.constant 0 : index
    %119 = vector.load %arg13[%c640, %c0_108] : memref<896x128xf32, #tpu.memory_space<vmem>>, vector<32x128xf32>
    %cst_109 = arith.constant dense<0.000000e+00> : vector<2x128xf32>
    %120 = tpu.matmul %118, %119, %cst_109 {dimension_numbers = #tpu.dot_dimension_numbers<[1], [0], [0], [1], [0, 0, 1, 1], [], []>} : vector<2x32xf32>, vector<32x128xf32>, vector<2x128xf32> -> vector<2x128xf32>
    %121 = arith.addf %117, %120 : vector<2x128xf32>
    %c21_110 = arith.constant 21 : index
    %c0_111 = arith.constant 0 : index
    %122 = tpu.strided_load %arg12[%c21_110, %c0_111] {strides = array<i32: 28, 1>} : memref<56x32xf32, #tpu.memory_space<vmem>>, vector<2x32xf32>
    %c672 = arith.constant 672 : index
    %c0_112 = arith.constant 0 : index
    %123 = vector.load %arg13[%c672, %c0_112] : memref<896x128xf32, #tpu.memory_space<vmem>>, vector<32x128xf32>
    %cst_113 = arith.constant dense<0.000000e+00> : vector<2x128xf32>
    %124 = tpu.matmul %122, %123, %cst_113 {dimension_numbers = #tpu.dot_dimension_numbers<[1], [0], [0], [1], [0, 0, 1, 1], [], []>} : vector<2x32xf32>, vector<32x128xf32>, vector<2x128xf32> -> vector<2x128xf32>
    %125 = arith.addf %121, %124 : vector<2x128xf32>
    %c22 = arith.constant 22 : index
    %c0_114 = arith.constant 0 : index
    %126 = tpu.strided_load %arg12[%c22, %c0_114] {strides = array<i32: 28, 1>} : memref<56x32xf32, #tpu.memory_space<vmem>>, vector<2x32xf32>
    %c704 = arith.constant 704 : index
    %c0_115 = arith.constant 0 : index
    %127 = vector.load %arg13[%c704, %c0_115] : memref<896x128xf32, #tpu.memory_space<vmem>>, vector<32x128xf32>
    %cst_116 = arith.constant dense<0.000000e+00> : vector<2x128xf32>
    %128 = tpu.matmul %126, %127, %cst_116 {dimension_numbers = #tpu.dot_dimension_numbers<[1], [0], [0], [1], [0, 0, 1, 1], [], []>} : vector<2x32xf32>, vector<32x128xf32>, vector<2x128xf32> -> vector<2x128xf32>
    %129 = arith.addf %125, %128 : vector<2x128xf32>
    %c23 = arith.constant 23 : index
    %c0_117 = arith.constant 0 : index
    %130 = tpu.strided_load %arg12[%c23, %c0_117] {strides = array<i32: 28, 1>} : memref<56x32xf32, #tpu.memory_space<vmem>>, vector<2x32xf32>
    %c736 = arith.constant 736 : index
    %c0_118 = arith.constant 0 : index
    %131 = vector.load %arg13[%c736, %c0_118] : memref<896x128xf32, #tpu.memory_space<vmem>>, vector<32x128xf32>
    %cst_119 = arith.constant dense<0.000000e+00> : vector<2x128xf32>
    %132 = tpu.matmul %130, %131, %cst_119 {dimension_numbers = #tpu.dot_dimension_numbers<[1], [0], [0], [1], [0, 0, 1, 1], [], []>} : vector<2x32xf32>, vector<32x128xf32>, vector<2x128xf32> -> vector<2x128xf32>
    %133 = arith.addf %129, %132 : vector<2x128xf32>
    %c24 = arith.constant 24 : index
    %c0_120 = arith.constant 0 : index
    %134 = tpu.strided_load %arg12[%c24, %c0_120] {strides = array<i32: 28, 1>} : memref<56x32xf32, #tpu.memory_space<vmem>>, vector<2x32xf32>
    %c768 = arith.constant 768 : index
    %c0_121 = arith.constant 0 : index
    %135 = vector.load %arg13[%c768, %c0_121] : memref<896x128xf32, #tpu.memory_space<vmem>>, vector<32x128xf32>
    %cst_122 = arith.constant dense<0.000000e+00> : vector<2x128xf32>
    %136 = tpu.matmul %134, %135, %cst_122 {dimension_numbers = #tpu.dot_dimension_numbers<[1], [0], [0], [1], [0, 0, 1, 1], [], []>} : vector<2x32xf32>, vector<32x128xf32>, vector<2x128xf32> -> vector<2x128xf32>
    %137 = arith.addf %133, %136 : vector<2x128xf32>
    %c25 = arith.constant 25 : index
    %c0_123 = arith.constant 0 : index
    %138 = tpu.strided_load %arg12[%c25, %c0_123] {strides = array<i32: 28, 1>} : memref<56x32xf32, #tpu.memory_space<vmem>>, vector<2x32xf32>
    %c800 = arith.constant 800 : index
    %c0_124 = arith.constant 0 : index
    %139 = vector.load %arg13[%c800, %c0_124] : memref<896x128xf32, #tpu.memory_space<vmem>>, vector<32x128xf32>
    %cst_125 = arith.constant dense<0.000000e+00> : vector<2x128xf32>
    %140 = tpu.matmul %138, %139, %cst_125 {dimension_numbers = #tpu.dot_dimension_numbers<[1], [0], [0], [1], [0, 0, 1, 1], [], []>} : vector<2x32xf32>, vector<32x128xf32>, vector<2x128xf32> -> vector<2x128xf32>
    %141 = arith.addf %137, %140 : vector<2x128xf32>
    %c26 = arith.constant 26 : index
    %c0_126 = arith.constant 0 : index
    %142 = tpu.strided_load %arg12[%c26, %c0_126] {strides = array<i32: 28, 1>} : memref<56x32xf32, #tpu.memory_space<vmem>>, vector<2x32xf32>
    %c832 = arith.constant 832 : index
    %c0_127 = arith.constant 0 : index
    %143 = vector.load %arg13[%c832, %c0_127] : memref<896x128xf32, #tpu.memory_space<vmem>>, vector<32x128xf32>
    %cst_128 = arith.constant dense<0.000000e+00> : vector<2x128xf32>
    %144 = tpu.matmul %142, %143, %cst_128 {dimension_numbers = #tpu.dot_dimension_numbers<[1], [0], [0], [1], [0, 0, 1, 1], [], []>} : vector<2x32xf32>, vector<32x128xf32>, vector<2x128xf32> -> vector<2x128xf32>
    %145 = arith.addf %141, %144 : vector<2x128xf32>
    %c27 = arith.constant 27 : index
    %c0_129 = arith.constant 0 : index
    %146 = tpu.strided_load %arg12[%c27, %c0_129] {strides = array<i32: 28, 1>} : memref<56x32xf32, #tpu.memory_space<vmem>>, vector<2x32xf32>
    %c864 = arith.constant 864 : index
    %c0_130 = arith.constant 0 : index
    %147 = vector.load %arg13[%c864, %c0_130] : memref<896x128xf32, #tpu.memory_space<vmem>>, vector<32x128xf32>
    %cst_131 = arith.constant dense<0.000000e+00> : vector<2x128xf32>
    %148 = tpu.matmul %146, %147, %cst_131 {dimension_numbers = #tpu.dot_dimension_numbers<[1], [0], [0], [1], [0, 0, 1, 1], [], []>} : vector<2x32xf32>, vector<32x128xf32>, vector<2x128xf32> -> vector<2x128xf32>
    %149 = arith.addf %145, %148 : vector<2x128xf32>
    %c0_132 = arith.constant 0 : index
    %c0_133 = arith.constant 0 : index
    %150 = vector.load %arg4[%c0_132, %c0_133] : memref<1x128xf32, #tpu.memory_space<vmem>>, vector<1x128xf32>
    %151 = vector.broadcast %150 : vector<1x128xf32> to vector<2x128xf32>
    %152 = arith.addf %149, %151 : vector<2x128xf32>
    %cst_134 = arith.constant 0.000000e+00 : f32
    %153 = vector.broadcast %cst_134 : f32 to vector<2x128xf32>
    %154 = arith.maximumf %152, %153 : vector<2x128xf32>
    %c0_135 = arith.constant 0 : index
    %c0_136 = arith.constant 0 : index
    %155 = vector.load %arg5[%c0_135, %c0_136] : memref<128x24xf32, #tpu.memory_space<vmem>>, vector<128x24xf32>
    %cst_137 = arith.constant dense<0.000000e+00> : vector<2x24xf32>
    %156 = tpu.matmul %154, %155, %cst_137 {dimension_numbers = #tpu.dot_dimension_numbers<[1], [0], [0], [1], [0, 0, 1, 1], [], []>} : vector<2x128xf32>, vector<128x24xf32>, vector<2x24xf32> -> vector<2x24xf32>
    %c0_138 = arith.constant 0 : index
    %c0_139 = arith.constant 0 : index
    %157 = vector.load %arg6[%c0_138, %c0_139] : memref<1x24xf32, #tpu.memory_space<vmem>>, vector<1x24xf32>
    %158 = vector.broadcast %157 : vector<1x24xf32> to vector<2x24xf32>
    %159 = arith.addf %156, %158 : vector<2x24xf32>
    %cst_140 = arith.constant 0.000000e+00 : f32
    %160 = vector.broadcast %cst_140 : f32 to vector<2x24xf32>
    %161 = arith.maximumf %159, %160 : vector<2x24xf32>
    %c0_141 = arith.constant 0 : index
    %c0_142 = arith.constant 0 : index
    %162 = vector.load %arg7[%c0_141, %c0_142] : memref<1x24xf32, #tpu.memory_space<vmem>>, vector<1x24xf32>
    %163 = vector.broadcast %162 : vector<1x24xf32> to vector<2x24xf32>
    %164 = arith.mulf %161, %163 : vector<2x24xf32>
    %cst_143 = arith.constant dense<0.000000e+00> : vector<2xf32>
    %165 = vector.multi_reduction <add>, %164, %cst_143 [1] : vector<2x24xf32> to vector<2xf32>
    %166 = vector.shape_cast %165 : vector<2xf32> to vector<2x1xf32>
    %c0_144 = arith.constant 0 : index
    %c0_145 = arith.constant 0 : index
    %167 = vector.load %arg8[%c0_144, %c0_145] : memref<1x1xf32, #tpu.memory_space<vmem>>, vector<1x1xf32>
    %168 = vector.broadcast %167 : vector<1x1xf32> to vector<2x1xf32>
    %169 = arith.addf %166, %168 : vector<2x1xf32>
    %c0_146 = arith.constant 0 : index
    %c0_147 = arith.constant 0 : index
    %170 = vector.load %arg9[%c0_146, %c0_147] : memref<2x1xf32, #tpu.memory_space<vmem>>, vector<2x1xf32>
    tpu.vector_store %arg9[%c0_146, %c0_147], %169 {strides = array<i32>} : memref<2x1xf32, #tpu.memory_space<vmem>>, vector<2x1xf32>,
    return
  }
}

</mosaic_0001>

<bundles_post_ra>
// kernel: _forward_impl.1
= control target key start
LH: loop header
LB: loop body
LE: loop exit
PB: predicated region body
PF: predicated region fallthrough
CT: control target
= control target key end

     0   :  { %s4942_s29 = smov 32   ;;  %s4943_s30 = smov 96   ;;  %s6586_s0 = inlined_call_operand.vmem [shape: f32[272,32], index: 0, kind: input, shape index: {}]   ;;  %s6587_s1 = inlined_call_operand.vmem [shape: f32[128,32], index: 1, kind: input, shape index: {}]   ;;  %s6588_s2 = inlined_call_operand.vmem [shape: f32[1,32], index: 2, kind: input, shape index: {}]   ;;  %s6589_s3 = inlined_call_operand.vmem [shape: f32[896,128], index: 3, kind: input, shape index: {}]   ;;  %s6590_s4 = inlined_call_operand.vmem [shape: f32[1,128], index: 4, kind: input, shape index: {}]   ;;  %s6591_s5 = inlined_call_operand.vmem [shape: f32[128,24], index: 5, kind: input, shape index: {}]   ;;  %s6592_s6 = inlined_call_operand.vmem [shape: f32[1,24], index: 6, kind: input, shape index: {}]   ;;  %s6593_s7 = inlined_call_operand.vmem [shape: f32[1,24], index: 7, kind: input, shape index: {}]   ;;  %s6594_s8 = inlined_call_operand.<no memory space> [shape: f32[1,1], index: 8, kind: input, shape index: {}]   ;;  %s6595_s9 = inlined_call_operand.vmem [shape: f32[2,1], index: 9, kind: output, shape index: {}]  }
   0x1   :  { %v14_v0 = vstv %s6594_s8  ;;  %v5004_v1 = vld [vmem:[%s6589_s3] sm:$0xff]  ;;  %v5009_v2 = vld [vmem:[%s6589_s3 + $0x8] sm:$0xff]  ;;  %v5014_v3 = vld [vmem:[%s6589_s3 + $0x10] sm:$0xff]  ;;  %s4944_s18 = smov 64  }
   0x2   :  { %15 = vst [vmem:[#allocation7] sm:$0x1] %v14_v0  ;;  %v5019_v4 = vld [vmem:[%s6589_s3 + $0x18] sm:$0xff]  ;;  %v5024_v5 = vld [vmem:[%s6589_s3 + $0x20] sm:$0xff]  ;;  %v5029_v6 = vld [vmem:[%s6589_s3 + $0x28] sm:$0xff] }
   0x3   :  { %v5034_v7 = vld [vmem:[%s6589_s3 + $0x30] sm:$0xff]  ;;  %v5039_v8 = vld [vmem:[%s6589_s3 + $0x38] sm:$0xff]  ;;  %v5044_v9 = vld [vmem:[%s6589_s3 + $0x40] sm:$0xff] }
   0x4   :  { %v5049_v10 = vld [vmem:[%s6589_s3 + $0x48] sm:$0xff]  ;;  %v5054_v11 = vld [vmem:[%s6589_s3 + $0x50] sm:$0xff]  ;;  %v5059_v12 = vld [vmem:[%s6589_s3 + $0x58] sm:$0xff] }
   0x5   :  { %6596 = vst [vmem:[#allocation10_spill] sm:$0xff] %v5054_v11  ;;  %6597 = vst [vmem:[#allocation11_spill] sm:$0xff] %v5059_v12  ;;  %v5064_v13 = vld [vmem:[%s6589_s3 + $0x60] sm:$0xff]  ;;  %v5069_v14 = vld [vmem:[%s6589_s3 + $0x68] sm:$0xff] }
   0x6   :  { %6598 = vst [vmem:[#allocation12_spill] sm:$0xff] %v5064_v13  ;;  %6599 = vst [vmem:[#allocation13_spill] sm:$0xff] %v5069_v14  ;;  %v5074_v15 = vld [vmem:[%s6589_s3 + $0x70] sm:$0xff]  ;;  %v5079_v16 = vld [vmem:[%s6589_s3 + $0x78] sm:$0xff] }
   0x7   :  { %6600 = vst [vmem:[#allocation14_spill] sm:$0xff] %v5074_v15  ;;  %6601 = vst [vmem:[#allocation15_spill] sm:$0xff] %v5079_v16  ;;  %v5084_v17 = vld [vmem:[%s6589_s3 + $0x80] sm:$0xff]  ;;  %v5089_v18 = vld [vmem:[%s6589_s3 + $0x88] sm:$0xff] }
   0x8   :  { %6602 = vst [vmem:[#allocation16_spill] sm:$0xff] %v5084_v17  ;;  %6603 = vst [vmem:[#allocation17_spill] sm:$0xff] %v5089_v18  ;;  %v5094_v19 = vld [vmem:[%s6589_s3 + $0x90] sm:$0xff]  ;;  %v5099_v20 = vld [vmem:[%s6589_s3 + $0x98] sm:$0xff] }
   0x9   :  { %6604 = vst [vmem:[#allocation18_spill] sm:$0xff] %v5094_v19  ;;  %6605 = vst [vmem:[#allocation19_spill] sm:$0xff] %v5099_v20  ;;  %v5104_v21 = vld [vmem:[%s6589_s3 + $0xa0] sm:$0xff]  ;;  %v5109_v22 = vld [vmem:[%s6589_s3 + $0xa8] sm:$0xff] }
   0xa   :  { %6606 = vst [vmem:[#allocation20_spill] sm:$0xff] %v5104_v21  ;;  %6607 = vst [vmem:[#allocation21_spill] sm:$0xff] %v5109_v22  ;;  %v5114_v23 = vld [vmem:[%s6589_s3 + $0xb0] sm:$0xff]  ;;  %v5119_v24 = vld [vmem:[%s6589_s3 + $0xb8] sm:$0xff] }
   0xb   :  { %6608 = vst [vmem:[#allocation22_spill] sm:$0xff] %v5114_v23  ;;  %6609 = vst [vmem:[#allocation23_spill] sm:$0xff] %v5119_v24  ;;  %v5124_v25 = vld [vmem:[%s6589_s3 + $0xc0] sm:$0xff]  ;;  %v5129_v26 = vld [vmem:[%s6589_s3 + $0xc8] sm:$0xff] }
   0xc   :  { %6610 = vst [vmem:[#allocation24_spill] sm:$0xff] %v5124_v25  ;;  %6611 = vst [vmem:[#allocation25_spill] sm:$0xff] %v5129_v26  ;;  %v5134_v27 = vld [vmem:[%s6589_s3 + $0xd0] sm:$0xff]  ;;  %v5139_v28 = vld [vmem:[%s6589_s3 + $0xd8] sm:$0xff] }
   0xd   :  { %6612 = vst [vmem:[#allocation26_spill] sm:$0xff] %v5134_v27  ;;  %6613 = vst [vmem:[#allocation27_spill] sm:$0xff] %v5139_v28  ;;  %v5144_v29 = vld [vmem:[%s6589_s3 + $0xe0] sm:$0xff]  ;;  %v5149_v30 = vld [vmem:[%s6589_s3 + $0xe8] sm:$0xff] }
   0xe   :  { %6614 = vst [vmem:[#allocation28_spill] sm:$0xff] %v5144_v29  ;;  %6615 = vst [vmem:[#allocation29_spill] sm:$0xff] %v5149_v30  ;;  %v5154_v31 = vld [vmem:[%s6589_s3 + $0xf0] sm:$0xff]  ;;  %v5159_v32 = vld [vmem:[%s6589_s3 + $0xf8] sm:$0xff] }
   0xf   :  { %6616 = vst [vmem:[#allocation30_spill] sm:$0xff] %v5154_v31  ;;  %6617 = vst [vmem:[#allocation31_spill] sm:$0xff] %v5159_v32  ;;  %v5164_v33 = vld [vmem:[%s6589_s3 + $0x100] sm:$0xff]  ;;  %v5169_v34 = vld [vmem:[%s6589_s3 + $0x108] sm:$0xff] }
  0x10   :  { %6618 = vst [vmem:[#allocation32_spill] sm:$0xff] %v5164_v33  ;;  %6619 = vst [vmem:[#allocation33_spill] sm:$0xff] %v5169_v34  ;;  %v5174_v35 = vld [vmem:[%s6589_s3 + $0x110] sm:$0xff]  ;;  %v5179_v36 = vld [vmem:[%s6589_s3 + $0x118] sm:$0xff] }
  0x11   :  { %6620 = vst [vmem:[#allocation34_spill] sm:$0xff] %v5174_v35  ;;  %6621 = vst [vmem:[#allocation35_spill] sm:$0xff] %v5179_v36  ;;  %v5184_v37 = vld [vmem:[%s6589_s3 + $0x120] sm:$0xff]  ;;  %v5189_v38 = vld [vmem:[%s6589_s3 + $0x128] sm:$0xff] }
  0x12   :  { %6622 = vst [vmem:[#allocation36_spill] sm:$0xff] %v5184_v37  ;;  %6623 = vst [vmem:[#allocation37_spill] sm:$0xff] %v5189_v38  ;;  %v5194_v39 = vld [vmem:[%s6589_s3 + $0x130] sm:$0xff]  ;;  %v5199_v40 = vld [vmem:[%s6589_s3 + $0x138] sm:$0xff] }
  0x13   :  { %6624 = vst [vmem:[#allocation38_spill] sm:$0xff] %v5194_v39  ;;  %6625 = vst [vmem:[#allocation39_spill] sm:$0xff] %v5199_v40  ;;  %v5204_v41 = vld [vmem:[%s6589_s3 + $0x140] sm:$0xff]  ;;  %v5209_v42 = vld [vmem:[%s6589_s3 + $0x148] sm:$0xff] }
  0x14   :  { %6626 = vst [vmem:[#allocation40_spill] sm:$0xff] %v5204_v41  ;;  %6627 = vst [vmem:[#allocation41_spill] sm:$0xff] %v5209_v42  ;;  %v5214_v43 = vld [vmem:[%s6589_s3 + $0x150] sm:$0xff]  ;;  %v5219_v44 = vld [vmem:[%s6589_s3 + $0x158] sm:$0xff] }
  0x15   :  { %6628 = vst [vmem:[#allocation42_spill] sm:$0xff] %v5214_v43  ;;  %6629 = vst [vmem:[#allocation43_spill] sm:$0xff] %v5219_v44  ;;  %v5224_v45 = vld [vmem:[%s6589_s3 + $0x160] sm:$0xff]  ;;  %v5229_v46 = vld [vmem:[%s6589_s3 + $0x168] sm:$0xff] }
  0x16   :  { %6630 = vst [vmem:[#allocation44_spill] sm:$0xff] %v5229_v46  ;;  %v5234_v47 = vld [vmem:[%s6589_s3 + $0x170] sm:$0xff]  ;;  %v5239_v48 = vld [vmem:[%s6589_s3 + $0x178] sm:$0xff]  ;;  %v5244_v49 = vld [vmem:[%s6589_s3 + $0x180] sm:$0xff] }
  0x17   :  { %6631 = vst [vmem:[#allocation45_spill] sm:$0xff] %v5234_v47  ;;  %6632 = vst [vmem:[#allocation46_spill] sm:$0xff] %v5239_v48  ;;  %v5249_v50 = vld [vmem:[%s6589_s3 + $0x188] sm:$0xff]  ;;  %v5254_v51 = vld [vmem:[%s6589_s3 + $0x190] sm:$0xff] }
  0x18   :  { %6633 = vst [vmem:[#allocation47_spill] sm:$0xff] %v5244_v49  ;;  %6634 = vst [vmem:[#allocation48_spill] sm:$0xff] %v5249_v50  ;;  %v5259_v52 = vld [vmem:[%s6589_s3 + $0x198] sm:$0xff]  ;;  %v5264_v53 = vld [vmem:[%s6589_s3 + $0x1a0] sm:$0xff] }
  0x19   :  { %6635 = vst [vmem:[#allocation49_spill] sm:$0xff] %v5254_v51  ;;  %6636 = vst [vmem:[#allocation50_spill] sm:$0xff] %v5259_v52  ;;  %v5269_v54 = vld [vmem:[%s6589_s3 + $0x1a8] sm:$0xff]  ;;  %v5274_v55 = vld [vmem:[%s6589_s3 + $0x1b0] sm:$0xff] }
  0x1a   :  { %6637 = vst [vmem:[#allocation51_spill] sm:$0xff] %v5264_v53  ;;  %6638 = vst [vmem:[#allocation52_spill] sm:$0xff] %v5269_v54  ;;  %v5279_v56 = vld [vmem:[%s6589_s3 + $0x1b8] sm:$0xff]  ;;  %v5284_v57 = vld [vmem:[%s6589_s3 + $0x1c0] sm:$0xff] }
  0x1b   :  { %6639 = vst [vmem:[#allocation53_spill] sm:$0xff] %v5274_v55  ;;  %6640 = vst [vmem:[#allocation54_spill] sm:$0xff] %v5279_v56  ;;  %v5289_v58 = vld [vmem:[%s6589_s3 + $0x1c8] sm:$0xff]  ;;  %v5294_v59 = vld [vmem:[%s6589_s3 + $0x1d0] sm:$0xff] }
  0x1c   :  { %6641 = vst [vmem:[#allocation55_spill] sm:$0xff] %v5284_v57  ;;  %6642 = vst [vmem:[#allocation56_spill] sm:$0xff] %v5289_v58  ;;  %v5299_v60 = vld [vmem:[%s6589_s3 + $0x1d8] sm:$0xff]  ;;  %v5304_v61 = vld [vmem:[%s6589_s3 + $0x1e0] sm:$0xff] }
  0x1d   :  { %6643 = vst [vmem:[#allocation57_spill] sm:$0xff] %v5294_v59  ;;  %6644 = vst [vmem:[#allocation58_spill] sm:$0xff] %v5299_v60  ;;  %v5309_v62 = vld [vmem:[%s6589_s3 + $0x1e8] sm:$0xff]  ;;  %v5314_v63 = vld [vmem:[%s6589_s3 + $0x1f0] sm:$0xff] }
  0x1e   :  { %6645 = vst [vmem:[#allocation59_spill] sm:$0xff] %v5304_v61  ;;  %6646 = vst [vmem:[#allocation60_spill] sm:$0xff] %v5309_v62  ;;  %v5319_v0 = vld [vmem:[%s6589_s3 + $0x1f8] sm:$0xff]  ;;  %v5324_v60 = vld [vmem:[%s6589_s3 + $0x200] sm:$0xff] }
  0x1f   :  { %6647 = vst [vmem:[#allocation61_spill] sm:$0xff] %v5314_v63  ;;  %6648 = vst [vmem:[#allocation62_spill] sm:$0xff] %v5319_v0  ;;  %v5329_v59 = vld [vmem:[%s6589_s3 + $0x208] sm:$0xff]  ;;  %v5334_v58 = vld [vmem:[%s6589_s3 + $0x210] sm:$0xff] }
  0x20   :  { %6649 = vst [vmem:[#allocation63_spill] sm:$0xff] %v5324_v60  ;;  %6650 = vst [vmem:[#allocation64_spill] sm:$0xff] %v5329_v59  ;;  %v5339_v57 = vld [vmem:[%s6589_s3 + $0x218] sm:$0xff]  ;;  %v5344_v52 = vld [vmem:[%s6589_s3 + $0x220] sm:$0xff] }
  0x21   :  { %6651 = vst [vmem:[#allocation65_spill] sm:$0xff] %v5334_v58  ;;  %6652 = vst [vmem:[#allocation66_spill] sm:$0xff] %v5339_v57  ;;  %v5349_v60 = vld [vmem:[%s6589_s3 + $0x228] sm:$0xff]  ;;  %v5354_v59 = vld [vmem:[%s6589_s3 + $0x230] sm:$0xff] }
  0x22   :  { %6653 = vst [vmem:[#allocation67_spill] sm:$0xff] %v5344_v52  ;;  %6654 = vst [vmem:[#allocation68_spill] sm:$0xff] %v5349_v60  ;;  %v5359_v58 = vld [vmem:[%s6589_s3 + $0x238] sm:$0xff]  ;;  %v5364_v57 = vld [vmem:[%s6589_s3 + $0x240] sm:$0xff] }
  0x23   :  { %6655 = vst [vmem:[#allocation69_spill] sm:$0xff] %v5354_v59  ;;  %6656 = vst [vmem:[#allocation70_spill] sm:$0xff] %v5359_v58  ;;  %v5369_v51 = vld [vmem:[%s6589_s3 + $0x248] sm:$0xff]  ;;  %v5374_v50 = vld [vmem:[%s6589_s3 + $0x250] sm:$0xff] }
  0x24   :  { %6657 = vst [vmem:[#allocation71_spill] sm:$0xff] %v5364_v57  ;;  %6658 = vst [vmem:[#allocation72_spill] sm:$0xff] %v5369_v51  ;;  %v5379_v49 = vld [vmem:[%s6589_s3 + $0x258] sm:$0xff]  ;;  %v5384_v44 = vld [vmem:[%s6589_s3 + $0x260] sm:$0xff] }
  0x25   :  { %6659 = vst [vmem:[#allocation73_spill] sm:$0xff] %v5374_v50  ;;  %6660 = vst [vmem:[#allocation74_spill] sm:$0xff] %v5379_v49  ;;  %v5389_v57 = vld [vmem:[%s6589_s3 + $0x268] sm:$0xff]  ;;  %v5394_v51 = vld [vmem:[%s6589_s3 + $0x270] sm:$0xff] }
  0x26   :  { %6661 = vst [vmem:[#allocation75_spill] sm:$0xff] %v5384_v44  ;;  %6662 = vst [vmem:[#allocation76_spill] sm:$0xff] %v5389_v57  ;;  %v5399_v50 = vld [vmem:[%s6589_s3 + $0x278] sm:$0xff]  ;;  %v5404_v49 = vld [vmem:[%s6589_s3 + $0x280] sm:$0xff] }
  0x27   :  { %6663 = vst [vmem:[#allocation77_spill] sm:$0xff] %v5394_v51  ;;  %6664 = vst [vmem:[#allocation78_spill] sm:$0xff] %v5399_v50  ;;  %v5409_v43 = vld [vmem:[%s6589_s3 + $0x288] sm:$0xff]  ;;  %v5414_v42 = vld [vmem:[%s6589_s3 + $0x290] sm:$0xff] }
  0x28   :  { %6665 = vst [vmem:[#allocation79_spill] sm:$0xff] %v5404_v49  ;;  %6666 = vst [vmem:[#allocation80_spill] sm:$0xff] %v5409_v43  ;;  %v5419_v41 = vld [vmem:[%s6589_s3 + $0x298] sm:$0xff]  ;;  %v5424_v40 = vld [vmem:[%s6589_s3 + $0x2a0] sm:$0xff] }
  0x29   :  { %6667 = vst [vmem:[#allocation81_spill] sm:$0xff] %v5414_v42  ;;  %6668 = vst [vmem:[#allocation82_spill] sm:$0xff] %v5419_v41  ;;  %v5429_v49 = vld [vmem:[%s6589_s3 + $0x2a8] sm:$0xff]  ;;  %v5434_v43 = vld [vmem:[%s6589_s3 + $0x2b0] sm:$0xff] }
  0x2a   :  { %6669 = vst [vmem:[#allocation83_spill] sm:$0xff] %v5424_v40  ;;  %6670 = vst [vmem:[#allocation84_spill] sm:$0xff] %v5429_v49  ;;  %v5439_v42 = vld [vmem:[%s6589_s3 + $0x2b8] sm:$0xff]  ;;  %v5444_v41 = vld [vmem:[%s6589_s3 + $0x2c0] sm:$0xff] }
  0x2b   :  { %6671 = vst [vmem:[#allocation85_spill] sm:$0xff] %v5434_v43  ;;  %6672 = vst [vmem:[#allocation86_spill] sm:$0xff] %v5439_v42  ;;  %v5449_v39 = vld [vmem:[%s6589_s3 + $0x2c8] sm:$0xff]  ;;  %v5454_v38 = vld [vmem:[%s6589_s3 + $0x2d0] sm:$0xff] }
  0x2c   :  { %6673 = vst [vmem:[#allocation87_spill] sm:$0xff] %v5444_v41  ;;  %6674 = vst [vmem:[#allocation88_spill] sm:$0xff] %v5449_v39  ;;  %v5459_v37 = vld [vmem:[%s6589_s3 + $0x2d8] sm:$0xff]  ;;  %v5464_v36 = vld [vmem:[%s6589_s3 + $0x2e0] sm:$0xff] }
  0x2d   :  { %6675 = vst [vmem:[#allocation89_spill] sm:$0xff] %v5454_v38  ;;  %6676 = vst [vmem:[#allocation90_spill] sm:$0xff] %v5459_v37  ;;  %v5469_v41 = vld [vmem:[%s6589_s3 + $0x2e8] sm:$0xff]  ;;  %v5474_v39 = vld [vmem:[%s6589_s3 + $0x2f0] sm:$0xff] }
  0x2e   :  { %6677 = vst [vmem:[#allocation91_spill] sm:$0xff] %v5464_v36  ;;  %6678 = vst [vmem:[#allocation92_spill] sm:$0xff] %v5469_v41  ;;  %v5479_v38 = vld [vmem:[%s6589_s3 + $0x2f8] sm:$0xff]  ;;  %v5484_v37 = vld [vmem:[%s6589_s3 + $0x300] sm:$0xff] }
  0x2f   :  { %6679 = vst [vmem:[#allocation93_spill] sm:$0xff] %v5474_v39  ;;  %6680 = vst [vmem:[#allocation94_spill] sm:$0xff] %v5479_v38  ;;  %v5489_v35 = vld [vmem:[%s6589_s3 + $0x308] sm:$0xff]  ;;  %v5494_v41 = vld [vmem:[%s6589_s3 + $0x310] sm:$0xff] }
  0x30   :  { %6681 = vst [vmem:[#allocation95_spill] sm:$0xff] %v5484_v37  ;;  %6682 = vst [vmem:[#allocation96_spill] sm:$0xff] %v5489_v35  ;;  %v5499_v39 = vld [vmem:[%s6589_s3 + $0x318] sm:$0xff]  ;;  %v5504_v38 = vld [vmem:[%s6589_s3 + $0x320] sm:$0xff] }
  0x31   :  { %6683 = vst [vmem:[#allocation97_spill] sm:$0xff] %v5494_v41  ;;  %6684 = vst [vmem:[#allocation98_spill] sm:$0xff] %v5499_v39  ;;  %v5509_v37 = vld [vmem:[%s6589_s3 + $0x328] sm:$0xff]  ;;  %v5514_v35 = vld [vmem:[%s6589_s3 + $0x330] sm:$0xff] }
  0x32   :  { %6685 = vst [vmem:[#allocation99_spill] sm:$0xff] %v5504_v38  ;;  %6686 = vst [vmem:[#allocation100_spill] sm:$0xff] %v5509_v37  ;;  %v5519_v41 = vld [vmem:[%s6589_s3 + $0x338] sm:$0xff]  ;;  %v5524_v39 = vld [vmem:[%s6589_s3 + $0x340] sm:$0xff] }
  0x33   :  { %6687 = vst [vmem:[#allocation101_spill] sm:$0xff] %v5514_v35  ;;  %6688 = vst [vmem:[#allocation102_spill] sm:$0xff] %v5519_v41  ;;  %v5529_v38 = vld [vmem:[%s6589_s3 + $0x348] sm:$0xff]  ;;  %v5534_v37 = vld [vmem:[%s6589_s3 + $0x350] sm:$0xff] }
  0x34   :  { %6689 = vst [vmem:[#allocation103_spill] sm:$0xff] %v5524_v39  ;;  %6690 = vst [vmem:[#allocation104_spill] sm:$0xff] %v5529_v38  ;;  %v5539_v35 = vld [vmem:[%s6589_s3 + $0x358] sm:$0xff]  ;;  %v5544_v41 = vld [vmem:[%s6589_s3 + $0x360] sm:$0xff] }
  0x35   :  { %6691 = vst [vmem:[#allocation105_spill] sm:$0xff] %v5534_v37  ;;  %6692 = vst [vmem:[#allocation106_spill] sm:$0xff] %v5539_v35  ;;  %v5549_v39 = vld [vmem:[%s6589_s3 + $0x368] sm:$0xff]  ;;  %v5554_v38 = vld [vmem:[%s6589_s3 + $0x370] sm:$0xff] }
  0x36   :  { %6693 = vst [vmem:[#allocation107_spill] sm:$0xff] %v5544_v41  ;;  %6694 = vst [vmem:[#allocation108_spill] sm:$0xff] %v5549_v39  ;;  %v5559_v37 = vld [vmem:[%s6589_s3 + $0x378] sm:$0xff]  ;;  %v328_v35 = vld [vmem:[%s6586_s0 + $0x1] sm:$0xff] }
  0x37   :  { %6695 = vst [vmem:[#allocation109_spill] sm:$0xff] %v5554_v38  ;;  %6696 = vst [vmem:[#allocation110_spill] sm:$0xff] %v5559_v37  ;;  %v329_v41 = vld [vmem:[%s6586_s0 + $0x9] sm:$0xff]  ;;  %v5575_v38 = vld [vmem:[%s6586_s0 + $0x18] sm:$0xff] }
  0x38   :  { %v5570_v39 = vld [vmem:[%s6586_s0 + $0x10] sm:$0xff]  ;;  %v4700_v36 = vpack.i.bf16 %v329_v41, %v328_v35  ;;  %v331_v41 = vld [vmem:[%s6586_s0 + $0x19] sm:$0xff]  ;;  %v363_v31 = vld [vmem:[%s6586_s0 + $0x27] sm:$0xff] }
  0x39   :  { %v360_v37 = vld [vmem:[%s6586_s0 + $0xf] sm:$0xff]  ;;  %v361_v34 = vld [vmem:[%s6586_s0 + $0x17] sm:$0xff]  ;;  %v4710_v33 = vpack.i.bf16 %v5575_v38, %v5570_v39  ;;  %v362_v32 = vld [vmem:[%s6586_s0 + $0x1f] sm:$0xff] }
  0x3a   :  { %v330_v35 = vld [vmem:[%s6586_s0 + $0x11] sm:$0xff]  ;;  %4701 = vrot.lane.b32.xlu0 %v4700_v36, %s4942_s29  ;;  %v4705_v42 = vpack.i.bf16 %v361_v34, %v360_v37  ;;  %v5602_v49 = vld [vmem:[%s6586_s0 + $0x20] sm:$0xff]  ;;  %v5607_v34 = vld [vmem:[%s6586_s0 + $0x28] sm:$0xff] }
  0x3b   :  { %4711 = vrot.lane.b32.xlu1 %v4710_v33, %s4943_s30  ;;  %v4715_v43 = vpack.i.bf16 %v331_v41, %v330_v35  ;;  %v4720_v33 = vpack.i.bf16 %v363_v31, %v362_v32  ;;  %v4725_v36 = vpack.i.bf16 %v5607_v34, %v5602_v49  ;;  %v332_v37 = vld [vmem:[%s6586_s0 + $0x21] sm:$0xff]  ;;  %v333_v35 = vld [vmem:[%s6586_s0 + $0x29] sm:$0xff]  ;;  %v365_v31 = vld [vmem:[%s6586_s0 + $0x37] sm:$0xff] }
  0x3c   :  { %v364_v41 = vld [vmem:[%s6586_s0 + $0x2f] sm:$0xff]  ;;  %v4730_v32 = vpack.i.bf16 %v333_v35, %v332_v37  ;;  %v5635_v40 = vld [vmem:[%s6586_s0 + $0x38] sm:$0xff] }
  0x3d   :  { %v334_v30 = vld [vmem:[%s6586_s0 + $0x31] sm:$0xff]  ;;  %v366_v35 = vld [vmem:[%s6586_s0 + $0x3f] sm:$0xff]  ;;  %v337_v29 = vld [vmem:[%s6586_s0 + $0x49] sm:$0xff] }
  0x3e   :  { %4706 = vrot.lane.b32.xlu0 %v4705_v42, %s4944_s18  ;;  %v4735_v42 = vpack.i.bf16 %v365_v31, %v364_v41  ;;  %v367_v41 = vld [vmem:[%s6586_s0 + $0x47] sm:$0xff]  ;;  %v368_v50 = vld [vmem:[%s6586_s0 + $0x4f] sm:$0xff]  ;;  %v5689_v51 = vld [vmem:[%s6586_s0 + $0x58] sm:$0xff] }
  0x3f   :  { %4716 = vrot.lane.b32.xlu1 %v4715_v43, %s4942_s29  ;;  %v5630_v43 = vld [vmem:[%s6586_s0 + $0x30] sm:$0xff]  ;;  %v5656_v31 = vld [vmem:[%s6586_s0 + $0x40] sm:$0xff] }
  0x40   :  { %v338_v28 = vld [vmem:[%s6586_s0 + $0x51] sm:$0xff] }
  0x42   :  { %4721 = vrot.lane.b32.xlu0 %v4720_v33, %s4944_s18  ;;  %v335_v33 = vld [vmem:[%s6586_s0 + $0x39] sm:$0xff] }
  0x43   :  { %4726 = vrot.lane.b32.xlu1 %v4725_v36, %s4943_s30  ;;  %v4740_v36 = vpack.i.bf16 %v5635_v40, %v5630_v43  ;;  %v4745_v37 = vpack.i.bf16 %v335_v33, %v334_v30  ;;  %v4750_v30 = vpack.i.bf16 %v367_v41, %v366_v35  ;;  %v336_v33 = vld [vmem:[%s6586_s0 + $0x41] sm:$0xff]  ;;  %v5684_v41 = vld [vmem:[%s6586_s0 + $0x50] sm:$0xff] }
  0x46   :  { %4731 = vrot.lane.b32.xlu0 %v4730_v32, %s4942_s29  ;;  %v5661_v32 = vld [vmem:[%s6586_s0 + $0x48] sm:$0xff] }
  0x47   :  { %4736 = vrot.lane.b32.xlu1 %v4735_v42, %s4944_s18  ;;  %v4755_v42 = vpack.i.bf16 %v5661_v32, %v5656_v31 }
  0x4a   :  { %4741 = vrot.lane.b32.xlu0 %v4740_v36, %s4943_s30  ;;  %v369_v36 = vld [vmem:[%s6586_s0 + $0x57] sm:$0xff] }
  0x4b   :  { %4746 = vrot.lane.b32.xlu1 %v4745_v37, %s4942_s29  ;;  %v4760_v37 = vpack.i.bf16 %v337_v29, %v336_v33  ;;  %v4765_v35 = vpack.i.bf16 %v369_v36, %v368_v50  ;;  %v339_v29 = vld [vmem:[%s6586_s0 + $0x59] sm:$0xff]  ;;  %v4770_v50 = vpack.i.bf16 %v5689_v51, %v5684_v41  ;;  %v371_v33 = vld [vmem:[%s6586_s0 + $0x67] sm:$0xff] }
  0x4c   :  { %v5710_v36 = vld [vmem:[%s6586_s0 + $0x60] sm:$0xff] }
  0x4e   :  { %4751 = vrot.lane.b32.xlu0 %v4750_v30, %s4944_s18  ;;  %v4775_v30 = vpack.i.bf16 %v339_v29, %v338_v28 }
  0x4f   :  { %4756 = vrot.lane.b32.xlu1 %v4755_v42, %s4943_s30  ;;  %v370_v42 = vld [vmem:[%s6586_s0 + $0x5f] sm:$0xff] }
  0x52   :  { %4761 = vrot.lane.b32.xlu0 %v4760_v37, %s4942_s29  ;;  %v5715_v37 = vld [vmem:[%s6586_s0 + $0x68] sm:$0xff] }
  0x53   :  { %4766 = vrot.lane.b32.xlu1 %v4765_v35, %s4944_s18 }
  0x54   :  { %295 = vsyncadd [#allocation6], 14336  ;;  %v4780_v28 = vpack.i.bf16 %v371_v33, %v370_v42  ;;  %v340_v35 = vld [vmem:[%s6586_s0 + $0x61] sm:$0xff]  ;;  %v4785_v57 = vpack.i.bf16 %v5715_v37, %v5710_v36  ;;  %v372_v42 = vld [vmem:[%s6586_s0 + $0x6f] sm:$0xff]  ;;  %vm778_vm0 = vcmask 261120   ;;  %vm811_vm1 = vcmask 523264  }
  0x55   :  { %v877_v29 = vld [vmem:[%s6587_s1] sm:$0xff]  ;;  %v878_v27 = vld [vmem:[%s6587_s1 + $0x8] sm:$0xff]  ;;  %v373_v33 = vld [vmem:[%s6586_s0 + $0x77] sm:$0xff]  ;;  %vm844_vm2 = vcmask 785408   ;;  %vm1402_vm3 = vcmask 260096  }
  0x56   :  { %4771 = vrot.lane.b32.xlu0 %v4770_v50, %s4943_s30  ;;  %v341_v50 = vld [vmem:[%s6586_s0 + $0x69] sm:$0xff]  ;;  %v4470_v44 = vpack.c.bf16 %v878_v27, %v877_v29  ;;  %v880_v26 = vld [vmem:[%s6587_s1 + $0x18] sm:$0xff]  ;;  %v881_v25 = vld [vmem:[%s6587_s1 + $0x20] sm:$0xff]  ;;  %v4795_v29 = vpack.i.bf16 %v373_v33, %v372_v42 }
  0x57   :  { %4776 = vrot.lane.b32.xlu1 %v4775_v30, %s4942_s29  ;;  %v879_v30 = vld [vmem:[%s6587_s1 + $0x10] sm:$0xff]  ;;  %v882_v59 = vld [vmem:[%s6587_s1 + $0x28] sm:$0xff]  ;;  %v4790_v27 = vpack.i.bf16 %v341_v50, %v340_v35  ;;  %v884_v35 = vld [vmem:[%s6587_s1 + $0x38] sm:$0xff] }
  0x58   :  { %4471 = vmatprep.subr.bf16.mxu0 %v4470_v44  ;;  %v4474_v58 = vpack.c.bf16 %v880_v26, %v879_v30  ;;  %v5756_v24 = vld [vmem:[%s6586_s0 + $0x70] sm:$0xff]  ;;  %v5761_v26 = vld [vmem:[%s6586_s0 + $0x78] sm:$0xff]  ;;  %v375_v42 = vld [vmem:[%s6586_s0 + $0x87] sm:$0xff] }
  0x59   :  { %4473 = vmatpush3.bf16.msra.mxu0 %v4470_v44  ;;  %v342_v30 = vld [vmem:[%s6586_s0 + $0x71] sm:$0xff]  ;;  %v343_v44 = vld [vmem:[%s6586_s0 + $0x79] sm:$0xff]  ;;  %v4800_v50 = vpack.i.bf16 %v5761_v26, %v5756_v24  ;;  %v345_v23 = vld [vmem:[%s6586_s0 + $0x89] sm:$0xff] }
  0x5a   :  { %4781 = vrot.lane.b32.xlu0 %v4780_v28, %s4944_s18  ;;  %4475 = vmatprep.subr.bf16.mxu0 %v4474_v58  ;;  %v4478_v28 = vpack.c.bf16 %v882_v59, %v881_v25  ;;  %v4805_v25 = vpack.i.bf16 %v343_v44, %v342_v30  ;;  %v374_v59 = vld [vmem:[%s6586_s0 + $0x7f] sm:$0xff]  ;;  %v886_v30 = vld [vmem:[%s6587_s1 + $0x48] sm:$0xff]  ;;  %v346_v22 = vld [vmem:[%s6586_s0 + $0x91] sm:$0xff] }
  0x5b   :  { %4786 = vrot.lane.b32.xlu1 %v4785_v57, %s4943_s30  ;;  %v883_v57 = vld [vmem:[%s6587_s1 + $0x30] sm:$0xff]  ;;  %v5788_v33 = vld [vmem:[%s6586_s0 + $0x80] sm:$0xff]  ;;  %v4810_v44 = vpack.i.bf16 %v375_v42, %v374_v59  ;;  %v888_v59 = vld [vmem:[%s6587_s1 + $0x58] sm:$0xff] }
  0x5c   :  { %v376_v60 = vld [vmem:[%s6586_s0 + $0x8f] sm:$0xff]  ;;  %v5953_v63 = vld [vmem:[%s6586_s0 + $0xd8] sm:$0xff]  ;;  %v296_v16 = vld [vmem:[%s6586_s0] sm:$0xff] }
  0x5d   :  { %4477 = vmatpush3.bf16.msra.mxu0 %v4474_v58  ;;  %v5793_v58 = vld [vmem:[%s6586_s0 + $0x88] sm:$0xff]  ;;  %v354_v20 = vld [vmem:[%s6586_s0 + $0xd1] sm:$0xff] }
  0x5e   :  { %4791 = vrot.lane.b32.xlu0 %v4790_v27, %s4942_s29  ;;  %4479 = vmatprep.subr.bf16.mxu0 %v4478_v28  ;;  %v4482_v27 = vpack.c.bf16 %v884_v35, %v883_v57  ;;  %v4815_v57 = vpack.i.bf16 %v5793_v58, %v5788_v33  ;;  %v344_v35 = vld [vmem:[%s6586_s0 + $0x81] sm:$0xff]  ;;  %v349_v21 = vld [vmem:[%s6586_s0 + $0xa9] sm:$0xff]  ;;  %v6007_v61 = vld [vmem:[%s6586_s0 + $0xf8] sm:$0xff] }
  0x5f   :  { %4796 = vrot.lane.b32.xlu1 %v4795_v29, %s4944_s18  ;;  %v885_v29 = vld [vmem:[%s6587_s1 + $0x40] sm:$0xff]  ;;  %v4820_v42 = vpack.i.bf16 %v345_v23, %v344_v35  ;;  %v357_v19 = vld [vmem:[%s6586_s0 + $0xe9] sm:$0xff]  ;;  %v358_v18 = vld [vmem:[%s6586_s0 + $0xf1] sm:$0xff] }
  0x60   :  { %v388_v62 = vld [vmem:[%s6586_s0 + $0xef] sm:$0xff] }
  0x61   :  { %4481 = vmatpush3.bf16.msra.mxu0 %v4478_v28  ;;  %v377_v28 = vld [vmem:[%s6586_s0 + $0x97] sm:$0xff] }
  0x62   :  { %4801 = vrot.lane.b32.xlu0 %v4800_v50, %s4943_s30  ;;  %4483 = vmatprep.subr.bf16.mxu0 %v4482_v27  ;;  %v4486_v50 = vpack.c.bf16 %v886_v30, %v885_v29  ;;  %v4825_v52 = vpack.i.bf16 %v377_v28, %v376_v60  ;;  %v5828_v29 = vld [vmem:[%s6586_s0 + $0x90] sm:$0xff]  ;;  %v5833_v30 = vld [vmem:[%s6586_s0 + $0x98] sm:$0xff] }
  0x63   :  { %4806 = vrot.lane.b32.xlu1 %v4805_v25, %s4942_s29  ;;  %v887_v25 = vld [vmem:[%s6587_s1 + $0x50] sm:$0xff]  ;;  %v347_v60 = vld [vmem:[%s6586_s0 + $0x99] sm:$0xff] }
  0x64   :  { %v4490_v23 = vpack.c.bf16 %v888_v59, %v887_v25  ;;  %v4835_v35 = vpack.i.bf16 %v347_v60, %v346_v22  ;;  %v378_v28 = vld [vmem:[%s6586_s0 + $0x9f] sm:$0xff]  ;;  %v379_v25 = vld [vmem:[%s6586_s0 + $0xa7] sm:$0xff]  ;;  %v891_v22 = vld [vmem:[%s6587_s1 + $0x70] sm:$0xff] }
  0x65   :  { %4485 = vmatpush3.bf16.msra.mxu0 %v4482_v27  ;;  %v889_v27 = vld [vmem:[%s6587_s1 + $0x60] sm:$0xff]  ;;  %v4840_v60 = vpack.i.bf16 %v379_v25, %v378_v28  ;;  %v5894_v25 = vld [vmem:[%s6586_s0 + $0xb0] sm:$0xff] }
  0x66   :  { %4811 = vrot.lane.b32.xlu0 %v4810_v44, %s4944_s18  ;;  %4487 = vmatprep.subr.bf16.mxu0 %v4486_v50  ;;  %v890_v44 = vld [vmem:[%s6587_s1 + $0x68] sm:$0xff]  ;;  %v5860_v59 = vld [vmem:[%s6586_s0 + $0xa0] sm:$0xff] }
  0x67   :  { %4816 = vrot.lane.b32.xlu1 %v4815_v57, %s4943_s30  ;;  %v4830_v57 = vpack.i.bf16 %v5833_v30, %v5828_v29 }
  0x69   :  { %4489 = vmatpush3.bf16.msra.mxu0 %v4486_v50  ;;  %v892_v50 = vld [vmem:[%s6587_s1 + $0x78] sm:$0xff] }
  0x6a   :  { %4821 = vrot.lane.b32.xlu0 %v4820_v42, %s4942_s29  ;;  %4491 = vmatprep.subr.bf16.mxu0 %v4490_v23  ;;  %v4494_v42 = vpack.c.bf16 %v890_v44, %v889_v27  ;;  %v348_v44 = vld [vmem:[%s6586_s0 + $0xa1] sm:$0xff]  ;;  %v4498_v0 = vpack.c.bf16 %v892_v50, %v891_v22  ;;  %v5899_v22 = vld [vmem:[%s6586_s0 + $0xb8] sm:$0xff] }
  0x6b   :  { %4826 = vrot.lane.b32.xlu1 %v4825_v52, %s4944_s18  ;;  %v5865_v52 = vld [vmem:[%s6586_s0 + $0xa8] sm:$0xff]  ;;  %v350_v50 = vld [vmem:[%s6586_s0 + $0xb1] sm:$0xff] }
  0x6c   :  { %v4845_v27 = vpack.i.bf16 %v5865_v52, %v5860_v59 }
  0x6d   :  { %4493 = vmatpush3.bf16.msra.mxu0 %v4490_v23  ;;  %v381_v23 = vld [vmem:[%s6586_s0 + $0xb7] sm:$0xff] }
  0x6e   :  { %4831 = vrot.lane.b32.xlu0 %v4830_v57, %s4943_s30  ;;  %4495 = vmatprep.subr.bf16.mxu0 %v4494_v42  ;;  %v380_v57 = vld [vmem:[%s6586_s0 + $0xaf] sm:$0xff] }
  0x6f   :  { %4836 = vrot.lane.b32.xlu1 %v4835_v35, %s4942_s29  ;;  %v4850_v35 = vpack.i.bf16 %v349_v21, %v348_v44  ;;  %v4855_v28 = vpack.i.bf16 %v381_v23, %v380_v57  ;;  %v351_v21 = vld [vmem:[%s6586_s0 + $0xb9] sm:$0xff]  ;;  %v383_v44 = vld [vmem:[%s6586_s0 + $0xc7] sm:$0xff] }
  0x70   :  { %v5920_v57 = vld [vmem:[%s6586_s0 + $0xc0] sm:$0xff] }
  0x71   :  { %4497 = vmatpush3.bf16.msra.mxu0 %v4494_v42  ;;  %v4860_v42 = vpack.i.bf16 %v5899_v22, %v5894_v25 }
  0x72   :  { %4841 = vrot.lane.b32.xlu0 %v4840_v60, %s4944_s18  ;;  %4499 = vmatprep.subr.bf16.mxu0 %v4498_v0  ;;  %v4865_v60 = vpack.i.bf16 %v351_v21, %v350_v50  ;;  %v353_v50 = vld [vmem:[%s6586_s0 + $0xc9] sm:$0xff] }
  0x73   :  { %4846 = vrot.lane.b32.xlu1 %v4845_v27, %s4943_s30  ;;  %v382_v27 = vld [vmem:[%s6586_s0 + $0xbf] sm:$0xff]  ;;  %v384_v21 = vld [vmem:[%s6586_s0 + $0xcf] sm:$0xff] }
  0x74   :  { %v4870_v23 = vpack.i.bf16 %v383_v44, %v382_v27  ;;  %v5948_v44 = vld [vmem:[%s6586_s0 + $0xd0] sm:$0xff] }
  0x75   :  { %4501 = vmatpush3.bf16.msra.mxu0 %v4498_v0  ;;  %v5925_v0 = vld [vmem:[%s6586_s0 + $0xc8] sm:$0xff] }
  0x76   :  { %4851 = vrot.lane.b32.xlu0 %v4850_v35, %s4942_s29  ;;  %v4875_v35 = vpack.i.bf16 %v5925_v0, %v5920_v57 }
  0x77   :  { %4856 = vrot.lane.b32.xlu1 %v4855_v28, %s4944_s18  ;;  %v352_v28 = vld [vmem:[%s6586_s0 + $0xc1] sm:$0xff] }
  0x7a   :  { %4861 = vrot.lane.b32.xlu0 %v4860_v42, %s4943_s30  ;;  %v385_v42 = vld [vmem:[%s6586_s0 + $0xd7] sm:$0xff] }
  0x7b   :  { %4866 = vrot.lane.b32.xlu1 %v4865_v60, %s4942_s29  ;;  %v4880_v60 = vpack.i.bf16 %v353_v50, %v352_v28  ;;  %v4885_v27 = vpack.i.bf16 %v385_v42, %v384_v21  ;;  %v386_v50 = vld [vmem:[%s6586_s0 + $0xdf] sm:$0xff]  ;;  %v387_v21 = vld [vmem:[%s6586_s0 + $0xe7] sm:$0xff] }
  0x7c   :  { %v5974_v42 = vld [vmem:[%s6586_s0 + $0xe0] sm:$0xff] }
  0x7e   :  { %4871 = vrot.lane.b32.xlu0 %v4870_v23, %s4944_s18  ;;  %v355_v23 = vld [vmem:[%s6586_s0 + $0xd9] sm:$0xff] }
  0x7f   :  { %4876 = vrot.lane.b32.xlu1 %v4875_v35, %s4943_s30  ;;  %v4890_v35 = vpack.i.bf16 %v5953_v63, %v5948_v44  ;;  %v4895_v28 = vpack.i.bf16 %v355_v23, %v354_v20  ;;  %v4900_v20 = vpack.i.bf16 %v387_v21, %v386_v50  ;;  %v356_v23 = vld [vmem:[%s6586_s0 + $0xe1] sm:$0xff]  ;;  %v6002_v21 = vld [vmem:[%s6586_s0 + $0xf0] sm:$0xff] }
  0x82   :  { %4881 = vrot.lane.b32.xlu0 %v4880_v60, %s4942_s29  ;;  %v5979_v60 = vld [vmem:[%s6586_s0 + $0xe8] sm:$0xff] }
  0x83   :  { %4886 = vrot.lane.b32.xlu1 %v4885_v27, %s4944_s18  ;;  %v4905_v27 = vpack.i.bf16 %v5979_v60, %v5974_v42 }
  0x86   :  { %4891 = vrot.lane.b32.xlu0 %v4890_v35, %s4943_s30  ;;  %v389_v35 = vld [vmem:[%s6586_s0 + $0xf7] sm:$0xff] }
  0x87   :  { %4896 = vrot.lane.b32.xlu1 %v4895_v28, %s4942_s29  ;;  %v4910_v28 = vpack.i.bf16 %v357_v19, %v356_v23  ;;  %v4915_v50 = vpack.i.bf16 %v389_v35, %v388_v62  ;;  %v359_v19 = vld [vmem:[%s6586_s0 + $0xf9] sm:$0xff]  ;;  %v4920_v62 = vpack.i.bf16 %v6007_v61, %v6002_v21  ;;  %v391_v23 = vld [vmem:[%s6586_s0 + $0x107] sm:$0xff] }
  0x88   :  { %v392_v35 = vld [vmem:[%s6586_s0 + $0x100] sm:$0xff] }
  0x8a   :  { %4901 = vrot.lane.b32.xlu0 %v4900_v20, %s4944_s18  ;;  %v4925_v20 = vpack.i.bf16 %v359_v19, %v358_v18 }
  0x8b   :  { %4906 = vrot.lane.b32.xlu1 %v4905_v27, %s4943_s30  ;;  %v390_v27 = vld [vmem:[%s6586_s0 + $0xff] sm:$0xff] }
  0x8e   :  { %4911 = vrot.lane.b32.xlu0 %v4910_v28, %s4942_s29  ;;  %v393_v28 = vld [vmem:[%s6586_s0 + $0x108] sm:$0xff] }
  0x8f   :  { %4916 = vrot.lane.b32.xlu1 %v4915_v50, %s4944_s18  ;;  %v4930_v50 = vpack.i.bf16 %v391_v23, %v390_v27  ;;  %v4935_v18 = vpack.i.bf16 %v393_v28, %v392_v35 }
  0x92   :  { %4921 = vrot.lane.b32.xlu0 %v4920_v62, %s4943_s30  ;;  %v297_v62 = vld [vmem:[%s6586_s0 + $0x8] sm:$0xff] }
  0x93   :  { %4926 = vrot.lane.b32.xlu1 %v4925_v20, %s4942_s29 }
  0x96   :  { %4931 = vrot.lane.b32.xlu0 %v4930_v50, %s4944_s18 }
  0x97   :  { %4936 = vrot.lane.b32.xlu1 %v4935_v18, %s4943_s30 }
  0xac   :  { %v4702_v19 = vpop.permute.xlu0 %4701 }
  0xad   :  { %v4712_v17 = vpop.permute.xlu1 %4711  ;;  %v4704_v56 = vunpack.i.h.bf16 %v4702_v19  ;;  %v4703_v55 = vunpack.i.l.bf16 %v4702_v19 }
  0xae   :  { %v4714_v20 = vunpack.i.h.bf16 %v4712_v17  ;;  %v4713_v23 = vunpack.i.l.bf16 %v4712_v17 }
  0xaf   :  { %v779_v19 = vsel %vm778_vm0, %v296_v16, %v4703_v55  ;;  %v780_v54 = vsel %vm778_vm0, %v297_v62, %v4704_v56 }
  0xb0   :  { %v4707_v27 = vpop.permute.xlu0 %4706 }
  0xb1   :  { %v4709_v35 = vunpack.i.h.bf16 %v4707_v27  ;;  %v4708_v28 = vunpack.i.l.bf16 %v4707_v27  ;;  %v4717_v50 = vpop.permute.xlu1 %4716 }
  0xb2   :  { %v4719_v18 = vunpack.i.h.bf16 %v4717_v50  ;;  %v4718_v15 = vunpack.i.l.bf16 %v4717_v50 }
  0xb3   :  { %v812_v53 = vsel %vm811_vm1, %v779_v19, %v4708_v28  ;;  %v813_v14 = vsel %vm811_vm1, %v780_v54, %v4709_v35 }
  0xb4   :  { %v4722_v13 = vpop.permute.xlu0 %4721  ;;  %v845_v48 = vsel %vm844_vm2, %v812_v53, %v4713_v23  ;;  %v846_v47 = vsel %vm844_vm2, %v813_v14, %v4714_v20  ;;  %v781_v16 = vsel %vm778_vm0, %v5570_v39, %v4718_v15  ;;  %v782_v55 = vsel %vm778_vm0, %v5575_v38, %v4719_v18 }
  0xb5   :  { %v4724_v12 = vunpack.i.h.bf16 %v4722_v13  ;;  %v4723_v17 = vunpack.i.l.bf16 %v4722_v13  ;;  %v4727_v11 = vpop.permute.xlu1 %4726  ;;  %4079 = vmatprep.mubr.f32.mxu0 %v845_v48 }
  0xb6   :  { %v4729_v27 = vunpack.i.h.bf16 %v4727_v11  ;;  %v4728_v46 = vunpack.i.l.bf16 %v4727_v11  ;;  %4080 = vmatmul.mubr.f32.vlgmr.msra.gmra.mrb[0].mxu0 %v846_v47 }
  0xb7   :  { %v814_v54 = vsel %vm811_vm1, %v781_v16, %v4723_v17  ;;  %v815_v56 = vsel %vm811_vm1, %v782_v55, %v4724_v12 }
  0xb8   :  { %v4732_v53 = vpop.permute.xlu0 %4731  ;;  %v847_v14 = vsel %vm844_vm2, %v814_v54, %v4728_v46  ;;  %v848_v13 = vsel %vm844_vm2, %v815_v56, %v4729_v27 }
  0xb9   :  { %v4734_v62 = vunpack.i.h.bf16 %v4732_v53  ;;  %v4733_v48 = vunpack.i.l.bf16 %v4732_v53  ;;  %v4737_v20 = vpop.permute.xlu1 %4736  ;;  %4082 = vmatprep.mubr.f32.mxu0 %v847_v14 }
  0xba   :  { %v4739_v11 = vunpack.i.h.bf16 %v4737_v20  ;;  %v4738_v47 = vunpack.i.l.bf16 %v4737_v20  ;;  %4083 = vmatmul.mubr.f32.gmra.mrb[2].mxu0 %v848_v13 }
  0xbb   :  { %v783_v15 = vsel %vm778_vm0, %v5602_v49, %v4733_v48  ;;  %v784_v38 = vsel %vm778_vm0, %v5607_v34, %v4734_v62 }
  0xbc   :  { %v4742_v39 = vpop.permute.xlu0 %4741  ;;  %v816_v50 = vsel %vm811_vm1, %v783_v15, %v4738_v47  ;;  %v817_v18 = vsel %vm811_vm1, %v784_v38, %v4739_v11 }
  0xbd   :  { %v4744_v12 = vunpack.i.h.bf16 %v4742_v39  ;;  %v4743_v23 = vunpack.i.l.bf16 %v4742_v39  ;;  %v4747_v35 = vpop.permute.xlu1 %4746 }
  0xbe   :  { %v4749_v46 = vunpack.i.h.bf16 %v4747_v35  ;;  %v4748_v28 = vunpack.i.l.bf16 %v4747_v35 }
  0xbf   :  { %v849_v19 = vsel %vm844_vm2, %v816_v50, %v4743_v23  ;;  %v850_v17 = vsel %vm844_vm2, %v817_v18, %v4744_v12 }
  0xc0   :  { %v4752_v27 = vpop.permute.xlu0 %4751  ;;  %4085 = vmatprep.mubr.f32.mxu0 %v849_v19  ;;  %v785_v56 = vsel %vm778_vm0, %v5630_v43, %v4748_v28  ;;  %v786_v53 = vsel %vm778_vm0, %v5635_v40, %v4749_v46 }
  0xc1   :  { %v4754_v49 = vunpack.i.h.bf16 %v4752_v27  ;;  %v4753_v16 = vunpack.i.l.bf16 %v4752_v27  ;;  %v4757_v55 = vpop.permute.xlu1 %4756  ;;  %4086 = vmatmul.mubr.f32.gmra.mrb[4].mxu0 %v850_v17 }
  0xc2   :  { %v4759_v34 = vunpack.i.h.bf16 %v4757_v55  ;;  %v4758_v54 = vunpack.i.l.bf16 %v4757_v55 }
  0xc3   :  { %v818_v14 = vsel %vm811_vm1, %v785_v56, %v4753_v16  ;;  %v819_v13 = vsel %vm811_vm1, %v786_v53, %v4754_v49 }
  0xc4   :  { %v4762_v62 = vpop.permute.xlu0 %4761  ;;  %v851_v48 = vsel %vm844_vm2, %v818_v14, %v4758_v54  ;;  %v852_v20 = vsel %vm844_vm2, %v819_v13, %v4759_v34 }
  0xc5   :  { %v4764_v11 = vunpack.i.h.bf16 %v4762_v62  ;;  %v4763_v47 = vunpack.i.l.bf16 %v4762_v62  ;;  %v4767_v15 = vpop.permute.xlu1 %4766  ;;  %4088 = vmatprep.mubr.f32.mxu0 %v851_v48 }
  0xc6   :  { %v4769_v38 = vunpack.i.h.bf16 %v4767_v15  ;;  %v4768_v39 = vunpack.i.l.bf16 %v4767_v15  ;;  %4089 = vmatmul.mubr.f32.gmra.mrb[6].mxu0 %v852_v20 }
  0xc7   :  { %v787_v43 = vsel %vm778_vm0, %v5656_v31, %v4763_v47  ;;  %v788_v40 = vsel %vm778_vm0, %v5661_v32, %v4764_v11 }
  0xc8   :  { %v4772_v12 = vpop.permute.xlu0 %4771  ;;  %v820_v18 = vsel %vm811_vm1, %v787_v43, %v4768_v39  ;;  %v821_v19 = vsel %vm811_vm1, %v788_v40, %v4769_v38 }
  0xc9   :  { %v4774_v23 = vunpack.i.h.bf16 %v4772_v12  ;;  %v4773_v35 = vunpack.i.l.bf16 %v4772_v12  ;;  %v4777_v46 = vpop.permute.xlu1 %4776 }
  0xca   :  { %v4779_v28 = vunpack.i.h.bf16 %v4777_v46  ;;  %v4778_v50 = vunpack.i.l.bf16 %v4777_v46 }
  0xcb   :  { %v853_v17 = vsel %vm844_vm2, %v820_v18, %v4773_v35  ;;  %v854_v27 = vsel %vm844_vm2, %v821_v19, %v4774_v23 }
  0xcc   :  { %v4782_v49 = vpop.permute.xlu0 %4781  ;;  %4091 = vmatprep.mubr.f32.mxu0 %v853_v17  ;;  %v789_v54 = vsel %vm778_vm0, %v5684_v41, %v4778_v50  ;;  %v790_v56 = vsel %vm778_vm0, %v5689_v51, %v4779_v28 }
  0xcd   :  { %v4784_v31 = vunpack.i.h.bf16 %v4782_v49  ;;  %v4783_v16 = vunpack.i.l.bf16 %v4782_v49  ;;  %v4787_v55 = vpop.permute.xlu1 %4786  ;;  %4092 = vmatmul.mubr.f32.gmra.mrb[8].mxu0 %v854_v27 }
  0xce   :  { %v4789_v32 = vunpack.i.h.bf16 %v4787_v55  ;;  %v4788_v34 = vunpack.i.l.bf16 %v4787_v55 }
  0xcf   :  { %v822_v53 = vsel %vm811_vm1, %v789_v54, %v4783_v16  ;;  %v823_v14 = vsel %vm811_vm1, %v790_v56, %v4784_v31 }
  0xd0   :  { %v4792_v13 = vpop.permute.xlu0 %4791  ;;  %v855_v62 = vsel %vm844_vm2, %v822_v53, %v4788_v34  ;;  %v856_v48 = vsel %vm844_vm2, %v823_v14, %v4789_v32 }
  0xd1   :  { %v4794_v20 = vunpack.i.h.bf16 %v4792_v13  ;;  %v4793_v11 = vunpack.i.l.bf16 %v4792_v13  ;;  %v4797_v47 = vpop.permute.xlu1 %4796  ;;  %4094 = vmatprep.mubr.f32.mxu0 %v855_v62 }
  0xd2   :  { %v4799_v15 = vunpack.i.h.bf16 %v4797_v47  ;;  %v4798_v38 = vunpack.i.l.bf16 %v4797_v47  ;;  %4095 = vmatmul.mubr.f32.gmra.mrb[10].mxu0 %v856_v48 }
  0xd3   :  { %v791_v41 = vsel %vm778_vm0, %v5710_v36, %v4793_v11  ;;  %v792_v51 = vsel %vm778_vm0, %v5715_v37, %v4794_v20 }
  0xd4   :  { %v4802_v39 = vpop.permute.xlu0 %4801  ;;  %v824_v46 = vsel %vm811_vm1, %v791_v41, %v4798_v38  ;;  %v825_v28 = vsel %vm811_vm1, %v792_v51, %v4799_v15 }
  0xd5   :  { %v4804_v43 = vunpack.i.h.bf16 %v4802_v39  ;;  %v4803_v40 = vunpack.i.l.bf16 %v4802_v39  ;;  %v4807_v12 = vpop.permute.xlu1 %4806 }
  0xd6   :  { %v4809_v23 = vunpack.i.h.bf16 %v4807_v12  ;;  %v4808_v35 = vunpack.i.l.bf16 %v4807_v12 }
  0xd7   :  { %v857_v50 = vsel %vm844_vm2, %v824_v46, %v4803_v40  ;;  %v858_v18 = vsel %vm844_vm2, %v825_v28, %v4804_v43 }
  0xd8   :  { %v4812_v19 = vpop.permute.xlu0 %4811  ;;  %4097 = vmatprep.mubr.f32.mxu0 %v857_v50  ;;  %v793_v31 = vsel %vm778_vm0, %v5756_v24, %v4808_v35  ;;  %v794_v16 = vsel %vm778_vm0, %v5761_v26, %v4809_v23 }
  0xd9   :  { %v4814_v36 = vunpack.i.h.bf16 %v4812_v19  ;;  %v4813_v17 = vunpack.i.l.bf16 %v4812_v19  ;;  %v4817_v27 = vpop.permute.xlu1 %4816  ;;  %4098 = vmatmul.mubr.f32.gmra.mrb[12].mxu0 %v858_v18 }
  0xda   :  { %v4819_v37 = vunpack.i.h.bf16 %v4817_v27  ;;  %v4818_v49 = vunpack.i.l.bf16 %v4817_v27 }
  0xdb   :  { %v826_v55 = vsel %vm811_vm1, %v793_v31, %v4813_v17  ;;  %v827_v32 = vsel %vm811_vm1, %v794_v16, %v4814_v36 }
  0xdc   :  { %v4822_v34 = vpop.permute.xlu0 %4821  ;;  %v859_v54 = vsel %vm844_vm2, %v826_v55, %v4818_v49  ;;  %v860_v56 = vsel %vm844_vm2, %v827_v32, %v4819_v37 }
  0xdd   :  { %v4824_v53 = vunpack.i.h.bf16 %v4822_v34  ;;  %v4823_v14 = vunpack.i.l.bf16 %v4822_v34  ;;  %v4827_v13 = vpop.permute.xlu1 %4826  ;;  %4100 = vmatprep.mubr.f32.mxu0 %v859_v54 }
  0xde   :  { %v4829_v62 = vunpack.i.h.bf16 %v4827_v13  ;;  %v4828_v48 = vunpack.i.l.bf16 %v4827_v13  ;;  %4101 = vmatmul.mubr.f32.gmra.mrb[14].mxu0 %v860_v56 }
  0xdf   :  { %v795_v24 = vsel %vm778_vm0, %v5788_v33, %v4823_v14  ;;  %v796_v26 = vsel %vm778_vm0, %v5793_v58, %v4824_v53 }
  0xe0   :  { %v4832_v20 = vpop.permute.xlu0 %4831  ;;  %v828_v51 = vsel %vm811_vm1, %v795_v24, %v4828_v48  ;;  %v829_v39 = vsel %vm811_vm1, %v796_v26, %v4829_v62 }
  0xe1   :  { %v4834_v11 = vunpack.i.h.bf16 %v4832_v20  ;;  %v4833_v47 = vunpack.i.l.bf16 %v4832_v20  ;;  %v4837_v15 = vpop.permute.xlu1 %4836 }
  0xe2   :  { %v4839_v38 = vunpack.i.h.bf16 %v4837_v15  ;;  %v4838_v41 = vunpack.i.l.bf16 %v4837_v15 }
  0xe3   :  { %v861_v43 = vsel %vm844_vm2, %v828_v51, %v4833_v47  ;;  %v862_v40 = vsel %vm844_vm2, %v829_v39, %v4834_v11 }
  0xe4   :  { %v4842_v12 = vpop.permute.xlu0 %4841  ;;  %4103 = vmatprep.mubr.f32.mxu0 %v861_v43  ;;  %v797_v28 = vsel %vm778_vm0, %v5828_v29, %v4838_v41  ;;  %v798_v50 = vsel %vm778_vm0, %v5833_v30, %v4839_v38 }
  0xe5   :  { %v4844_v33 = vunpack.i.h.bf16 %v4842_v12  ;;  %v4843_v23 = vunpack.i.l.bf16 %v4842_v12  ;;  %v4847_v35 = vpop.permute.xlu1 %4846  ;;  %4104 = vmatmul.mubr.f32.gmra.mrb[16].mxu0 %v862_v40 }
  0xe6   :  { %v4849_v58 = vunpack.i.h.bf16 %v4847_v35  ;;  %v4848_v46 = vunpack.i.l.bf16 %v4847_v35 }
  0xe7   :  { %v830_v18 = vsel %vm811_vm1, %v797_v28, %v4843_v23  ;;  %v831_v19 = vsel %vm811_vm1, %v798_v50, %v4844_v33 }
  0xe8   :  { %v4852_v36 = vpop.permute.xlu0 %4851  ;;  %v863_v17 = vsel %vm844_vm2, %v830_v18, %v4848_v46  ;;  %v864_v27 = vsel %vm844_vm2, %v831_v19, %v4849_v58 }
  0xe9   :  { %v4854_v37 = vunpack.i.h.bf16 %v4852_v36  ;;  %v4853_v49 = vunpack.i.l.bf16 %v4852_v36  ;;  %v4857_v31 = vpop.permute.xlu1 %4856  ;;  %4106 = vmatprep.mubr.f32.mxu0 %v863_v17 }
  0xea   :  { %v4859_v16 = vunpack.i.h.bf16 %v4857_v31  ;;  %v4858_v55 = vunpack.i.l.bf16 %v4857_v31  ;;  %4107 = vmatmul.mubr.f32.gmra.mrb[18].mxu0 %v864_v27 }
  0xeb   :  { %v799_v29 = vsel %vm778_vm0, %v5860_v59, %v4853_v49  ;;  %v800_v30 = vsel %vm778_vm0, %v5865_v52, %v4854_v37 }
  0xec   :  { %v4862_v32 = vpop.permute.xlu0 %4861  ;;  %v832_v13 = vsel %vm811_vm1, %v799_v29, %v4858_v55  ;;  %v833_v62 = vsel %vm811_vm1, %v800_v30, %v4859_v16 }
  0xed   :  { %v4864_v34 = vunpack.i.h.bf16 %v4862_v32  ;;  %v4863_v54 = vunpack.i.l.bf16 %v4862_v32  ;;  %v4867_v56 = vpop.permute.xlu1 %4866 }
  0xee   :  { %v4869_v53 = vunpack.i.h.bf16 %v4867_v56  ;;  %v4868_v14 = vunpack.i.l.bf16 %v4867_v56 }
  0xef   :  { %v865_v48 = vsel %vm844_vm2, %v832_v13, %v4863_v54  ;;  %v866_v24 = vsel %vm844_vm2, %v833_v62, %v4864_v34 }
  0xf0   :  { %v4872_v26 = vpop.permute.xlu0 %4871  ;;  %4109 = vmatprep.mubr.f32.mxu0 %v865_v48  ;;  %v801_v15 = vsel %vm778_vm0, %v5894_v25, %v4868_v14  ;;  %v802_v38 = vsel %vm778_vm0, %v5899_v22, %v4869_v53 }
  0xf1   :  { %v4874_v59 = vunpack.i.h.bf16 %v4872_v26  ;;  %v4873_v20 = vunpack.i.l.bf16 %v4872_v26  ;;  %v4877_v11 = vpop.permute.xlu1 %4876  ;;  %4110 = vmatmul.mubr.f32.gmra.mrb[20].mxu0 %v866_v24 }
  0xf2   :  { %v4879_v52 = vunpack.i.h.bf16 %v4877_v11  ;;  %v4878_v47 = vunpack.i.l.bf16 %v4877_v11 }
  0xf3   :  { %v834_v41 = vsel %vm811_vm1, %v801_v15, %v4873_v20  ;;  %v835_v51 = vsel %vm811_vm1, %v802_v38, %v4874_v59 }
  0xf4   :  { %v4882_v39 = vpop.permute.xlu0 %4881  ;;  %v867_v43 = vsel %vm844_vm2, %v834_v41, %v4878_v47  ;;  %v868_v40 = vsel %vm844_vm2, %v835_v51, %v4879_v52 }
  0xf5   :  { %v4884_v12 = vunpack.i.h.bf16 %v4882_v39  ;;  %v4883_v33 = vunpack.i.l.bf16 %v4882_v39  ;;  %v4887_v23 = vpop.permute.xlu1 %4886  ;;  %4112 = vmatprep.mubr.f32.mxu0 %v867_v43 }
  0xf6   :  { %v4889_v35 = vunpack.i.h.bf16 %v4887_v23  ;;  %v4888_v58 = vunpack.i.l.bf16 %v4887_v23  ;;  %4113 = vmatmul.mubr.f32.gmra.mrb[22].mxu0 %v868_v40 }
  0xf7   :  { %v803_v25 = vsel %vm778_vm0, %v5920_v57, %v4883_v33  ;;  %v804_v22 = vsel %vm778_vm0, %v5925_v0, %v4884_v12 }
  0xf8   :  { %v4892_v46 = vpop.permute.xlu0 %4891  ;;  %v836_v17 = vsel %vm811_vm1, %v803_v25, %v4888_v58  ;;  %v837_v27 = vsel %vm811_vm1, %v804_v22, %v4889_v35 }
  0xf9   :  { %v4894_v28 = vunpack.i.h.bf16 %v4892_v46  ;;  %v4893_v50 = vunpack.i.l.bf16 %v4892_v46  ;;  %v4897_v18 = vpop.permute.xlu1 %4896 }
  0xfa   :  { %v4899_v19 = vunpack.i.h.bf16 %v4897_v18  ;;  %v4898_v36 = vunpack.i.l.bf16 %v4897_v18 }
  0xfb   :  { %v869_v37 = vsel %vm844_vm2, %v836_v17, %v4893_v50  ;;  %v870_v49 = vsel %vm844_vm2, %v837_v27, %v4894_v28  ;;  %v6170_v28 = vld [vmem:[%s6588_s2] ss:$0 sm:$0xff] }
  0xfc   :  { %v4902_v31 = vpop.permute.xlu0 %4901  ;;  %4115 = vmatprep.mubr.f32.mxu0 %v869_v37  ;;  %v805_v30 = vsel %vm778_vm0, %v5948_v44, %v4898_v36  ;;  %v806_v32 = vsel %vm778_vm0, %v5953_v63, %v4899_v19 }
  0xfd   :  { %v4904_v57 = vunpack.i.h.bf16 %v4902_v31  ;;  %v4903_v16 = vunpack.i.l.bf16 %v4902_v31  ;;  %v4907_v55 = vpop.permute.xlu1 %4906  ;;  %4116 = vmatmul.mubr.f32.gmra.mrb[24].mxu0 %v870_v49 }
  0xfe   :  { %v4909_v0 = vunpack.i.h.bf16 %v4907_v55  ;;  %v4908_v29 = vunpack.i.l.bf16 %v4907_v55 }
  0xff   :  { %v838_v34 = vsel %vm811_vm1, %v805_v30, %v4903_v16  ;;  %v839_v54 = vsel %vm811_vm1, %v806_v32, %v4904_v57 }
 0x100   :  { %v4912_v56 = vpop.permute.xlu0 %4911  ;;  %v871_v53 = vsel %vm844_vm2, %v838_v34, %v4908_v29  ;;  %v872_v14 = vsel %vm844_vm2, %v839_v54, %v4909_v0 }
 0x101   :  { %v4914_v13 = vunpack.i.h.bf16 %v4912_v56  ;;  %v4913_v62 = vunpack.i.l.bf16 %v4912_v56  ;;  %v4917_v48 = vpop.permute.xlu1 %4916  ;;  %4118 = vmatprep.mubr.f32.mxu0 %v871_v53 }
 0x102   :  { %v4919_v24 = vunpack.i.h.bf16 %v4917_v48  ;;  %v4918_v26 = vunpack.i.l.bf16 %v4917_v48  ;;  %4119 = vmatmul.mubr.f32.gmra.mrb[26].mxu0 %v872_v14 }
 0x103   :  { %v807_v44 = vsel %vm778_vm0, %v5974_v42, %v4913_v62  ;;  %v808_v63 = vsel %vm778_vm0, %v5979_v60, %v4914_v13 }
 0x104   :  { %v4922_v59 = vpop.permute.xlu0 %4921  ;;  %v840_v38 = vsel %vm811_vm1, %v807_v44, %v4918_v26  ;;  %v841_v41 = vsel %vm811_vm1, %v808_v63, %v4919_v24 }
 0x105   :  { %v4924_v20 = vunpack.i.h.bf16 %v4922_v59  ;;  %v4923_v11 = vunpack.i.l.bf16 %v4922_v59  ;;  %v4927_v52 = vpop.permute.xlu1 %4926 }
 0x106   :  { %v4929_v47 = vunpack.i.h.bf16 %v4927_v52  ;;  %v4928_v15 = vunpack.i.l.bf16 %v4927_v52 }
 0x107   :  { %v873_v51 = vsel %vm844_vm2, %v840_v38, %v4923_v11  ;;  %v874_v39 = vsel %vm844_vm2, %v841_v41, %v4924_v20 }
 0x108   :  { %v4932_v43 = vpop.permute.xlu0 %4931  ;;  %4121 = vmatprep.mubr.f32.mxu0 %v873_v51  ;;  %v809_v23 = vsel %vm778_vm0, %v6002_v21, %v4928_v15  ;;  %v810_v35 = vsel %vm778_vm0, %v6007_v61, %v4929_v47 }
 0x109   :  { %v4934_v42 = vunpack.i.h.bf16 %v4932_v43  ;;  %v4933_v40 = vunpack.i.l.bf16 %v4932_v43  ;;  %v4937_v12 = vpop.permute.xlu1 %4936  ;;  %4122 = vmatmul.mubr.f32.gmra.mrb[28].mxu0 %v874_v39 }
 0x10a   :  { %v4939_v60 = vunpack.i.h.bf16 %v4937_v12  ;;  %v4938_v33 = vunpack.i.l.bf16 %v4937_v12 }
 0x10b   :  { %v842_v58 = vsel %vm811_vm1, %v809_v23, %v4933_v40  ;;  %v843_v25 = vsel %vm811_vm1, %v810_v35, %v4934_v42 }
 0x10c   :  { %v875_v22 = vsel %vm844_vm2, %v842_v58, %v4938_v33  ;;  %v876_v46 = vsel %vm844_vm2, %v843_v25, %v4939_v60 }
 0x10d   :  { %4124 = vmatprep.mubr.f32.mxu0 %v875_v22 }
 0x10e   :  { %4125 = vmatmul.mubr.f32.gmra.mrb[30].mxu0 %v876_v46 }
 0x189   :  { %v4081_v50 = vpop.f32.mrb[0].mxu0 }
 0x18a   :  { %v972_v21 = vadd.f32 %v4081_v50, %v6170_v28  ;;  %v966_v18 = vpop.f32.mrb[1].mxu0 }
 0x18b   :  { %v967_v61 = vadd.f32 %v6170_v28, %v966_v18 }
 0x18c   :  { %v1126_v19 = vmax.f32 %v972_v21, 0.0 }
 0x18d   :  { %v1125_v36 = vmax.f32 %v967_v61, 0.0  ;;  %v4084_v17 = vpop.f32.mrb[2].mxu0 }
 0x18e   :  { %1158 = vst.msk [vmem:[#allocation2 + $0x8] sm:$0xff] %vm778_vm0, %v1126_v19  ;;  %v982_v27 = vadd.f32 %v4084_v17, %v6170_v28  ;;  %v976_v37 = vpop.f32.mrb[3].mxu0 }
 0x18f   :  { %1157 = vst.msk [vmem:[#allocation2] sm:$0xff] %vm778_vm0, %v1125_v36  ;;  %v977_v49 = vadd.f32 %v6170_v28, %v976_v37 }
 0x190   :  { %v1128_v31 = vmax.f32 %v982_v27, 0.0 }
 0x191   :  { %v1127_v57 = vmax.f32 %v977_v49, 0.0 }
 0x192   :  { %1160 = vst.msk [vmem:[#allocation2 + $0x18] sm:$0xff] %vm778_vm0, %v1128_v31 }
 0x193   :  { %1159 = vst.msk [vmem:[#allocation2 + $0x10] sm:$0xff] %vm778_vm0, %v1127_v57 }
 0x194   :  { %v4087_v16 = vpop.f32.mrb[4].mxu0 }
 0x195   :  { %v992_v55 = vadd.f32 %v4087_v16, %v6170_v28  ;;  %v986_v0 = vpop.f32.mrb[5].mxu0  ;;  %v1190_v14 = vld [vmem:[#allocation2 + $0x8] sm:$0xff] }
 0x196   :  { %v987_v29 = vadd.f32 %v6170_v28, %v986_v0  ;;  %v1189_v34 = vld [vmem:[#allocation2] sm:$0xff] }
 0x197   :  { %v1130_v30 = vmax.f32 %v992_v55, 0.0  ;;  %v1219_v54 = vld [vmem:[#allocation2 + $0x1] sm:$0xff] }
 0x198   :  { %v1129_v32 = vmax.f32 %v987_v29, 0.0  ;;  %v1249_v20 = vmax.f32 %v1189_v34, %v1219_v54 }
 0x199   :  { %v1192_v56 = vld [vmem:[#allocation2 + $0x18] sm:$0xff]  ;;  %1162 = vst.msk [vmem:[#allocation2 + $0x28] sm:$0xff] %vm778_vm0, %v1130_v30  ;;  %v4090_v53 = vpop.f32.mrb[6].mxu0 }
 0x19a   :  { %v1191_v13 = vld [vmem:[#allocation2 + $0x10] sm:$0xff]  ;;  %1161 = vst.msk [vmem:[#allocation2 + $0x20] sm:$0xff] %vm778_vm0, %v1129_v32  ;;  %v1002_v48 = vadd.f32 %v4090_v53, %v6170_v28  ;;  %v996_v24 = vpop.f32.mrb[7].mxu0 }
 0x19b   :  { %v1220_v62 = vld [vmem:[#allocation2 + $0x9] sm:$0xff]  ;;  %v1280_v63 = vld [vmem:[#allocation2 + $0x17] sm:$0xff]  ;;  %v997_v59 = vadd.f32 %v6170_v28, %v996_v24 }
 0x19c   :  { %v1250_v26 = vmax.f32 %v1190_v14, %v1220_v62  ;;  %v1279_v44 = vld [vmem:[#allocation2 + $0xf] sm:$0xff]  ;;  %v1312_v52 = vmax.f32 %v1280_v63, %v1192_v56  ;;  %v1132_v47 = vmax.f32 %v1002_v48, 0.0 }
 0x19d   :  { %v1311_v11 = vmax.f32 %v1279_v44, %v1191_v13  ;;  %v1131_v15 = vmax.f32 %v997_v59, 0.0 }
 0x19e   :  { %v1342_v41 = vmax.f32 %v1250_v26, %v1312_v52  ;;  %1164 = vst.msk [vmem:[#allocation2 + $0x38] sm:$0xff] %vm778_vm0, %v1132_v47 }
 0x19f   :  { %v1341_v38 = vmax.f32 %v1249_v20, %v1311_v11  ;;  %1163 = vst.msk [vmem:[#allocation2 + $0x30] sm:$0xff] %vm778_vm0, %v1131_v15 }
 0x1a0   :  { %1372 = vst.msk [vmem:[#allocation3 + $0x8] sm:$0xff] %vm778_vm0, %v1342_v41  ;;  %v1194_v51 = vld [vmem:[#allocation2 + $0x28] sm:$0xff]  ;;  %v4093_v39 = vpop.f32.mrb[8].mxu0 }
 0x1a1   :  { %1371 = vst.msk [vmem:[#allocation3] sm:$0xff] %vm778_vm0, %v1341_v38  ;;  %v1193_v43 = vld [vmem:[#allocation2 + $0x20] sm:$0xff]  ;;  %v1012_v40 = vadd.f32 %v4093_v39, %v6170_v28  ;;  %v1006_v12 = vpop.f32.mrb[9].mxu0 }
 0x1a2   :  { %v1222_v42 = vld [vmem:[#allocation2 + $0x19] sm:$0xff]  ;;  %v1282_v33 = vld [vmem:[#allocation2 + $0x27] sm:$0xff]  ;;  %v1007_v23 = vadd.f32 %v6170_v28, %v1006_v12 }
 0x1a3   :  { %v1252_v60 = vmax.f32 %v1192_v56, %v1222_v42  ;;  %v1314_v35 = vmax.f32 %v1282_v33, %v1194_v51  ;;  %v1134_v58 = vmax.f32 %v1012_v40, 0.0  ;;  %v1223_v22 = vld [vmem:[#allocation2 + $0x21] sm:$0xff] }
 0x1a4   :  { %v1133_v25 = vmax.f32 %v1007_v23, 0.0  ;;  %v1253_v57 = vmax.f32 %v1193_v43, %v1223_v22 }
 0x1a5   :  { %v1344_v46 = vmax.f32 %v1252_v60, %v1314_v35  ;;  %v1196_v50 = vld [vmem:[#allocation2 + $0x38] sm:$0xff]  ;;  %1166 = vst.msk [vmem:[#allocation2 + $0x48] sm:$0xff] %vm778_vm0, %v1134_v58  ;;  %v4096_v21 = vpop.f32.mrb[10].mxu0 }
 0x1a6   :  { %v1195_v18 = vld [vmem:[#allocation2 + $0x30] sm:$0xff]  ;;  %1165 = vst.msk [vmem:[#allocation2 + $0x40] sm:$0xff] %vm778_vm0, %v1133_v25  ;;  %v1022_v19 = vadd.f32 %v4096_v21, %v6170_v28  ;;  %v1016_v36 = vpop.f32.mrb[11].mxu0 }
 0x1a7   :  { %v1224_v61 = vld [vmem:[#allocation2 + $0x29] sm:$0xff]  ;;  %1374 = vst.msk [vmem:[#allocation3 + $0x18] sm:$0xff] %vm778_vm0, %v1344_v46  ;;  %v1284_v49 = vld [vmem:[#allocation2 + $0x37] sm:$0xff]  ;;  %v1017_v31 = vadd.f32 %v6170_v28, %v1016_v36 }
 0x1a8   :  { %v1401_v17 = vld [vmem:[#allocation3] ss:$2 sm:$0x7f]  ;;  %v1254_v27 = vmax.f32 %v1194_v51, %v1224_v61  ;;  %v1283_v37 = vld [vmem:[#allocation2 + $0x2f] sm:$0xff]  ;;  %v1316_v55 = vmax.f32 %v1284_v49, %v1196_v50  ;;  %v1136_v0 = vmax.f32 %v1022_v19, 0.0 }
 0x1a9   :  { %1403 = vst.msk [vmem:[#allocation4] sm:$0x7f] %vm1402_vm3, %v1401_v17  ;;  %v1315_v16 = vmax.f32 %v1283_v37, %v1195_v18  ;;  %v1135_v29 = vmax.f32 %v1017_v31, 0.0 }
 0x1aa   :  { %v1346_v32 = vmax.f32 %v1254_v27, %v1316_v55  ;;  %1168 = vst.msk [vmem:[#allocation2 + $0x58] sm:$0xff] %vm778_vm0, %v1136_v0 }
 0x1ab   :  { %v1345_v30 = vmax.f32 %v1253_v57, %v1315_v16  ;;  %1167 = vst.msk [vmem:[#allocation2 + $0x50] sm:$0xff] %vm778_vm0, %v1135_v29 }
 0x1ac   :  { %1376 = vst.msk [vmem:[#allocation3 + $0x28] sm:$0xff] %vm778_vm0, %v1346_v32  ;;  %v1198_v34 = vld [vmem:[#allocation2 + $0x48] sm:$0xff]  ;;  %v4099_v54 = vpop.f32.mrb[12].mxu0 }
 0x1ad   :  { %1375 = vst.msk [vmem:[#allocation3 + $0x20] sm:$0xff] %vm778_vm0, %v1345_v30  ;;  %v1197_v56 = vld [vmem:[#allocation2 + $0x40] sm:$0xff]  ;;  %v1032_v14 = vadd.f32 %v4099_v54, %v6170_v28  ;;  %v1026_v13 = vpop.f32.mrb[13].mxu0 }
 0x1ae   :  { %v1226_v53 = vld [vmem:[#allocation2 + $0x39] sm:$0xff]  ;;  %v1286_v48 = vld [vmem:[#allocation2 + $0x47] sm:$0xff]  ;;  %v1027_v24 = vadd.f32 %v6170_v28, %v1026_v13 }
 0x1af   :  { %v1256_v62 = vmax.f32 %v1196_v50, %v1226_v53  ;;  %v1318_v26 = vmax.f32 %v1286_v48, %v1198_v34  ;;  %v1138_v44 = vmax.f32 %v1032_v14, 0.0  ;;  %v1227_v59 = vld [vmem:[#allocation2 + $0x41] sm:$0xff] }
 0x1b0   :  { %v1137_v63 = vmax.f32 %v1027_v24, 0.0  ;;  %v1257_v12 = vmax.f32 %v1197_v56, %v1227_v59 }
 0x1b1   :  { %v1348_v20 = vmax.f32 %v1256_v62, %v1318_v26  ;;  %v1200_v11 = vld [vmem:[#allocation2 + $0x58] sm:$0xff]  ;;  %1170 = vst.msk [vmem:[#allocation2 + $0x68] sm:$0xff] %vm778_vm0, %v1138_v44  ;;  %v4102_v52 = vpop.f32.mrb[14].mxu0 }
 0x1b2   :  { %v1199_v47 = vld [vmem:[#allocation2 + $0x50] sm:$0xff]  ;;  %1169 = vst.msk [vmem:[#allocation2 + $0x60] sm:$0xff] %vm778_vm0, %v1137_v63  ;;  %v1042_v38 = vadd.f32 %v4102_v52, %v6170_v28  ;;  %v1036_v41 = vpop.f32.mrb[15].mxu0 }
 0x1b3   :  { %v1228_v15 = vld [vmem:[#allocation2 + $0x49] sm:$0xff]  ;;  %1378 = vst.msk [vmem:[#allocation3 + $0x38] sm:$0xff] %vm778_vm0, %v1348_v20  ;;  %v1288_v42 = vld [vmem:[#allocation2 + $0x57] sm:$0xff]  ;;  %v1037_v40 = vadd.f32 %v6170_v28, %v1036_v41 }
 0x1b4   :  { %v1405_v51 = vld [vmem:[#allocation3 + $0x1e] ss:$2 sm:$0x7f]  ;;  %v1258_v39 = vmax.f32 %v1198_v34, %v1228_v15  ;;  %v1287_v43 = vld [vmem:[#allocation2 + $0x4f] sm:$0xff]  ;;  %v1320_v33 = vmax.f32 %v1288_v42, %v1200_v11  ;;  %v1140_v23 = vmax.f32 %v1042_v38, 0.0 }
 0x1b5   :  { %1406 = vst.msk [vmem:[#allocation4 + $0x7] sm:$0x7f] %vm1402_vm3, %v1405_v51  ;;  %v1319_v60 = vmax.f32 %v1287_v43, %v1199_v47  ;;  %v1139_v35 = vmax.f32 %v1037_v40, 0.0 }
 0x1b6   :  { %v1350_v25 = vmax.f32 %v1258_v39, %v1320_v33  ;;  %1172 = vst.msk [vmem:[#allocation2 + $0x78] sm:$0xff] %vm778_vm0, %v1140_v23 }
 0x1b7   :  { %v1349_v58 = vmax.f32 %v1257_v12, %v1319_v60  ;;  %1171 = vst.msk [vmem:[#allocation2 + $0x70] sm:$0xff] %vm778_vm0, %v1139_v35 }
 0x1b8   :  { %1380 = vst.msk [vmem:[#allocation3 + $0x48] sm:$0xff] %vm778_vm0, %v1350_v25  ;;  %v1202_v22 = vld [vmem:[#allocation2 + $0x68] sm:$0xff]  ;;  %v4105_v46 = vpop.f32.mrb[16].mxu0 }
 0x1b9   :  { %1379 = vst.msk [vmem:[#allocation3 + $0x40] sm:$0xff] %vm778_vm0, %v1349_v58  ;;  %v1201_v50 = vld [vmem:[#allocation2 + $0x60] sm:$0xff]  ;;  %v1052_v18 = vadd.f32 %v4105_v46, %v6170_v28  ;;  %v1046_v61 = vpop.f32.mrb[17].mxu0 }
 0x1ba   :  { %v1230_v21 = vld [vmem:[#allocation2 + $0x59] sm:$0xff]  ;;  %v1290_v36 = vld [vmem:[#allocation2 + $0x67] sm:$0xff]  ;;  %v1047_v17 = vadd.f32 %v6170_v28, %v1046_v61 }
 0x1bb   :  { %v1260_v19 = vmax.f32 %v1200_v11, %v1230_v21  ;;  %v1322_v27 = vmax.f32 %v1290_v36, %v1202_v22  ;;  %v1142_v37 = vmax.f32 %v1052_v18, 0.0  ;;  %v1231_v31 = vld [vmem:[#allocation2 + $0x61] sm:$0xff] }
 0x1bc   :  { %v1141_v49 = vmax.f32 %v1047_v17, 0.0  ;;  %v1261_v54 = vmax.f32 %v1201_v50, %v1231_v31 }
 0x1bd   :  { %v1352_v57 = vmax.f32 %v1260_v19, %v1322_v27  ;;  %1174 = vst.msk [vmem:[#allocation2 + $0x88] sm:$0xff] %vm778_vm0, %v1142_v37  ;;  %v4108_v16 = vpop.f32.mrb[18].mxu0 }
 0x1be   :  { %v1203_v55 = vld [vmem:[#allocation2 + $0x70] sm:$0xff]  ;;  %1173 = vst.msk [vmem:[#allocation2 + $0x80] sm:$0xff] %vm778_vm0, %v1141_v49  ;;  %v1062_v0 = vadd.f32 %v4108_v16, %v6170_v28  ;;  %v1056_v29 = vpop.f32.mrb[19].mxu0 }
 0x1bf   :  { %1382 = vst.msk [vmem:[#allocation3 + $0x58] sm:$0xff] %vm778_vm0, %v1352_v57  ;;  %v1291_v32 = vld [vmem:[#allocation2 + $0x6f] sm:$0xff]  ;;  %v1057_v34 = vadd.f32 %v6170_v28, %v1056_v29 }
 0x1c0   :  { %v1408_v30 = vld [vmem:[#allocation3 + $0x3c] ss:$2 sm:$0x7f]  ;;  %v1323_v56 = vmax.f32 %v1291_v32, %v1203_v55  ;;  %v1144_v53 = vmax.f32 %v1062_v0, 0.0 }
 0x1c1   :  { %1409 = vst.msk [vmem:[#allocation4 + $0xe] sm:$0x7f] %vm1402_vm3, %v1408_v30  ;;  %v1143_v14 = vmax.f32 %v1057_v34, 0.0 }
 0x1c2   :  { %v1353_v13 = vmax.f32 %v1261_v54, %v1323_v56  ;;  %1176 = vst.msk [vmem:[#allocation2 + $0x98] sm:$0xff] %vm778_vm0, %v1144_v53 }
 0x1c3   :  { %1175 = vst.msk [vmem:[#allocation2 + $0x90] sm:$0xff] %vm778_vm0, %v1143_v14 }
 0x1c4   :  { %1383 = vst.msk [vmem:[#allocation3 + $0x60] sm:$0xff] %vm778_vm0, %v1353_v13  ;;  %v1206_v62 = vld [vmem:[#allocation2 + $0x88] sm:$0xff]  ;;  %v4111_v48 = vpop.f32.mrb[20].mxu0 }
 0x1c5   :  { %v1205_v24 = vld [vmem:[#allocation2 + $0x80] sm:$0xff]  ;;  %v1072_v26 = vadd.f32 %v4111_v48, %v6170_v28  ;;  %v1066_v44 = vpop.f32.mrb[21].mxu0 }
 0x1c6   :  { %v1067_v63 = vadd.f32 %v6170_v28, %v1066_v44  ;;  %v1235_v11 = vld [vmem:[#allocation2 + $0x81] sm:$0xff] }
 0x1c7   :  { %v1146_v59 = vmax.f32 %v1072_v26, 0.0  ;;  %v1265_v60 = vmax.f32 %v1205_v24, %v1235_v11 }
 0x1c8   :  { %v1145_v20 = vmax.f32 %v1067_v63, 0.0 }
 0x1c9   :  { %v1208_v52 = vld [vmem:[#allocation2 + $0x98] sm:$0xff]  ;;  %1178 = vst.msk [vmem:[#allocation2 + $0xa8] sm:$0xff] %vm778_vm0, %v1146_v59  ;;  %v4114_v47 = vpop.f32.mrb[22].mxu0 }
 0x1ca   :  { %v1207_v15 = vld [vmem:[#allocation2 + $0x90] sm:$0xff]  ;;  %1177 = vst.msk [vmem:[#allocation2 + $0xa0] sm:$0xff] %vm778_vm0, %v1145_v20  ;;  %v1082_v41 = vadd.f32 %v4114_v47, %v6170_v28  ;;  %v1076_v51 = vpop.f32.mrb[23].mxu0 }
 0x1cb   :  { %v1236_v38 = vld [vmem:[#allocation2 + $0x89] sm:$0xff]  ;;  %v1411_v39 = vld [vmem:[#allocation3 + $0x5a] ss:$2 sm:$0x7f]  ;;  %v1077_v12 = vadd.f32 %v6170_v28, %v1076_v51  ;;  %v1237_v46 = vld [vmem:[#allocation2 + $0x91] sm:$0xff] }
 0x1cc   :  { %v1266_v43 = vmax.f32 %v1206_v62, %v1236_v38  ;;  %v1295_v42 = vld [vmem:[#allocation2 + $0x8f] sm:$0xff]  ;;  %v1296_v40 = vld [vmem:[#allocation2 + $0x97] sm:$0xff]  ;;  %1412 = vst.msk [vmem:[#allocation4 + $0x15] sm:$0x7f] %vm1402_vm3, %v1411_v39  ;;  %v1148_v35 = vmax.f32 %v1082_v41, 0.0  ;;  %v1267_v27 = vmax.f32 %v1207_v15, %v1237_v46 }
 0x1cd   :  { %v1327_v33 = vmax.f32 %v1295_v42, %v1207_v15  ;;  %v1328_v23 = vmax.f32 %v1296_v40, %v1208_v52  ;;  %v1147_v58 = vmax.f32 %v1077_v12, 0.0 }
 0x1ce   :  { %1180 = vst.msk [vmem:[#allocation2 + $0xb8] sm:$0xff] %vm778_vm0, %v1148_v35 }
 0x1cf   :  { %v1357_v25 = vmax.f32 %v1265_v60, %v1327_v33  ;;  %v1358_v22 = vmax.f32 %v1266_v43, %v1328_v23  ;;  %1179 = vst.msk [vmem:[#allocation2 + $0xb0] sm:$0xff] %vm778_vm0, %v1147_v58 }
 0x1d0   :  { %v1210_v50 = vld [vmem:[#allocation2 + $0xa8] sm:$0xff]  ;;  %v4117_v21 = vpop.f32.mrb[24].mxu0 }
 0x1d1   :  { %1387 = vst.msk [vmem:[#allocation3 + $0x80] sm:$0xff] %vm778_vm0, %v1357_v25  ;;  %1388 = vst.msk [vmem:[#allocation3 + $0x88] sm:$0xff] %vm778_vm0, %v1358_v22  ;;  %v1209_v18 = vld [vmem:[#allocation2 + $0xa0] sm:$0xff]  ;;  %v1092_v61 = vadd.f32 %v4117_v21, %v6170_v28  ;;  %v1086_v19 = vpop.f32.mrb[25].mxu0 }
 0x1d2   :  { %v1297_v36 = vld [vmem:[#allocation2 + $0x9f] sm:$0xff]  ;;  %v1087_v17 = vadd.f32 %v6170_v28, %v1086_v19 }
 0x1d3   :  { %v1329_v37 = vmax.f32 %v1297_v36, %v1209_v18  ;;  %v1150_v49 = vmax.f32 %v1092_v61, 0.0  ;;  %v1239_v57 = vld [vmem:[#allocation2 + $0xa1] sm:$0xff] }
 0x1d4   :  { %v1149_v31 = vmax.f32 %v1087_v17, 0.0  ;;  %v1269_v13 = vmax.f32 %v1209_v18, %v1239_v57 }
 0x1d5   :  { %v1359_v16 = vmax.f32 %v1267_v27, %v1329_v37  ;;  %v1212_v55 = vld [vmem:[#allocation2 + $0xb8] sm:$0xff]  ;;  %1182 = vst.msk [vmem:[#allocation2 + $0xc8] sm:$0xff] %vm778_vm0, %v1150_v49  ;;  %v4120_v0 = vpop.f32.mrb[26].mxu0 }
 0x1d6   :  { %v1211_v29 = vld [vmem:[#allocation2 + $0xb0] sm:$0xff]  ;;  %1181 = vst.msk [vmem:[#allocation2 + $0xc0] sm:$0xff] %vm778_vm0, %v1149_v31  ;;  %v1102_v32 = vadd.f32 %v4120_v0, %v6170_v28  ;;  %v1096_v34 = vpop.f32.mrb[27].mxu0 }
 0x1d7   :  { %v1240_v30 = vld [vmem:[#allocation2 + $0xa9] sm:$0xff]  ;;  %1389 = vst.msk [vmem:[#allocation3 + $0x90] sm:$0xff] %vm778_vm0, %v1359_v16  ;;  %v1300_v53 = vld [vmem:[#allocation2 + $0xb7] sm:$0xff]  ;;  %v1097_v14 = vadd.f32 %v6170_v28, %v1096_v34 }
 0x1d8   :  { %v1270_v54 = vmax.f32 %v1210_v50, %v1240_v30  ;;  %v1299_v56 = vld [vmem:[#allocation2 + $0xaf] sm:$0xff]  ;;  %v1332_v48 = vmax.f32 %v1300_v53, %v1212_v55  ;;  %v1152_v24 = vmax.f32 %v1102_v32, 0.0 }
 0x1d9   :  { %v1331_v62 = vmax.f32 %v1299_v56, %v1211_v29  ;;  %v1151_v26 = vmax.f32 %v1097_v14, 0.0  ;;  %v1241_v59 = vld [vmem:[#allocation2 + $0xb1] sm:$0xff] }
 0x1da   :  { %v1362_v63 = vmax.f32 %v1270_v54, %v1332_v48  ;;  %1184 = vst.msk [vmem:[#allocation2 + $0xd8] sm:$0xff] %vm778_vm0, %v1152_v24  ;;  %v1271_v39 = vmax.f32 %v1211_v29, %v1241_v59 }
 0x1db   :  { %v1361_v44 = vmax.f32 %v1269_v13, %v1331_v62  ;;  %1183 = vst.msk [vmem:[#allocation2 + $0xd0] sm:$0xff] %vm778_vm0, %v1151_v26 }
 0x1dc   :  { %1392 = vst.msk [vmem:[#allocation3 + $0xa8] sm:$0xff] %vm778_vm0, %v1362_v63  ;;  %v1214_v20 = vld [vmem:[#allocation2 + $0xc8] sm:$0xff]  ;;  %v4123_v11 = vpop.f32.mrb[28].mxu0 }
 0x1dd   :  { %1391 = vst.msk [vmem:[#allocation3 + $0xa0] sm:$0xff] %vm778_vm0, %v1361_v44  ;;  %v1213_v52 = vld [vmem:[#allocation2 + $0xc0] sm:$0xff]  ;;  %v1112_v47 = vadd.f32 %v4123_v11, %v6170_v28  ;;  %v1106_v15 = vpop.f32.mrb[29].mxu0 }
 0x1de   :  { %v1414_v38 = vld [vmem:[#allocation3 + $0x87] ss:$2 sm:$0x7f]  ;;  %v1301_v41 = vld [vmem:[#allocation2 + $0xbf] sm:$0xff]  ;;  %v1107_v51 = vadd.f32 %v6170_v28, %v1106_v15 }
 0x1df   :  { %1415 = vst.msk [vmem:[#allocation4 + $0x1c] sm:$0x7f] %vm1402_vm3, %v1414_v38  ;;  %v1333_v43 = vmax.f32 %v1301_v41, %v1213_v52  ;;  %v1154_v42 = vmax.f32 %v1112_v47, 0.0  ;;  %v1243_v12 = vld [vmem:[#allocation2 + $0xc1] sm:$0xff] }
 0x1e0   :  { %v1153_v40 = vmax.f32 %v1107_v51, 0.0  ;;  %v1273_v61 = vmax.f32 %v1213_v52, %v1243_v12 }
 0x1e1   :  { %v1363_v60 = vmax.f32 %v1271_v39, %v1333_v43  ;;  %v1216_v33 = vld [vmem:[#allocation2 + $0xd8] sm:$0xff]  ;;  %1186 = vst.msk [vmem:[#allocation2 + $0xe8] sm:$0xff] %vm778_vm0, %v1154_v42  ;;  %v4126_v23 = vpop.f32.mrb[30].mxu0 }
 0x1e2   :  { %v1215_v35 = vld [vmem:[#allocation2 + $0xd0] sm:$0xff]  ;;  %1185 = vst.msk [vmem:[#allocation2 + $0xe0] sm:$0xff] %vm778_vm0, %v1153_v40  ;;  %v1122_v25 = vadd.f32 %v4126_v23, %v6170_v28  ;;  %v1116_v22 = vpop.f32.mrb[31].mxu0 }
 0x1e3   :  { %v1244_v58 = vld [vmem:[#allocation2 + $0xc9] sm:$0xff]  ;;  %1393 = vst.msk [vmem:[#allocation3 + $0xb0] sm:$0xff] %vm778_vm0, %v1363_v60  ;;  %v1304_v21 = vld [vmem:[#allocation2 + $0xd7] sm:$0xff]  ;;  %v1117_v18 = vadd.f32 %v6170_v28, %v1116_v22 }
 0x1e4   :  { %v1274_v46 = vmax.f32 %v1214_v20, %v1244_v58  ;;  %v1303_v50 = vld [vmem:[#allocation2 + $0xcf] sm:$0xff]  ;;  %v1336_v36 = vmax.f32 %v1304_v21, %v1216_v33  ;;  %v1156_v17 = vmax.f32 %v1122_v25, 0.0 }
 0x1e5   :  { %v1335_v19 = vmax.f32 %v1303_v50, %v1215_v35  ;;  %v1155_v27 = vmax.f32 %v1117_v18, 0.0 }
 0x1e6   :  { %v1366_v49 = vmax.f32 %v1274_v46, %v1336_v36  ;;  %1188 = vst.msk [vmem:[#allocation2 + $0xf8] sm:$0xff] %vm778_vm0, %v1156_v17 }
 0x1e7   :  { %v1365_v37 = vmax.f32 %v1273_v61, %v1335_v19  ;;  %1187 = vst.msk [vmem:[#allocation2 + $0xf0] sm:$0xff] %vm778_vm0, %v1155_v27 }
 0x1e8   :  { %1396 = vst.msk [vmem:[#allocation3 + $0xc8] sm:$0xff] %vm778_vm0, %v1366_v49  ;;  %v1218_v31 = vld [vmem:[#allocation2 + $0xe8] sm:$0xff] }
 0x1e9   :  { %1395 = vst.msk [vmem:[#allocation3 + $0xc0] sm:$0xff] %vm778_vm0, %v1365_v37  ;;  %v1217_v57 = vld [vmem:[#allocation2 + $0xe0] sm:$0xff] }
 0x1ea   :  { %v1417_v16 = vld [vmem:[#allocation3 + $0xa5] ss:$2 sm:$0x7f] }
 0x1eb   :  { %1418 = vst.msk [vmem:[#allocation4 + $0x23] sm:$0x7f] %vm1402_vm3, %v1417_v16  ;;  %v1247_v28 = vld [vmem:[#allocation2 + $0xe1] sm:$0xff] }
 0x1ec   :  { %v1277_v53 = vmax.f32 %v1217_v57, %v1247_v28 }
 0x1ed   :  { %v1310_v55 = vld [vmem:[#allocation2 + $0xf8] sm:$0xff] }
 0x1ee   :  { %v1248_v0 = vld [vmem:[#allocation2 + $0xe9] sm:$0xff]  ;;  %v1308_v30 = vld [vmem:[#allocation2 + $0xf7] sm:$0xff] }
 0x1ef   :  { %v1307_v29 = vld [vmem:[#allocation2 + $0xef] sm:$0xff]  ;;  %v1278_v34 = vmax.f32 %v1218_v31, %v1248_v0  ;;  %v1340_v56 = vmax.f32 %v1308_v30, %v1310_v55 }
 0x1f0   :  { %v1420_v32 = vld [vmem:[#allocation3 + $0xc3] ss:$2 sm:$0x7f]  ;;  %v1309_v54 = vld [vmem:[#allocation2 + $0xf0] sm:$0xff] }
 0x1f1   :  { %1421 = vst.msk [vmem:[#allocation4 + $0x2a] sm:$0x7f] %vm1402_vm3, %v1420_v32  ;;  %v1339_v14 = vmax.f32 %v1307_v29, %v1309_v54  ;;  %v1370_v13 = vmax.f32 %v1278_v34, %v1340_v56 }
 0x1f3   :  { %v1369_v62 = vmax.f32 %v1277_v53, %v1339_v14  ;;  %1400 = vst.msk [vmem:[#allocation3 + $0xe8] sm:$0xff] %vm778_vm0, %v1370_v13 }
 0x1f5   :  { %1399 = vst.msk [vmem:[#allocation3 + $0xe0] sm:$0xff] %vm778_vm0, %v1369_v62 }
 0x1fc   :  { %v1423_v48 = vld [vmem:[#allocation3 + $0xe1] ss:$2 sm:$0x7f] }
 0x1fd   :  { %1424 = vst.msk [vmem:[#allocation4 + $0x31] sm:$0x7f] %vm1402_vm3, %v1423_v48 }
 0x1fe   :  { %4940 = dma.done.wait [#allocation6], 14336 }
 0x1ff   :  { %4941 = vsyncadd [#allocation6], 4294952960  ;;  %v4509_v24 = vpack.c.bf16 %v5009_v2, %v5004_v1  ;;  %v4503_v26 = vpack.c.bf16 %v5029_v6, %v5024_v5  ;;  %v4945_v44 = vmov 0.0|0.0   ;;  %v4512_v63 = vpack.c.bf16 %v5019_v4, %v5014_v3  ;;  %v1428_v3 = vld [vmem:[#allocation4] ss:$28 sm:$0x3] }
 0x200   :  { %4508 = vmatprep.subr.bf16.mxu1 %v4945_v44  ;;  %4502 = vmatprep.subr.bf16.mxu0 %v4945_v44  ;;  %v4506_v59 = vpack.c.bf16 %v5039_v8, %v5034_v7  ;;  %vm4946_vm4 = vmmov 0   ;;  %v4947_v1 = vmov 0.0   ;;  %v4515_v2 = vpack.c.bf16 %v5049_v10, %v5044_v9  ;;  %v1434_v4 = vld [vmem:[#allocation4 + $0x1] ss:$28 sm:$0x3]  ;;  %v6697_v5 = vld [vmem:[#allocation44_spill] sm:$0xff] }
 0x201   :  { %4510 = vmatpush3.bf16.msra.mxu1 %v4509_v24  ;;  %4504 = vmatpush3.bf16.msra.mxu0 %v4503_v26  ;;  %v4569_v6 = vpack.c.bf16 %v6697_v5, %v5224_v45  ;;  %v6698_v7 = vld [vmem:[#allocation10_spill] sm:$0xff]  ;;  %v6699_v8 = vld [vmem:[#allocation11_spill] sm:$0xff]  ;;  %v6700_v9 = vld [vmem:[#allocation45_spill] sm:$0xff]  ;;  %vm3776_vm5 = vcmask 189440   ;;  %vm3788_vm6 = vcmask 1024  }
 0x202   :  { %4511 = vmatprep.subr.bf16.mxu1 %v4945_v44  ;;  %4505 = vmatprep.subr.bf16.mxu0 %v4945_v44  ;;  %v4518_v20 = vpack.c.bf16 %v6699_v8, %v6698_v7  ;;  %v6701_v10 = vld [vmem:[#allocation46_spill] sm:$0xff]  ;;  %v6702_v52 = vld [vmem:[#allocation12_spill] sm:$0xff]  ;;  %v6703_v47 = vld [vmem:[#allocation13_spill] sm:$0xff] }
 0x203   :  { %4146 = vmatprep.mubr.msk.f32.mxu1 %vm4946_vm4, %v4947_v1  ;;  %4135 = vmatprep.mubr.msk.f32.mxu0 %vm4946_vm4, %v4947_v1  ;;  %v4572_v11 = vpack.c.bf16 %v6701_v10, %v6700_v9  ;;  %v1586_v45 = vld [vmem:[#allocation4 + $0x2] ss:$28 sm:$0x3]  ;;  %v4521_v15 = vpack.c.bf16 %v6703_v47, %v6702_v52  ;;  %v2306_v38 = vld [vmem:[#allocation4 + $0xb] ss:$28 sm:$0x3] }
 0x204   :  { %v6704_v41 = vld [vmem:[#allocation51_spill] sm:$0xff]  ;;  %v6705_v51 = vld [vmem:[#allocation52_spill] sm:$0xff]  ;;  %v6706_v43 = vld [vmem:[#allocation14_spill] sm:$0xff] }
 0x205   :  { %4513 = vmatpush3.bf16.msra.mxu1 %v4512_v63  ;;  %4507 = vmatpush3.bf16.msra.mxu0 %v4506_v59  ;;  %v4581_v39 = vpack.c.bf16 %v6705_v51, %v6704_v41  ;;  %v6707_v42 = vld [vmem:[#allocation15_spill] sm:$0xff]  ;;  %v6708_v12 = vld [vmem:[#allocation53_spill] sm:$0xff]  ;;  %v6709_v60 = vld [vmem:[#allocation54_spill] sm:$0xff] }
 0x206   :  { %4514 = vmatprep.subr.bf16.mxu1 %v4945_v44  ;;  %4568 = vmatprep.subr.bf16.mxu0 %v4945_v44  ;;  %v4524_v40 = vpack.c.bf16 %v6707_v42, %v6706_v43  ;;  %v4584_v33 = vpack.c.bf16 %v6709_v60, %v6708_v12  ;;  %v1666_v23 = vld [vmem:[#allocation4 + $0x3] ss:$28 sm:$0x3]  ;;  %v6710_v35 = vld [vmem:[#allocation16_spill] sm:$0xff]  ;;  %v6711_v58 = vld [vmem:[#allocation17_spill] sm:$0xff] }
 0x207   :  { %v4527_v25 = vpack.c.bf16 %v6711_v58, %v6710_v35  ;;  %v2466_v22 = vld [vmem:[#allocation4 + $0xd] ss:$28 sm:$0x3]  ;;  %v6712_v46 = vld [vmem:[#allocation59_spill] sm:$0xff]  ;;  %v6714_v18 = vld [vmem:[#allocation18_spill] sm:$0xff] }
 0x208   :  { %4147 = vmatmul.mubr.msk.f32.vlgmr.msra.gmra.mrb[0].mxu1 %vm778_vm0, %v1428_v3  ;;  %4136 = vmatmul.mubr.msk.f32.vlgmr.msra.gmra.mrb[32].mxu0 %vm778_vm0, %v1434_v4  ;;  %v6713_v50 = vld [vmem:[#allocation60_spill] sm:$0xff]  ;;  %v6715_v61 = vld [vmem:[#allocation19_spill] sm:$0xff]  ;;  %v6716_v36 = vld [vmem:[#allocation61_spill] sm:$0xff] }
 0x209   :  { %4516 = vmatpush3.bf16.msra.mxu1 %v4515_v2  ;;  %4157 = vmatprep.mubr.msk.f32.mxu1 %vm4946_vm4, %v4947_v1  ;;  %v4593_v21 = vpack.c.bf16 %v6713_v50, %v6712_v46  ;;  %v4530_v19 = vpack.c.bf16 %v6715_v61, %v6714_v18  ;;  %v6717_v17 = vld [vmem:[#allocation62_spill] sm:$0xff]  ;;  %v6718_v49 = vld [vmem:[#allocation20_spill] sm:$0xff]  ;;  %v6719_v31 = vld [vmem:[#allocation21_spill] sm:$0xff] }
 0x20a   :  { %4517 = vmatprep.subr.bf16.mxu1 %v4945_v44  ;;  %4570 = vmatpush3.bf16.msra.mxu0 %v4569_v6  ;;  %v4596_v27 = vpack.c.bf16 %v6717_v17, %v6716_v36  ;;  %v1746_v37 = vld [vmem:[#allocation4 + $0x4] ss:$28 sm:$0x3]  ;;  %v4533_v57 = vpack.c.bf16 %v6719_v31, %v6718_v49  ;;  %v2626_v16 = vld [vmem:[#allocation4 + $0xf] ss:$28 sm:$0x3] }
 0x20b   :  { %4571 = vmatprep.subr.bf16.mxu0 %v4945_v44  ;;  %4256 = vmatprep.mubr.msk.f32.mxu0 %vm4946_vm4, %v4947_v1  ;;  %v6720_v28 = vld [vmem:[#allocation67_spill] sm:$0xff]  ;;  %v6721_v55 = vld [vmem:[#allocation68_spill] sm:$0xff]  ;;  %v6722_v29 = vld [vmem:[#allocation22_spill] sm:$0xff] }
 0x20c   :  { %v4605_v0 = vpack.c.bf16 %v6721_v55, %v6720_v28  ;;  %v6723_v30 = vld [vmem:[#allocation23_spill] sm:$0xff]  ;;  %v6724_v34 = vld [vmem:[#allocation69_spill] sm:$0xff]  ;;  %v6725_v54 = vld [vmem:[#allocation70_spill] sm:$0xff] }
 0x20d   :  { %4519 = vmatpush3.bf16.msra.mxu1 %v4518_v20  ;;  %v4536_v32 = vpack.c.bf16 %v6723_v30, %v6722_v29  ;;  %v4608_v56 = vpack.c.bf16 %v6725_v54, %v6724_v34  ;;  %v1826_v53 = vld [vmem:[#allocation4 + $0x5] ss:$28 sm:$0x3]  ;;  %v6726_v14 = vld [vmem:[#allocation24_spill] sm:$0xff]  ;;  %v6727_v13 = vld [vmem:[#allocation25_spill] sm:$0xff] }
 0x20e   :  { %4520 = vmatprep.subr.bf16.mxu1 %v4945_v44  ;;  %4573 = vmatpush3.bf16.msra.mxu0 %v4572_v11  ;;  %v4539_v62 = vpack.c.bf16 %v6727_v13, %v6726_v14  ;;  %v2786_v48 = vld [vmem:[#allocation4 + $0x11] ss:$28 sm:$0x3]  ;;  %v6728_v24 = vld [vmem:[#allocation75_spill] sm:$0xff]  ;;  %v6730_v59 = vld [vmem:[#allocation26_spill] sm:$0xff] }
 0x20f   :  { %4580 = vmatprep.subr.bf16.mxu0 %v4945_v44  ;;  %v6729_v26 = vld [vmem:[#allocation76_spill] sm:$0xff]  ;;  %v6731_v2 = vld [vmem:[#allocation27_spill] sm:$0xff]  ;;  %v6732_v4 = vld [vmem:[#allocation77_spill] sm:$0xff] }
 0x210   :  { %4158 = vmatmul.mubr.msk.f32.vlgmr.msra.gmra.mrb[2].mxu1 %vm778_vm0, %v1586_v45  ;;  %v4617_v63 = vpack.c.bf16 %v6729_v26, %v6728_v24  ;;  %v4542_v3 = vpack.c.bf16 %v6731_v2, %v6730_v59  ;;  %v6733_v5 = vld [vmem:[#allocation78_spill] sm:$0xff]  ;;  %v1906_v7 = vld [vmem:[#allocation4 + $0x6] ss:$28 sm:$0x3]  ;;  %v6734_v8 = vld [vmem:[#allocation28_spill] sm:$0xff] }
 0x211   :  { %4522 = vmatpush3.bf16.msra.mxu1 %v4521_v15  ;;  %4168 = vmatprep.mubr.msk.f32.mxu1 %vm4946_vm4, %v4947_v1  ;;  %v4620_v6 = vpack.c.bf16 %v6733_v5, %v6732_v4  ;;  %v6735_v20 = vld [vmem:[#allocation29_spill] sm:$0xff]  ;;  %v6736_v11 = vld [vmem:[#allocation83_spill] sm:$0xff]  ;;  %v6737_v45 = vld [vmem:[#allocation84_spill] sm:$0xff] }
 0x212   :  { %4523 = vmatprep.subr.bf16.mxu1 %v4945_v44  ;;  %4257 = vmatmul.mubr.msk.f32.vlgmr.msra.gmra.mrb[34].mxu0 %vm778_vm0, %v2306_v38  ;;  %v4545_v9 = vpack.c.bf16 %v6735_v20, %v6734_v8  ;;  %v2946_v10 = vld [vmem:[#allocation4 + $0x13] ss:$28 sm:$0x3]  ;;  %v4629_v52 = vpack.c.bf16 %v6737_v45, %v6736_v11  ;;  %v6738_v47 = vld [vmem:[#allocation30_spill] sm:$0xff]  ;;  %v6739_v15 = vld [vmem:[#allocation31_spill] sm:$0xff] }
 0x213   :  { %4582 = vmatpush3.bf16.msra.mxu0 %v4581_v39  ;;  %4278 = vmatprep.mubr.msk.f32.mxu0 %vm4946_vm4, %v4947_v1  ;;  %v4548_v38 = vpack.c.bf16 %v6739_v15, %v6738_v47  ;;  %v6740_v41 = vld [vmem:[#allocation85_spill] sm:$0xff]  ;;  %v6741_v51 = vld [vmem:[#allocation86_spill] sm:$0xff]  ;;  %v1986_v43 = vld [vmem:[#allocation4 + $0x7] ss:$28 sm:$0x3] }
 0x214   :  { %4583 = vmatprep.subr.bf16.mxu0 %v4945_v44  ;;  %v4632_v39 = vpack.c.bf16 %v6741_v51, %v6740_v41  ;;  %v6742_v42 = vld [vmem:[#allocation32_spill] sm:$0xff]  ;;  %v3106_v60 = vld [vmem:[#allocation4 + $0x15] ss:$28 sm:$0x3]  ;;  %v6746_v58 = vld [vmem:[#allocation34_spill] sm:$0xff] }
 0x215   :  { %4525 = vmatpush3.bf16.msra.mxu1 %v4524_v40  ;;  %v6743_v40 = vld [vmem:[#allocation33_spill] sm:$0xff]  ;;  %v6749_v50 = vld [vmem:[#allocation94_spill] sm:$0xff]  ;;  %v2066_v18 = vld [vmem:[#allocation4 + $0x8] ss:$28 sm:$0x3] }
 0x216   :  { %4526 = vmatprep.subr.bf16.mxu1 %v4945_v44  ;;  %v4551_v12 = vpack.c.bf16 %v6743_v40, %v6742_v42  ;;  %v6748_v46 = vld [vmem:[#allocation93_spill] sm:$0xff]  ;;  %v6750_v61 = vld [vmem:[#allocation36_spill] sm:$0xff]  ;;  %v6754_v31 = vld [vmem:[#allocation38_spill] sm:$0xff] }
 0x217   :  { %4585 = vmatpush3.bf16.msra.mxu0 %v4584_v33  ;;  %v6744_v33 = vld [vmem:[#allocation91_spill] sm:$0xff]  ;;  %v3266_v17 = vld [vmem:[#allocation4 + $0x17] ss:$28 sm:$0x3]  ;;  %v6757_v55 = vld [vmem:[#allocation102_spill] sm:$0xff] }
 0x218   :  { %4169 = vmatmul.mubr.msk.f32.vlgmr.msra.gmra.mrb[4].mxu1 %vm778_vm0, %v1666_v23  ;;  %4592 = vmatprep.subr.bf16.mxu0 %v4945_v44  ;;  %v6745_v23 = vld [vmem:[#allocation92_spill] sm:$0xff]  ;;  %v6756_v28 = vld [vmem:[#allocation101_spill] sm:$0xff]  ;;  %v6762_v13 = vld [vmem:[#allocation42_spill] sm:$0xff] }
 0x219   :  { %4528 = vmatpush3.bf16.msra.mxu1 %v4527_v25  ;;  %4179 = vmatprep.mubr.msk.f32.mxu1 %vm4946_vm4, %v4947_v1  ;;  %v4641_v35 = vpack.c.bf16 %v6745_v23, %v6744_v33  ;;  %v6747_v25 = vld [vmem:[#allocation35_spill] sm:$0xff]  ;;  %v6758_v30 = vld [vmem:[#allocation40_spill] sm:$0xff]  ;;  %v3426_v54 = vld [vmem:[#allocation4 + $0x19] ss:$28 sm:$0x3] }
 0x21a   :  { %4529 = vmatprep.subr.bf16.mxu1 %v4945_v44  ;;  %4279 = vmatmul.mubr.msk.f32.vlgmr.msra.gmra.mrb[36].mxu0 %vm778_vm0, %v2466_v22  ;;  %v4554_v22 = vpack.c.bf16 %v6747_v25, %v6746_v58  ;;  %v2146_v29 = vld [vmem:[#allocation4 + $0x9] ss:$28 sm:$0x3]  ;;  %v6764_v24 = vld [vmem:[#allocation109_spill] sm:$0xff]  ;;  %v6765_v26 = vld [vmem:[#allocation110_spill] sm:$0xff] }
 0x21b   :  { %4594 = vmatpush3.bf16.msra.mxu0 %v4593_v21  ;;  %4300 = vmatprep.mubr.msk.f32.mxu0 %vm4946_vm4, %v4947_v1  ;;  %v4644_v21 = vpack.c.bf16 %v6749_v50, %v6748_v46  ;;  %v2226_v59 = vld [vmem:[#allocation4 + $0xa] ss:$28 sm:$0x3]  ;;  %v3586_v5 = vld [vmem:[#allocation4 + $0x1b] ss:$28 sm:$0x3] }
 0x21c   :  { %4595 = vmatprep.subr.bf16.mxu0 %v4945_v44  ;;  %v6766_v2 = vld [vmem:[#allocation47_spill] sm:$0xff]  ;;  %v6772_v45 = vld [vmem:[#allocation57_spill] sm:$0xff]  ;;  %v2546_v15 = vld [vmem:[#allocation4 + $0xe] ss:$28 sm:$0x3] }
 0x21d   :  { %4531 = vmatpush3.bf16.msra.mxu1 %v4530_v19  ;;  %v6751_v19 = vld [vmem:[#allocation37_spill] sm:$0xff]  ;;  %v2386_v20 = vld [vmem:[#allocation4 + $0xc] ss:$28 sm:$0x3] }
 0x21e   :  { %4532 = vmatprep.subr.bf16.mxu1 %v4945_v44  ;;  %v4557_v36 = vpack.c.bf16 %v6751_v19, %v6750_v61  ;;  %v6775_v41 = vld [vmem:[#allocation64_spill] sm:$0xff]  ;;  %v6780_v23 = vld [vmem:[#allocation73_spill] sm:$0xff] }
 0x21f   :  { %4597 = vmatpush3.bf16.msra.mxu0 %v4596_v27  ;;  %v6752_v27 = vld [vmem:[#allocation99_spill] sm:$0xff]  ;;  %v2706_v40 = vld [vmem:[#allocation4 + $0x10] ss:$28 sm:$0x3] }
 0x220   :  { %4180 = vmatmul.mubr.msk.f32.vlgmr.msra.gmra.mrb[6].mxu1 %vm778_vm0, %v1746_v37  ;;  %4604 = vmatprep.subr.bf16.mxu0 %v4945_v44  ;;  %v6753_v37 = vld [vmem:[#allocation100_spill] sm:$0xff] }
 0x221   :  { %4534 = vmatpush3.bf16.msra.mxu1 %v4533_v57  ;;  %4190 = vmatprep.mubr.msk.f32.mxu1 %vm4946_vm4, %v4947_v1  ;;  %v4653_v49 = vpack.c.bf16 %v6753_v37, %v6752_v27  ;;  %v6755_v57 = vld [vmem:[#allocation39_spill] sm:$0xff]  ;;  %v2866_v25 = vld [vmem:[#allocation4 + $0x12] ss:$28 sm:$0x3] }
 0x222   :  { %4535 = vmatprep.subr.bf16.mxu1 %v4945_v44  ;;  %4301 = vmatmul.mubr.msk.f32.vlgmr.msra.gmra.mrb[38].mxu0 %vm778_vm0, %v2626_v16  ;;  %v4560_v16 = vpack.c.bf16 %v6755_v57, %v6754_v31  ;;  %v6783_v46 = vld [vmem:[#allocation80_spill] sm:$0xff]  ;;  %v6788_v37 = vld [vmem:[#allocation89_spill] sm:$0xff] }
 0x223   :  { %4606 = vmatpush3.bf16.msra.mxu0 %v4605_v0  ;;  %4322 = vmatprep.mubr.msk.f32.mxu0 %vm4946_vm4, %v4947_v1  ;;  %v4656_v0 = vpack.c.bf16 %v6757_v55, %v6756_v28  ;;  %v3026_v19 = vld [vmem:[#allocation4 + $0x14] ss:$28 sm:$0x3]  ;;  %v3186_v57 = vld [vmem:[#allocation4 + $0x16] ss:$28 sm:$0x3] }
 0x224   :  { %4607 = vmatprep.subr.bf16.mxu0 %v4945_v44  ;;  %v6791_v28 = vld [vmem:[#allocation96_spill] sm:$0xff] }
 0x225   :  { %4537 = vmatpush3.bf16.msra.mxu1 %v4536_v32  ;;  %v6759_v32 = vld [vmem:[#allocation41_spill] sm:$0xff] }
 0x226   :  { %4538 = vmatprep.subr.bf16.mxu1 %v4945_v44  ;;  %v4563_v34 = vpack.c.bf16 %v6759_v32, %v6758_v30  ;;  %v3346_v32 = vld [vmem:[#allocation4 + $0x18] ss:$28 sm:$0x3] }
 0x227   :  { %4609 = vmatpush3.bf16.msra.mxu0 %v4608_v56  ;;  %v6760_v56 = vld [vmem:[#allocation107_spill] sm:$0xff] }
 0x228   :  { %4191 = vmatmul.mubr.msk.f32.vlgmr.msra.gmra.mrb[8].mxu1 %vm778_vm0, %v1826_v53  ;;  %4616 = vmatprep.subr.bf16.mxu0 %v4945_v44  ;;  %v6761_v53 = vld [vmem:[#allocation108_spill] sm:$0xff] }
 0x229   :  { %4540 = vmatpush3.bf16.msra.mxu1 %v4539_v62  ;;  %4201 = vmatprep.mubr.msk.f32.mxu1 %vm4946_vm4, %v4947_v1  ;;  %v4665_v14 = vpack.c.bf16 %v6761_v53, %v6760_v56  ;;  %v6763_v62 = vld [vmem:[#allocation43_spill] sm:$0xff]  ;;  %v6796_v53 = vld [vmem:[#allocation105_spill] sm:$0xff] }
 0x22a   :  { %4541 = vmatprep.subr.bf16.mxu1 %v4945_v44  ;;  %4323 = vmatmul.mubr.msk.f32.vlgmr.msra.gmra.mrb[40].mxu0 %vm778_vm0, %v2786_v48  ;;  %v4566_v48 = vpack.c.bf16 %v6763_v62, %v6762_v13  ;;  %v3506_v62 = vld [vmem:[#allocation4 + $0x1a] ss:$28 sm:$0x3] }
 0x22b   :  { %4618 = vmatpush3.bf16.msra.mxu0 %v4617_v63  ;;  %4344 = vmatprep.mubr.msk.f32.mxu0 %vm4946_vm4, %v4947_v1  ;;  %v4668_v63 = vpack.c.bf16 %v6765_v26, %v6764_v24  ;;  %v3675_v24 = vld [vmem:[%s6591_s5 + $0x8] sm:$0xff] }
 0x22c   :  { %4619 = vmatprep.subr.bf16.mxu0 %v4945_v44 }
 0x22d   :  { %4543 = vmatpush3.bf16.msra.mxu1 %v4542_v3  ;;  %v6767_v3 = vld [vmem:[#allocation48_spill] sm:$0xff] }
 0x22e   :  { %4544 = vmatprep.subr.bf16.mxu1 %v4945_v44  ;;  %v4575_v4 = vpack.c.bf16 %v6767_v3, %v6766_v2  ;;  %v3678_v2 = vld [vmem:[%s6591_s5 + $0x20] sm:$0xff]  ;;  %v3679_v3 = vld [vmem:[%s6591_s5 + $0x28] sm:$0xff] }
 0x22f   :  { %4621 = vmatpush3.bf16.msra.mxu0 %v4620_v6  ;;  %v6768_v6 = vld [vmem:[#allocation49_spill] sm:$0xff] }
 0x230   :  { %4202 = vmatmul.mubr.msk.f32.vlgmr.msra.gmra.mrb[10].mxu1 %vm778_vm0, %v1906_v7  ;;  %4628 = vmatprep.subr.bf16.mxu0 %v4945_v44  ;;  %v6769_v7 = vld [vmem:[#allocation50_spill] sm:$0xff] }
 0x231   :  { %4546 = vmatpush3.bf16.msra.mxu1 %v4545_v9  ;;  %4212 = vmatprep.mubr.msk.f32.mxu1 %vm4946_vm4, %v4947_v1  ;;  %v4578_v8 = vpack.c.bf16 %v6769_v7, %v6768_v6  ;;  %v6770_v9 = vld [vmem:[#allocation55_spill] sm:$0xff] }
 0x232   :  { %4547 = vmatprep.subr.bf16.mxu1 %v4945_v44  ;;  %4345 = vmatmul.mubr.msk.f32.vlgmr.msra.gmra.mrb[42].mxu0 %vm778_vm0, %v2946_v10  ;;  %v6771_v10 = vld [vmem:[#allocation56_spill] sm:$0xff] }
 0x233   :  { %4630 = vmatpush3.bf16.msra.mxu0 %v4629_v52  ;;  %4366 = vmatprep.mubr.msk.f32.mxu0 %vm4946_vm4, %v4947_v1  ;;  %v4587_v11 = vpack.c.bf16 %v6771_v10, %v6770_v9  ;;  %v6773_v52 = vld [vmem:[#allocation58_spill] sm:$0xff]  ;;  %v3681_v6 = vld [vmem:[%s6591_s5 + $0x38] sm:$0xff] }
 0x234   :  { %4631 = vmatprep.subr.bf16.mxu0 %v4945_v44  ;;  %v4590_v47 = vpack.c.bf16 %v6773_v52, %v6772_v45 }
 0x235   :  { %4549 = vmatpush3.bf16.msra.mxu1 %v4548_v38  ;;  %v6774_v38 = vld [vmem:[#allocation63_spill] sm:$0xff] }
 0x236   :  { %4550 = vmatprep.subr.bf16.mxu1 %v4945_v44  ;;  %v4599_v51 = vpack.c.bf16 %v6775_v41, %v6774_v38  ;;  %v3685_v38 = vld [vmem:[%s6591_s5 + $0x58] sm:$0xff] }
 0x237   :  { %4633 = vmatpush3.bf16.msra.mxu0 %v4632_v39  ;;  %v6776_v39 = vld [vmem:[#allocation65_spill] sm:$0xff] }
 0x238   :  { %4213 = vmatmul.mubr.msk.f32.vlgmr.msra.gmra.mrb[12].mxu1 %vm778_vm0, %v1986_v43  ;;  %4640 = vmatprep.subr.bf16.mxu0 %v4945_v44  ;;  %v6777_v43 = vld [vmem:[#allocation66_spill] sm:$0xff] }
 0x239   :  { %4552 = vmatpush3.bf16.msra.mxu1 %v4551_v12  ;;  %4223 = vmatprep.mubr.msk.f32.mxu1 %vm4946_vm4, %v4947_v1  ;;  %v4602_v42 = vpack.c.bf16 %v6777_v43, %v6776_v39  ;;  %v6778_v12 = vld [vmem:[#allocation71_spill] sm:$0xff]  ;;  %v3687_v39 = vld [vmem:[%s6591_s5 + $0x68] sm:$0xff] }
 0x23a   :  { %4553 = vmatprep.subr.bf16.mxu1 %v4945_v44  ;;  %4367 = vmatmul.mubr.msk.f32.vlgmr.msra.gmra.mrb[44].mxu0 %vm778_vm0, %v3106_v60  ;;  %v6779_v60 = vld [vmem:[#allocation72_spill] sm:$0xff] }
 0x23b   :  { %4642 = vmatpush3.bf16.msra.mxu0 %v4641_v35  ;;  %4388 = vmatprep.mubr.msk.f32.mxu0 %vm4946_vm4, %v4947_v1  ;;  %v4611_v33 = vpack.c.bf16 %v6779_v60, %v6778_v12  ;;  %v6781_v35 = vld [vmem:[#allocation74_spill] sm:$0xff] }
 0x23c   :  { %4643 = vmatprep.subr.bf16.mxu0 %v4945_v44  ;;  %v4614_v58 = vpack.c.bf16 %v6781_v35, %v6780_v23  ;;  %v3688_v23 = vld [vmem:[%s6591_s5 + $0x70] sm:$0xff]  ;;  %v3689_v35 = vld [vmem:[%s6591_s5 + $0x78] sm:$0xff] }
 0x23d   :  { %4555 = vmatpush3.bf16.msra.mxu1 %v4554_v22  ;;  %v6782_v22 = vld [vmem:[#allocation79_spill] sm:$0xff] }
 0x23e   :  { %4556 = vmatprep.subr.bf16.mxu1 %v4945_v44  ;;  %v4623_v50 = vpack.c.bf16 %v6783_v46, %v6782_v22 }
 0x23f   :  { %4645 = vmatpush3.bf16.msra.mxu0 %v4644_v21  ;;  %v6784_v21 = vld [vmem:[#allocation81_spill] sm:$0xff] }
 0x240   :  { %4224 = vmatmul.mubr.msk.f32.vlgmr.msra.gmra.mrb[14].mxu1 %vm778_vm0, %v2066_v18  ;;  %4652 = vmatprep.subr.bf16.mxu0 %v4945_v44  ;;  %v6785_v18 = vld [vmem:[#allocation82_spill] sm:$0xff] }
 0x241   :  { %4558 = vmatpush3.bf16.msra.mxu1 %v4557_v36  ;;  %4234 = vmatprep.mubr.msk.f32.mxu1 %vm4946_vm4, %v4947_v1  ;;  %v4626_v61 = vpack.c.bf16 %v6785_v18, %v6784_v21  ;;  %v6786_v36 = vld [vmem:[#allocation87_spill] sm:$0xff] }
 0x242   :  { %4559 = vmatprep.subr.bf16.mxu1 %v4945_v44  ;;  %4389 = vmatmul.mubr.msk.f32.vlgmr.msra.gmra.mrb[46].mxu0 %vm778_vm0, %v3266_v17  ;;  %v6787_v17 = vld [vmem:[#allocation88_spill] sm:$0xff] }
 0x243   :  { %4654 = vmatpush3.bf16.msra.mxu0 %v4653_v49  ;;  %4410 = vmatprep.mubr.msk.f32.mxu0 %vm4946_vm4, %v4947_v1  ;;  %v4635_v27 = vpack.c.bf16 %v6787_v17, %v6786_v36  ;;  %v6789_v49 = vld [vmem:[#allocation90_spill] sm:$0xff] }
 0x244   :  { %4655 = vmatprep.subr.bf16.mxu0 %v4945_v44  ;;  %v4638_v31 = vpack.c.bf16 %v6789_v49, %v6788_v37 }
 0x245   :  { %4561 = vmatpush3.bf16.msra.mxu1 %v4560_v16  ;;  %v6790_v16 = vld [vmem:[#allocation95_spill] sm:$0xff] }
 0x246   :  { %4562 = vmatprep.subr.bf16.mxu1 %v4945_v44  ;;  %v4647_v55 = vpack.c.bf16 %v6791_v28, %v6790_v16 }
 0x247   :  { %4657 = vmatpush3.bf16.msra.mxu0 %v4656_v0  ;;  %v6792_v0 = vld [vmem:[#allocation97_spill] sm:$0xff] }
 0x248   :  { %4235 = vmatmul.mubr.msk.f32.vlgmr.msra.gmra.mrb[16].mxu1 %vm778_vm0, %v2146_v29  ;;  %4664 = vmatprep.subr.bf16.mxu0 %v4945_v44  ;;  %v6793_v29 = vld [vmem:[#allocation98_spill] sm:$0xff] }
 0x249   :  { %4564 = vmatpush3.bf16.msra.mxu1 %v4563_v34  ;;  %4245 = vmatprep.mubr.msk.f32.mxu1 %vm4946_vm4, %v4947_v1  ;;  %v4650_v30 = vpack.c.bf16 %v6793_v29, %v6792_v0  ;;  %v6794_v34 = vld [vmem:[#allocation103_spill] sm:$0xff] }
 0x24a   :  { %4565 = vmatprep.subr.bf16.mxu1 %v4945_v44  ;;  %4411 = vmatmul.mubr.msk.f32.vlgmr.msra.gmra.mrb[48].mxu0 %vm778_vm0, %v3426_v54  ;;  %v6795_v54 = vld [vmem:[#allocation104_spill] sm:$0xff] }
 0x24b   :  { %4666 = vmatpush3.bf16.msra.mxu0 %v4665_v14  ;;  %4432 = vmatprep.mubr.msk.f32.mxu0 %vm4946_vm4, %v4947_v1  ;;  %v4659_v56 = vpack.c.bf16 %v6795_v54, %v6794_v34  ;;  %v6797_v14 = vld [vmem:[#allocation106_spill] sm:$0xff] }
 0x24c   :  { %4667 = vmatprep.subr.bf16.mxu0 %v4945_v44  ;;  %v4662_v13 = vpack.c.bf16 %v6797_v14, %v6796_v53 }
 0x24d   :  { %4567 = vmatpush3.bf16.msra.mxu1 %v4566_v48  ;;  %v3674_v48 = vld [vmem:[%s6591_s5] sm:$0xff] }
 0x24e   :  { %4574 = vmatprep.subr.bf16.mxu1 %v4945_v44  ;;  %v4671_v26 = vpack.c.bf16 %v3675_v24, %v3674_v48 }
 0x24f   :  { %4669 = vmatpush3.bf16.msra.mxu0 %v4668_v63  ;;  %v3676_v63 = vld [vmem:[%s6591_s5 + $0x10] sm:$0xff] }
 0x250   :  { %4246 = vmatmul.mubr.msk.f32.vlgmr.msra.gmra.mrb[18].mxu1 %vm778_vm0, %v2226_v59 }
 0x251   :  { %4576 = vmatpush3.bf16.msra.mxu1 %v4575_v4  ;;  %4267 = vmatprep.mubr.msk.f32.mxu1 %vm4946_vm4, %v4947_v1  ;;  %v4677_v4 = vpack.c.bf16 %v3679_v3, %v3678_v2 }
 0x252   :  { %4577 = vmatprep.subr.bf16.mxu1 %v4945_v44  ;;  %4433 = vmatmul.mubr.msk.f32.vlgmr.msra.gmra.mrb[50].mxu0 %vm778_vm0, %v3586_v5  ;;  %v3680_v5 = vld [vmem:[%s6591_s5 + $0x30] sm:$0xff] }
 0x253   :  { %v4680_v7 = vpack.c.bf16 %v3681_v6, %v3680_v5 }
 0x255   :  { %4579 = vmatpush3.bf16.msra.mxu1 %v4578_v8  ;;  %v3682_v8 = vld [vmem:[%s6591_s5 + $0x40] sm:$0xff] }
 0x256   :  { %4586 = vmatprep.subr.bf16.mxu1 %v4945_v44 }
 0x258   :  { %4268 = vmatmul.mubr.msk.f32.vlgmr.msra.gmra.mrb[20].mxu1 %vm778_vm0, %v2386_v20  ;;  %v3683_v20 = vld [vmem:[%s6591_s5 + $0x48] sm:$0xff] }
 0x259   :  { %4588 = vmatpush3.bf16.msra.mxu1 %v4587_v11  ;;  %4289 = vmatprep.mubr.msk.f32.mxu1 %vm4946_vm4, %v4947_v1  ;;  %v4683_v11 = vpack.c.bf16 %v3683_v20, %v3682_v8 }
 0x25a   :  { %4589 = vmatprep.subr.bf16.mxu1 %v4945_v44 }
 0x25d   :  { %4591 = vmatpush3.bf16.msra.mxu1 %v4590_v47 }
 0x25e   :  { %4598 = vmatprep.subr.bf16.mxu1 %v4945_v44 }
 0x260   :  { %4290 = vmatmul.mubr.msk.f32.vlgmr.msra.gmra.mrb[22].mxu1 %vm778_vm0, %v2546_v15  ;;  %v3684_v15 = vld [vmem:[%s6591_s5 + $0x50] sm:$0xff] }
 0x261   :  { %4600 = vmatpush3.bf16.msra.mxu1 %v4599_v51  ;;  %4311 = vmatprep.mubr.msk.f32.mxu1 %vm4946_vm4, %v4947_v1  ;;  %v4686_v41 = vpack.c.bf16 %v3685_v38, %v3684_v15  ;;  %v3686_v51 = vld [vmem:[%s6591_s5 + $0x60] sm:$0xff] }
 0x262   :  { %4601 = vmatprep.subr.bf16.mxu1 %v4945_v44 }
 0x265   :  { %4603 = vmatpush3.bf16.msra.mxu1 %v4602_v42  ;;  %v4689_v42 = vpack.c.bf16 %v3687_v39, %v3686_v51 }
 0x266   :  { %4610 = vmatprep.subr.bf16.mxu1 %v4945_v44 }
 0x268   :  { %4312 = vmatmul.mubr.msk.f32.vlgmr.msra.gmra.mrb[24].mxu1 %vm778_vm0, %v2706_v40 }
 0x269   :  { %4612 = vmatpush3.bf16.msra.mxu1 %v4611_v33  ;;  %4333 = vmatprep.mubr.msk.f32.mxu1 %vm4946_vm4, %v4947_v1 }
 0x26a   :  { %4613 = vmatprep.subr.bf16.mxu1 %v4945_v44 }
 0x26d   :  { %4615 = vmatpush3.bf16.msra.mxu1 %v4614_v58  ;;  %v4692_v58 = vpack.c.bf16 %v3689_v35, %v3688_v23 }
 0x26e   :  { %4622 = vmatprep.subr.bf16.mxu1 %v4945_v44 }
 0x270   :  { %4334 = vmatmul.mubr.msk.f32.vlgmr.msra.gmra.mrb[26].mxu1 %vm778_vm0, %v2866_v25 }
 0x271   :  { %4624 = vmatpush3.bf16.msra.mxu1 %v4623_v50  ;;  %4355 = vmatprep.mubr.msk.f32.mxu1 %vm4946_vm4, %v4947_v1 }
 0x272   :  { %4625 = vmatprep.subr.bf16.mxu1 %v4945_v44 }
 0x275   :  { %4627 = vmatpush3.bf16.msra.mxu1 %v4626_v61 }
 0x276   :  { %4634 = vmatprep.subr.bf16.mxu1 %v4945_v44 }
 0x278   :  { %4356 = vmatmul.mubr.msk.f32.vlgmr.msra.gmra.mrb[28].mxu1 %vm778_vm0, %v3026_v19 }
 0x279   :  { %4636 = vmatpush3.bf16.msra.mxu1 %v4635_v27  ;;  %4377 = vmatprep.mubr.msk.f32.mxu1 %vm4946_vm4, %v4947_v1 }
 0x27a   :  { %4637 = vmatprep.subr.bf16.mxu1 %v4945_v44 }
 0x27d   :  { %4639 = vmatpush3.bf16.msra.mxu1 %v4638_v31 }
 0x27e   :  { %4646 = vmatprep.subr.bf16.mxu1 %v4945_v44 }
 0x280   :  { %4378 = vmatmul.mubr.msk.f32.vlgmr.msra.gmra.mrb[30].mxu1 %vm778_vm0, %v3186_v57 }
 0x281   :  { %4648 = vmatpush3.bf16.msra.mxu1 %v4647_v55  ;;  %4399 = vmatprep.mubr.msk.f32.mxu1 %vm4946_vm4, %v4947_v1 }
 0x282   :  { %4649 = vmatprep.subr.bf16.mxu1 %v4945_v44 }
 0x285   :  { %4651 = vmatpush3.bf16.msra.mxu1 %v4650_v30 }
 0x286   :  { %4658 = vmatprep.subr.bf16.mxu1 %v4945_v44 }
 0x288   :  { %4400 = vmatmul.mubr.msk.f32.vlgmr.msra.gmra.mrb[32].mxu1 %vm778_vm0, %v3346_v32 }
 0x289   :  { %4660 = vmatpush3.bf16.msra.mxu1 %v4659_v56  ;;  %4421 = vmatprep.mubr.msk.f32.mxu1 %vm4946_vm4, %v4947_v1 }
 0x28a   :  { %4661 = vmatprep.subr.bf16.mxu1 %v4945_v44 }
 0x28d   :  { %4663 = vmatpush3.bf16.msra.mxu1 %v4662_v13 }
 0x28e   :  { %4670 = vmatprep.subr.bf16.mxu1 %v4945_v44 }
 0x290   :  { %4422 = vmatmul.mubr.msk.f32.vlgmr.msra.gmra.mrb[34].mxu1 %vm778_vm0, %v3506_v62 }
 0x291   :  { %4467 = vmatprep.mubr.msk.f32.mxu1 %vm4946_vm4, %v4947_v1  ;;  %4672 = vmatpush3.bf16.msra.mxu1 %v4671_v26  ;;  %v3677_v1 = vld [vmem:[%s6591_s5 + $0x18] sm:$0xff] }
 0x292   :  { %4673 = vmatprep.subr.bf16.mxu1 %v4945_v44  ;;  %v4674_v59 = vpack.c.bf16 %v3677_v1, %v3676_v63 }
 0x295   :  { %4675 = vmatpush3.bf16.msra.mxu1 %v4674_v59 }
 0x296   :  { %4676 = vmatprep.subr.bf16.mxu1 %v4945_v44 }
 0x299   :  { %4678 = vmatpush3.bf16.msra.mxu1 %v4677_v4 }
 0x29a   :  { %4679 = vmatprep.subr.bf16.mxu1 %v4945_v44 }
 0x29d   :  { %4681 = vmatpush3.bf16.msra.mxu1 %v4680_v7 }
 0x29e   :  { %4682 = vmatprep.subr.bf16.mxu1 %v4945_v44 }
 0x2a1   :  { %4684 = vmatpush3.bf16.msra.mxu1 %v4683_v11 }
 0x2a2   :  { %4685 = vmatprep.subr.bf16.mxu1 %v4945_v44 }
 0x2a5   :  { %4687 = vmatpush3.bf16.msra.mxu1 %v4686_v41 }
 0x2a6   :  { %4688 = vmatprep.subr.bf16.mxu1 %v4945_v44 }
 0x2a9   :  { %4690 = vmatpush3.bf16.msra.mxu1 %v4689_v42 }
 0x2aa   :  { %4691 = vmatprep.subr.bf16.mxu1 %v4945_v44 }
 0x2ad   :  { %4693 = vmatpush3.bf16.msra.mxu1 %v4692_v58 }
 0x2db   :  { %v1581_v9 = vpop.f32.mrb[0].mxu1  ;;  %v1508_v10 = vpop.f32.mrb[32].mxu0 }
 0x2dc   :  { %v1582_v45 = vadd.f32 %v1581_v9, %v1508_v10  ;;  %v4148_v52 = vpop.f32.mrb[1].mxu1  ;;  %v4137_v47 = vpop.f32.mrb[33].mxu0 }
 0x2e3   :  { %v1660_v43 = vpop.f32.mrb[2].mxu1 }
 0x2e4   :  { %v1664_v40 = vadd.f32 %v1660_v43, %v1582_v45  ;;  %v4159_v12 = vpop.f32.mrb[3].mxu1 }
 0x2e5   :  { %v2380_v60 = vpop.f32.mrb[34].mxu0 }
 0x2e6   :  { %v4258_v33 = vpop.f32.mrb[35].mxu0 }
 0x2eb   :  { %v1740_v25 = vpop.f32.mrb[4].mxu1 }
 0x2ec   :  { %v1744_v22 = vadd.f32 %v1740_v25, %v1664_v40  ;;  %v4170_v46 = vpop.f32.mrb[5].mxu1 }
 0x2ed   :  { %v2540_v50 = vpop.f32.mrb[36].mxu0 }
 0x2ee   :  { %v4280_v21 = vpop.f32.mrb[37].mxu0 }
 0x2f3   :  { %v1820_v18 = vpop.f32.mrb[6].mxu1 }
 0x2f4   :  { %v1824_v61 = vadd.f32 %v1820_v18, %v1744_v22  ;;  %v4181_v19 = vpop.f32.mrb[7].mxu1 }
 0x2f5   :  { %v2700_v36 = vpop.f32.mrb[38].mxu0 }
 0x2f6   :  { %v4302_v44 = vpop.f32.mrb[39].mxu0 }
 0x2fb   :  { %v1900_v17 = vpop.f32.mrb[8].mxu1 }
 0x2fc   :  { %v1904_v27 = vadd.f32 %v1900_v17, %v1824_v61  ;;  %v4192_v37 = vpop.f32.mrb[9].mxu1 }
 0x2fd   :  { %v2860_v49 = vpop.f32.mrb[40].mxu0  ;;  %v3838_v37 = vld [vmem:[%s6592_s6] ss:$0 sm:$0xff] }
 0x2fe   :  { %v4324_v31 = vpop.f32.mrb[41].mxu0 }
 0x303   :  { %v1980_v57 = vpop.f32.mrb[10].mxu1 }
 0x304   :  { %v1984_v16 = vadd.f32 %v1980_v57, %v1904_v27  ;;  %v4203_v28 = vpop.f32.mrb[11].mxu1 }
 0x305   :  { %v3020_v55 = vpop.f32.mrb[42].mxu0 }
 0x306   :  { %v4346_v0 = vpop.f32.mrb[43].mxu0 }
 0x30b   :  { %v2060_v29 = vpop.f32.mrb[12].mxu1 }
 0x30c   :  { %v2064_v30 = vadd.f32 %v2060_v29, %v1984_v16  ;;  %v4214_v32 = vpop.f32.mrb[13].mxu1  ;;  %v3839_v16 = vld [vmem:[%s6593_s7] ss:$0 sm:$0xff]  ;;  %v3840_v29 = vld [vmem:[#allocation7] ss:$0 sm:$0xff] }
 0x30d   :  { %v3180_v34 = vpop.f32.mrb[44].mxu0 }
 0x30e   :  { %v4368_v54 = vpop.f32.mrb[45].mxu0 }
 0x313   :  { %v2140_v56 = vpop.f32.mrb[14].mxu1 }
 0x314   :  { %v2144_v53 = vadd.f32 %v2140_v56, %v2064_v30  ;;  %v4225_v14 = vpop.f32.mrb[15].mxu1 }
 0x315   :  { %v3340_v13 = vpop.f32.mrb[46].mxu0 }
 0x316   :  { %v4390_v62 = vpop.f32.mrb[47].mxu0 }
 0x31b   :  { %v2220_v48 = vpop.f32.mrb[16].mxu1 }
 0x31c   :  { %v2224_v24 = vadd.f32 %v2220_v48, %v2144_v53  ;;  %v4236_v26 = vpop.f32.mrb[17].mxu1 }
 0x31d   :  { %v3500_v63 = vpop.f32.mrb[48].mxu0 }
 0x31e   :  { %v4412_v1 = vpop.f32.mrb[49].mxu0 }
 0x323   :  { %v2300_v59 = vpop.f32.mrb[18].mxu1 }
 0x324   :  { %v2304_v2 = vadd.f32 %v2300_v59, %v2224_v24  ;;  %v4247_v3 = vpop.f32.mrb[19].mxu1 }
 0x325   :  { %v3660_v4 = vpop.f32.mrb[50].mxu0 }
 0x326   :  { %v2384_v5 = vadd.f32 %v2380_v60, %v2304_v2  ;;  %v4434_v6 = vpop.f32.mrb[51].mxu0 }
 0x32b   :  { %v2460_v7 = vpop.f32.mrb[20].mxu1 }
 0x32c   :  { %v2464_v8 = vadd.f32 %v2460_v7, %v2384_v5  ;;  %v4269_v20 = vpop.f32.mrb[21].mxu1 }
 0x32e   :  { %v2544_v9 = vadd.f32 %v2540_v50, %v2464_v8 }
 0x333   :  { %v2620_v10 = vpop.f32.mrb[22].mxu1 }
 0x334   :  { %v2624_v11 = vadd.f32 %v2620_v10, %v2544_v9  ;;  %v4291_v45 = vpop.f32.mrb[23].mxu1 }
 0x336   :  { %v2704_v52 = vadd.f32 %v2700_v36, %v2624_v11  ;;  %v3837_v36 = vld [vmem:[%s6590_s4] ss:$0 sm:$0xff] }
 0x33b   :  { %v2780_v47 = vpop.f32.mrb[24].mxu1 }
 0x33c   :  { %v2784_v15 = vadd.f32 %v2780_v47, %v2704_v52  ;;  %v4313_v38 = vpop.f32.mrb[25].mxu1 }
 0x33e   :  { %v2864_v41 = vadd.f32 %v2860_v49, %v2784_v15 }
 0x343   :  { %v2940_v51 = vpop.f32.mrb[26].mxu1 }
 0x344   :  { %v2944_v39 = vadd.f32 %v2940_v51, %v2864_v41  ;;  %v4335_v43 = vpop.f32.mrb[27].mxu1 }
 0x346   :  { %v3024_v42 = vadd.f32 %v3020_v55, %v2944_v39 }
 0x34b   :  { %v3100_v40 = vpop.f32.mrb[28].mxu1 }
 0x34c   :  { %v3104_v12 = vadd.f32 %v3100_v40, %v3024_v42  ;;  %v4357_v60 = vpop.f32.mrb[29].mxu1 }
 0x34e   :  { %v3184_v33 = vadd.f32 %v3180_v34, %v3104_v12 }
 0x353   :  { %v3260_v23 = vpop.f32.mrb[30].mxu1 }
 0x354   :  { %v3264_v35 = vadd.f32 %v3260_v23, %v3184_v33  ;;  %v4379_v58 = vpop.f32.mrb[31].mxu1 }
 0x356   :  { %v3344_v25 = vadd.f32 %v3340_v13, %v3264_v35 }
 0x35b   :  { %v3420_v22 = vpop.f32.mrb[32].mxu1 }
 0x35c   :  { %v3424_v46 = vadd.f32 %v3420_v22, %v3344_v25  ;;  %v4401_v50 = vpop.f32.mrb[33].mxu1 }
 0x35e   :  { %v3504_v21 = vadd.f32 %v3500_v63, %v3424_v46 }
 0x363   :  { %v3580_v18 = vpop.f32.mrb[34].mxu1 }
 0x364   :  { %v3584_v61 = vadd.f32 %v3580_v18, %v3504_v21  ;;  %v4423_v19 = vpop.f32.mrb[35].mxu1 }
 0x366   :  { %v3664_v44 = vadd.f32 %v3660_v4, %v3584_v61 }
 0x368   :  { %v3672_v17 = vadd.f32 %v3837_v36, %v3664_v44 }
 0x36a   :  { %v3673_v27 = vmax.f32 %v3672_v17, 0.0 }
 0x36c   :  { %4468 = vmatmul.mubr.f32.vlgmr.msra.gmra.mrb[36].mxu1 %v3673_v27 }
 0x43f   :  { %v3763_v49 = vpop.f32.mrb[36].mxu1 }
 0x440   :  { %v3764_v31 = vadd.f32 %v3838_v37, %v3763_v49  ;;  %v4469_v57 = vpop.f32.mrb[37].mxu1 }
 0x442   :  { %v3767_v28 = vmax.f32 %v3764_v31, 0.0 }
 0x444   :  { %v3775_v55 = vmul.f32 %v3839_v16, %v3767_v28 }
 0x446   :  { %v3777_v0 = vsel %vm3776_vm5, %v3775_v55, 0.0 }
 0x447   :  { %3778 = vadd.xlane.f32.xlu0 %v3777_v0 }
 0x4d4   :  { %v3779_v30 = vpop.xlane.xlu0 %3778 }
 0x4d5   :  { %v3787_v32 = vadd.f32 %v3840_v29, %v3779_v30 }
 0x4d7   :  { %3789 = vst.msk [vmem:[%s6595_s9] sm:$0x3] %vm3788_vm6, %v3787_v32 }
 0x4d8   :  { %3794 = vsyncmov [#allocation6] }
 0x4db   :  { %s3795_s6 = vpop.sfrf %3794 }
 0x4dc   :  { %p3841_p0 = scmp.ne.s32.totalorder %s3795_s6, 0 }
 0x4de   :  { %3799 = shalt.err (%p3841_p0)  }

</bundles_post_ra>
